<compile_context>
chip_gen: v6e
topology: v6e:2x2x1
jax: 0.10.0
libtpu: 0.0.40
codegen_flags: <defaults>
</compile_context>

<pallas_src>
import functools

import jax
import jax.numpy as jnp
from jax import lax
from jax.experimental import pallas as pl
from jax.experimental.pallas import tpu as pltpu

B_BLOCK = 8      # sublane tile for the batch dimension
LANES = 128      # lane tile


def _round_up(x, m):
    return ((x + m - 1) // m) * m


# ---------------------------------------------------------------------------
# Fused kernel: all GRU layers + FC head
# ---------------------------------------------------------------------------

def fused_gru_fc_kernel(x_ref, wih_ref, whh_ref, bgi_ref, bhhn_ref,
                        wfc_ref, bfc_ref, out_ref,
                        seq_scr, gi_scr, h_scr):
    """One batch block, full sequence, all layers, plus the FC head.

    x_ref:    (T, Bb, Hp)        time-major padded input (layer-0 input)
    wih_ref:  (L, Hp, 3*Hp)      input->hidden weights, gate blocks r|z|n, padded
    whh_ref:  (L, Hp, 3*Hp)      hidden->hidden weights, padded
    bgi_ref:  (L, 1, 3*Hp)       [b_ih_r+b_hh_r | b_ih_z+b_hh_z | b_ih_n]
    bhhn_ref: (L, 1, Hp)         b_hh_n (must stay inside the r* term)
    wfc_ref:  (Hp, Op)           FC weight (padded)
    bfc_ref:  (1, Op)            FC bias (padded)
    out_ref:  (Bb, Op)
    seq_scr:  (T, Bb, Hp)        inter-layer activations (VMEM)
    gi_scr:   (T, Bb, 3*Hp)      hoisted input projection for current layer
    h_scr:    (Bb, Hp)           running hidden state
    """
    T, Bb, Hp = seq_scr.shape
    L = wih_ref.shape[0]

    # Layer-0 input.
    seq_scr[...] = x_ref[...]

    for layer in range(L):                      # static: unrolled over layers
        # --- Hoisted input projection: one big MXU matmul over T*Bb rows. ---
        seq_flat = seq_scr[...].reshape(T * Bb, Hp)
        gi = jnp.dot(seq_flat, wih_ref[layer],
                     preferred_element_type=jnp.float32) + bgi_ref[layer]
        gi_scr[...] = gi.reshape(T, Bb, 3 * Hp)

        h_scr[...] = jnp.zeros_like(h_scr)
        w_hh = whh_ref[layer]                   # (Hp, 3*Hp), loaded once/layer
        b_hhn = bhhn_ref[layer]                 # (1, Hp)

        def step(t, carry):
            h_prev = h_scr[...]                                     # (Bb, Hp)
            gh = jnp.dot(h_prev, w_hh,
                         preferred_element_type=jnp.float32)        # (Bb, 3Hp)
            gi_t = gi_scr[t]                                        # (Bb, 3Hp)
            # Gate slices are 128-lane aligned blocks -> full vregs, no masks.
            r = jax.nn.sigmoid(gi_t[:, 0:Hp] + gh[:, 0:Hp])
            z = jax.nn.sigmoid(gi_t[:, Hp:2 * Hp] + gh[:, Hp:2 * Hp])
            n = jnp.tanh(gi_t[:, 2 * Hp:] + r * (gh[:, 2 * Hp:] + b_hhn))
            h_new = (1.0 - z) * n + z * h_prev
            h_scr[...] = h_new
            seq_scr[t] = h_new                  # becomes next layer's input
            return carry

        # Fully unrolled: T is small/static -> scheduler sees the whole chain.
        lax.fori_loop(0, T, step, 0, unroll=True)

    # FC head on the last hidden state of the last layer.
    out_ref[...] = (jnp.dot(h_scr[...], wfc_ref[...],
                            preferred_element_type=jnp.float32) + bfc_ref[...])


# ---------------------------------------------------------------------------
# Host wrapper
# ---------------------------------------------------------------------------

@functools.partial(jax.jit, static_argnames=("output_dim",))
def gru_forward(x, packed, output_dim):
    """Matches the PyTorch module: fc(gru(x, h0=0)[0][:, -1, :])."""
    B, T, D = x.shape
    L, Hp, H3p = packed["wih"].shape
    Op = packed["wfc"].shape[1]
    Bp = _round_up(B, B_BLOCK)
    nb = Bp // B_BLOCK

    # (B, T, D) -> (T, Bp, Hp): time-major, batch on sublanes, input padded to
    # the same lane width as the hidden state so all layers share weight shape.
    x_tm = jnp.transpose(x, (1, 0, 2)).astype(jnp.float32)
    x_pad = jnp.zeros((T, Bp, Hp), jnp.float32).at[:, :B, :D].set(x_tm)

    out_pad = pl.pallas_call(
        fused_gru_fc_kernel,
        out_shape=jax.ShapeDtypeStruct((Bp, Op), jnp.float32),
        grid_spec=pltpu.PrefetchScalarGridSpec(
            num_scalar_prefetch=0,
            grid=(nb,),                                   # batch blocks
            in_specs=[
                pl.BlockSpec((T, B_BLOCK, Hp), lambda b: (0, b, 0)),   # x
                pl.BlockSpec((L, Hp, H3p), lambda b: (0, 0, 0)),       # W_ih
                pl.BlockSpec((L, Hp, H3p), lambda b: (0, 0, 0)),       # W_hh
                pl.BlockSpec((L, 1, H3p), lambda b: (0, 0, 0)),        # b_gi
                pl.BlockSpec((L, 1, Hp), lambda b: (0, 0, 0)),         # b_hh_n
                pl.BlockSpec((Hp, Op), lambda b: (0, 0)),              # W_fc
                pl.BlockSpec((1, Op), lambda b: (0, 0)),               # b_fc
            ],
            out_specs=pl.BlockSpec((B_BLOCK, Op), lambda b: (b, 0)),
            scratch_shapes=[
                pltpu.VMEM((T, B_BLOCK, Hp), jnp.float32),       # seq
                pltpu.VMEM((T, B_BLOCK, H3p), jnp.float32),      # gi
                pltpu.VMEM((B_BLOCK, Hp), jnp.float32),          # h
            ],
        ),
        compiler_params=pltpu.CompilerParams(
            dimension_semantics=("parallel",),   # v7x: shard batch across TCs
        ),
    )(x_pad, packed["wih"], packed["whh"], packed["bgi"], packed["bhhn"],
      packed["wfc"], packed["bfc"])

    return out_pad[:B, :output_dim]


# ---------------------------------------------------------------------------
# Parameter init (torch layouts) + packing into the padded kernel layout
# ---------------------------------------------------------------------------

def init_raw_params(key, input_dim, hidden_dim, num_layers, output_dim):
    """Same shapes / init range as torch.nn.GRU + nn.Linear (torch layouts)."""
    bound = 1.0 / (hidden_dim ** 0.5)
    keys = jax.random.split(key, num_layers * 4 + 2)
    ki = 0
    layers = []
    for layer in range(num_layers):
        in_dim = input_dim if layer == 0 else hidden_dim
        w_ih = jax.random.uniform(keys[ki], (3 * hidden_dim, in_dim),
                                  minval=-bound, maxval=bound, dtype=jnp.float32); ki += 1
        w_hh = jax.random.uniform(keys[ki], (3 * hidden_dim, hidden_dim),
                                  minval=-bound, maxval=bound, dtype=jnp.float32); ki += 1
        b_ih = jax.random.uniform(keys[ki], (3 * hidden_dim,),
                                  minval=-bound, maxval=bound, dtype=jnp.float32); ki += 1
        b_hh = jax.random.uniform(keys[ki], (3 * hidden_dim,),
                                  minval=-bound, maxval=bound, dtype=jnp.float32); ki += 1
        layers.append({"w_ih": w_ih, "w_hh": w_hh, "b_ih": b_ih, "b_hh": b_hh})
    w_fc = jax.random.uniform(keys[ki], (output_dim, hidden_dim),
                              minval=-bound, maxval=bound, dtype=jnp.float32); ki += 1
    b_fc = jax.random.uniform(keys[ki], (output_dim,),
                              minval=-bound, maxval=bound, dtype=jnp.float32)
    return {"layers": layers, "w_fc": w_fc, "b_fc": b_fc}


def pack_params(raw, input_dim, hidden_dim, output_dim):
    """Pad each gate block to 128 lanes, transpose, pre-combine r/z biases,
    and stack the layers so the kernel takes one array per parameter kind.
    All padded rows/columns are zero so padded lanes stay exactly zero."""
    H = hidden_dim
    Hp = _round_up(H, LANES)
    Op = _round_up(output_dim, LANES)

    wih_l, whh_l, bgi_l, bhhn_l = [], [], [], []
    for layer in raw["layers"]:
        w_ih, w_hh = layer["w_ih"], layer["w_hh"]      # (3H,in_dim), (3H,H)
        b_ih, b_hh = layer["b_ih"], layer["b_hh"]      # (3H,), (3H,)
        in_dim = w_ih.shape[1]

        wih_p = jnp.zeros((Hp, 3 * Hp), jnp.float32)
        whh_p = jnp.zeros((Hp, 3 * Hp), jnp.float32)
        for g in range(3):                             # gate order r, z, n
            wih_p = wih_p.at[:in_dim, g * Hp:g * Hp + H].set(
                w_ih[g * H:(g + 1) * H, :].T)
            whh_p = whh_p.at[:H, g * Hp:g * Hp + H].set(
                w_hh[g * H:(g + 1) * H, :].T)

        bgi_p = jnp.zeros((1, 3 * Hp), jnp.float32)
        bgi_p = bgi_p.at[0, 0 * Hp:0 * Hp + H].set(b_ih[0:H] + b_hh[0:H])
        bgi_p = bgi_p.at[0, 1 * Hp:1 * Hp + H].set(b_ih[H:2 * H] + b_hh[H:2 * H])
        bgi_p = bgi_p.at[0, 2 * Hp:2 * Hp + H].set(b_ih[2 * H:3 * H])
        bhhn_p = jnp.zeros((1, Hp), jnp.float32).at[0, :H].set(b_hh[2 * H:3 * H])

        wih_l.append(wih_p); whh_l.append(whh_p)
        bgi_l.append(bgi_p); bhhn_l.append(bhhn_p)

    wfc_p = jnp.zeros((Hp, Op), jnp.float32).at[:H, :output_dim].set(raw["w_fc"].T)
    bfc_p = jnp.zeros((1, Op), jnp.float32).at[0, :output_dim].set(raw["b_fc"])

    return {"wih": jnp.stack(wih_l), "whh": jnp.stack(whh_l),
            "bgi": jnp.stack(bgi_l), "bhhn": jnp.stack(bhhn_l),
            "wfc": wfc_p, "bfc": bfc_p}


# ---------------------------------------------------------------------------
# Pure-JAX reference (torch.nn.GRU semantics) for a correctness check
# ---------------------------------------------------------------------------

def gru_reference(x, raw, hidden_dim):
    B, T, D = x.shape
    H = hidden_dim
    prec = jax.lax.Precision.HIGHEST
    seq = x
    for layer in raw["layers"]:
        h = jnp.zeros((B, H), jnp.float32)
        outs = []
        for t in range(T):
            gi = jnp.dot(seq[:, t, :], layer["w_ih"].T, precision=prec) + layer["b_ih"]
            gh = jnp.dot(h, layer["w_hh"].T, precision=prec) + layer["b_hh"]
            r = jax.nn.sigmoid(gi[:, :H] + gh[:, :H])
            z = jax.nn.sigmoid(gi[:, H:2 * H] + gh[:, H:2 * H])
            n = jnp.tanh(gi[:, 2 * H:] + r * gh[:, 2 * H:])
            h = (1.0 - z) * n + z * h
            outs.append(h)
        seq = jnp.stack(outs, axis=1)
    return jnp.dot(seq[:, -1, :], raw["w_fc"].T, precision=prec) + raw["b_fc"]


# ---------------------------------------------------------------------------
# Main
# ---------------------------------------------------------------------------

if __name__ == "__main__":
    batch = 2
    seq_len = 8
    input_dim = 4
    hidden_dim = 32
    num_layers = 2
    output_dim = 4

    key = jax.random.PRNGKey(0)
    k_x, k_p = jax.random.split(key)
    x = jax.random.normal(k_x, (batch, seq_len, input_dim), dtype=jnp.float32)

    raw = init_raw_params(k_p, input_dim, hidden_dim, num_layers, output_dim)
    packed = pack_params(raw, input_dim, hidden_dim, output_dim)

    out = gru_forward(x, packed, output_dim=output_dim)
    jax.block_until_ready(out)
    assert out.shape == (batch, output_dim), out.shape

    ref = gru_reference(x, raw, hidden_dim)
    assert jnp.allclose(out, ref, atol=2e-3, rtol=2e-3), (
        "max abs err", float(jnp.max(jnp.abs(out - ref))))

    print("KERNEL_OK")
</pallas_src>

<mosaic_0001>
module attributes {stable_mosaic.version = 11 : i64} {
  func.func @fused_gru_fc_kernel(%arg0: i32, %arg1: memref<8x8x128xf32, #tpu.memory_space<vmem>>, %arg2: memref<2x128x384xf32, #tpu.memory_space<vmem>>, %arg3: memref<2x128x384xf32, #tpu.memory_space<vmem>>, %arg4: memref<2x1x384xf32, #tpu.memory_space<vmem>>, %arg5: memref<2x1x128xf32, #tpu.memory_space<vmem>>, %arg6: memref<128x128xf32, #tpu.memory_space<vmem>>, %arg7: memref<1x128xf32, #tpu.memory_space<vmem>>, %arg8: memref<8x128xf32, #tpu.memory_space<vmem>>, %arg9: memref<8x8x128xf32, #tpu.memory_space<vmem>>, %arg10: memref<8x8x384xf32, #tpu.memory_space<vmem>>, %arg11: memref<8x128xf32, #tpu.memory_space<vmem>>) attributes {dimension_semantics = [#tpu.dimension_semantics<parallel>], iteration_bounds = array<i64: 1>, scalar_prefetch = 0 : i64, scratch_operands = 3 : i64, tpu.core_type = #tpu.core_type<tc>, window_params = [{transform_indices = @transform_0, window_bounds = array<i64: 8, 8, 128>}, {pipeline_mode = #tpu.pipeline_mode<synchronous>, transform_indices = @transform_1, window_bounds = array<i64: 2, 128, 384>}, {pipeline_mode = #tpu.pipeline_mode<synchronous>, transform_indices = @transform_2, window_bounds = array<i64: 2, 128, 384>}, {pipeline_mode = #tpu.pipeline_mode<synchronous>, transform_indices = @transform_3, window_bounds = array<i64: 2, 1, 384>}, {pipeline_mode = #tpu.pipeline_mode<synchronous>, transform_indices = @transform_4, window_bounds = array<i64: 2, 1, 128>}, {pipeline_mode = #tpu.pipeline_mode<synchronous>, transform_indices = @transform_5, window_bounds = array<i64: 128, 128>}, {pipeline_mode = #tpu.pipeline_mode<synchronous>, transform_indices = @transform_6, window_bounds = array<i64: 1, 128>}, {transform_indices = @transform_7, window_bounds = array<i64: 8, 128>}]} {
    %c0 = arith.constant 0 : index
    %c0_0 = arith.constant 0 : index
    %c0_1 = arith.constant 0 : index
    %0 = vector.load %arg1[%c0, %c0_0, %c0_1] : memref<8x8x128xf32, #tpu.memory_space<vmem>>, vector<8x8x128xf32>
    %c0_2 = arith.constant 0 : index
    %c0_3 = arith.constant 0 : index
    %c0_4 = arith.constant 0 : index
    %1 = vector.load %arg9[%c0_2, %c0_3, %c0_4] : memref<8x8x128xf32, #tpu.memory_space<vmem>>, vector<8x8x128xf32>
    tpu.vector_store %arg9[%c0_2, %c0_3, %c0_4], %0 {strides = array<i32>} : memref<8x8x128xf32, #tpu.memory_space<vmem>>, vector<8x8x128xf32>,
    %c0_5 = arith.constant 0 : index
    %c0_6 = arith.constant 0 : index
    %c0_7 = arith.constant 0 : index
    %2 = vector.load %arg9[%c0_5, %c0_6, %c0_7] : memref<8x8x128xf32, #tpu.memory_space<vmem>>, vector<8x8x128xf32>
    %3 = vector.shape_cast %2 : vector<8x8x128xf32> to vector<64x128xf32>
    %c0_8 = arith.constant 0 : index
    %c0_9 = arith.constant 0 : index
    %c0_10 = arith.constant 0 : index
    %4 = vector.load %arg2[%c0_8, %c0_9, %c0_10] : memref<2x128x384xf32, #tpu.memory_space<vmem>>, vector<1x128x384xf32>
    %5 = vector.shape_cast %4 : vector<1x128x384xf32> to vector<128x384xf32>
    %cst = arith.constant dense<0.000000e+00> : vector<64x384xf32>
    %6 = tpu.matmul %3, %5, %cst {dimension_numbers = #tpu.dot_dimension_numbers<[1], [0], [0], [1], [0, 0, 1, 1], [], []>} : vector<64x128xf32>, vector<128x384xf32>, vector<64x384xf32> -> vector<64x384xf32>
    %c0_11 = arith.constant 0 : index
    %c0_12 = arith.constant 0 : index
    %c0_13 = arith.constant 0 : index
    %7 = vector.load %arg4[%c0_11, %c0_12, %c0_13] : memref<2x1x384xf32, #tpu.memory_space<vmem>>, vector<1x1x384xf32>
    %8 = vector.shape_cast %7 : vector<1x1x384xf32> to vector<1x384xf32>
    %9 = vector.broadcast %8 : vector<1x384xf32> to vector<64x384xf32>
    %10 = arith.addf %6, %9 : vector<64x384xf32>
    %11 = vector.shape_cast %10 : vector<64x384xf32> to vector<8x8x384xf32>
    %c0_14 = arith.constant 0 : index
    %c0_15 = arith.constant 0 : index
    %c0_16 = arith.constant 0 : index
    %12 = vector.load %arg10[%c0_14, %c0_15, %c0_16] : memref<8x8x384xf32, #tpu.memory_space<vmem>>, vector<8x8x384xf32>
    tpu.vector_store %arg10[%c0_14, %c0_15, %c0_16], %11 {strides = array<i32>} : memref<8x8x384xf32, #tpu.memory_space<vmem>>, vector<8x8x384xf32>,
    %cst_17 = arith.constant 0.000000e+00 : f32
    %13 = vector.broadcast %cst_17 : f32 to vector<8x128xf32>
    %c0_18 = arith.constant 0 : index
    %c0_19 = arith.constant 0 : index
    %14 = vector.load %arg11[%c0_18, %c0_19] : memref<8x128xf32, #tpu.memory_space<vmem>>, vector<8x128xf32>
    tpu.vector_store %arg11[%c0_18, %c0_19], %13 {strides = array<i32>} : memref<8x128xf32, #tpu.memory_space<vmem>>, vector<8x128xf32>,
    %c0_20 = arith.constant 0 : index
    %c0_21 = arith.constant 0 : index
    %c0_22 = arith.constant 0 : index
    %15 = vector.load %arg3[%c0_20, %c0_21, %c0_22] : memref<2x128x384xf32, #tpu.memory_space<vmem>>, vector<1x128x384xf32>
    %16 = vector.shape_cast %15 : vector<1x128x384xf32> to vector<128x384xf32>
    %c0_23 = arith.constant 0 : index
    %c0_24 = arith.constant 0 : index
    %c0_25 = arith.constant 0 : index
    %17 = vector.load %arg5[%c0_23, %c0_24, %c0_25] : memref<2x1x128xf32, #tpu.memory_space<vmem>>, vector<1x1x128xf32>
    %18 = vector.shape_cast %17 : vector<1x1x128xf32> to vector<1x128xf32>
    %c0_i32 = arith.constant 0 : i32
    %c0_26 = arith.constant 0 : index
    %c0_27 = arith.constant 0 : index
    %19 = vector.load %arg11[%c0_26, %c0_27] : memref<8x128xf32, #tpu.memory_space<vmem>>, vector<8x128xf32>
    %cst_28 = arith.constant dense<0.000000e+00> : vector<8x384xf32>
    %20 = tpu.matmul %19, %16, %cst_28 {dimension_numbers = #tpu.dot_dimension_numbers<[1], [0], [0], [1], [0, 0, 1, 1], [], []>} : vector<8x128xf32>, vector<128x384xf32>, vector<8x384xf32> -> vector<8x384xf32>
    %21 = arith.index_cast %c0_i32 : i32 to index
    %c0_29 = arith.constant 0 : index
    %c0_30 = arith.constant 0 : index
    %22 = vector.load %arg10[%21, %c0_29, %c0_30] : memref<8x8x384xf32, #tpu.memory_space<vmem>>, vector<1x8x384xf32>
    %23 = vector.shape_cast %22 : vector<1x8x384xf32> to vector<8x384xf32>
    %24 = vector.extract_strided_slice %23 {offsets = [0, 0], sizes = [8, 128], strides = [1, 1]} : vector<8x384xf32> to vector<8x128xf32>
    %25 = vector.extract_strided_slice %20 {offsets = [0, 0], sizes = [8, 128], strides = [1, 1]} : vector<8x384xf32> to vector<8x128xf32>
    %26 = arith.addf %24, %25 : vector<8x128xf32>
    %27 = arith.negf %26 : vector<8x128xf32>
    %28 = math.exp %27 : vector<8x128xf32>
    %cst_31 = arith.constant 1.000000e+00 : f32
    %29 = vector.broadcast %cst_31 : f32 to vector<8x128xf32>
    %30 = arith.addf %29, %28 : vector<8x128xf32>
    %31 = arith.divf %29, %30 : vector<8x128xf32>
    %32 = vector.extract_strided_slice %23 {offsets = [0, 128], sizes = [8, 128], strides = [1, 1]} : vector<8x384xf32> to vector<8x128xf32>
    %33 = vector.extract_strided_slice %20 {offsets = [0, 128], sizes = [8, 128], strides = [1, 1]} : vector<8x384xf32> to vector<8x128xf32>
    %34 = arith.addf %32, %33 : vector<8x128xf32>
    %35 = arith.negf %34 : vector<8x128xf32>
    %36 = math.exp %35 : vector<8x128xf32>
    %cst_32 = arith.constant 1.000000e+00 : f32
    %37 = vector.broadcast %cst_32 : f32 to vector<8x128xf32>
    %38 = arith.addf %37, %36 : vector<8x128xf32>
    %39 = arith.divf %37, %38 : vector<8x128xf32>
    %40 = vector.extract_strided_slice %23 {offsets = [0, 256], sizes = [8, 128], strides = [1, 1]} : vector<8x384xf32> to vector<8x128xf32>
    %41 = vector.extract_strided_slice %20 {offsets = [0, 256], sizes = [8, 128], strides = [1, 1]} : vector<8x384xf32> to vector<8x128xf32>
    %42 = vector.broadcast %18 : vector<1x128xf32> to vector<8x128xf32>
    %43 = arith.addf %41, %42 : vector<8x128xf32>
    %44 = arith.mulf %31, %43 : vector<8x128xf32>
    %45 = arith.addf %40, %44 : vector<8x128xf32>
    %46 = math.tanh %45 : vector<8x128xf32>
    %cst_33 = arith.constant 1.000000e+00 : f32
    %47 = vector.broadcast %cst_33 : f32 to vector<8x128xf32>
    %48 = arith.subf %47, %39 : vector<8x128xf32>
    %49 = arith.mulf %48, %46 : vector<8x128xf32>
    %50 = arith.mulf %39, %19 : vector<8x128xf32>
    %51 = arith.addf %49, %50 : vector<8x128xf32>
    %c0_34 = arith.constant 0 : index
    %c0_35 = arith.constant 0 : index
    %52 = vector.load %arg11[%c0_34, %c0_35] : memref<8x128xf32, #tpu.memory_space<vmem>>, vector<8x128xf32>
    tpu.vector_store %arg11[%c0_34, %c0_35], %51 {strides = array<i32>} : memref<8x128xf32, #tpu.memory_space<vmem>>, vector<8x128xf32>,
    %53 = arith.index_cast %c0_i32 : i32 to index
    %c0_36 = arith.constant 0 : index
    %c0_37 = arith.constant 0 : index
    %54 = vector.load %arg9[%53, %c0_36, %c0_37] : memref<8x8x128xf32, #tpu.memory_space<vmem>>, vector<1x8x128xf32>
    %55 = vector.shape_cast %54 : vector<1x8x128xf32> to vector<8x128xf32>
    %56 = vector.shape_cast %51 : vector<8x128xf32> to vector<1x8x128xf32>
    tpu.vector_store %arg9[%53, %c0_36, %c0_37], %56 {strides = array<i32>} : memref<8x8x128xf32, #tpu.memory_space<vmem>>, vector<1x8x128xf32>,
    %c1_i32 = arith.constant 1 : i32
    %c0_38 = arith.constant 0 : index
    %c0_39 = arith.constant 0 : index
    %57 = vector.load %arg11[%c0_38, %c0_39] : memref<8x128xf32, #tpu.memory_space<vmem>>, vector<8x128xf32>
    %cst_40 = arith.constant dense<0.000000e+00> : vector<8x384xf32>
    %58 = tpu.matmul %57, %16, %cst_40 {dimension_numbers = #tpu.dot_dimension_numbers<[1], [0], [0], [1], [0, 0, 1, 1], [], []>} : vector<8x128xf32>, vector<128x384xf32>, vector<8x384xf32> -> vector<8x384xf32>
    %59 = arith.index_cast %c1_i32 : i32 to index
    %c0_41 = arith.constant 0 : index
    %c0_42 = arith.constant 0 : index
    %60 = vector.load %arg10[%59, %c0_41, %c0_42] : memref<8x8x384xf32, #tpu.memory_space<vmem>>, vector<1x8x384xf32>
    %61 = vector.shape_cast %60 : vector<1x8x384xf32> to vector<8x384xf32>
    %62 = vector.extract_strided_slice %61 {offsets = [0, 0], sizes = [8, 128], strides = [1, 1]} : vector<8x384xf32> to vector<8x128xf32>
    %63 = vector.extract_strided_slice %58 {offsets = [0, 0], sizes = [8, 128], strides = [1, 1]} : vector<8x384xf32> to vector<8x128xf32>
    %64 = arith.addf %62, %63 : vector<8x128xf32>
    %65 = arith.negf %64 : vector<8x128xf32>
    %66 = math.exp %65 : vector<8x128xf32>
    %cst_43 = arith.constant 1.000000e+00 : f32
    %67 = vector.broadcast %cst_43 : f32 to vector<8x128xf32>
    %68 = arith.addf %67, %66 : vector<8x128xf32>
    %69 = arith.divf %67, %68 : vector<8x128xf32>
    %70 = vector.extract_strided_slice %61 {offsets = [0, 128], sizes = [8, 128], strides = [1, 1]} : vector<8x384xf32> to vector<8x128xf32>
    %71 = vector.extract_strided_slice %58 {offsets = [0, 128], sizes = [8, 128], strides = [1, 1]} : vector<8x384xf32> to vector<8x128xf32>
    %72 = arith.addf %70, %71 : vector<8x128xf32>
    %73 = arith.negf %72 : vector<8x128xf32>
    %74 = math.exp %73 : vector<8x128xf32>
    %cst_44 = arith.constant 1.000000e+00 : f32
    %75 = vector.broadcast %cst_44 : f32 to vector<8x128xf32>
    %76 = arith.addf %75, %74 : vector<8x128xf32>
    %77 = arith.divf %75, %76 : vector<8x128xf32>
    %78 = vector.extract_strided_slice %61 {offsets = [0, 256], sizes = [8, 128], strides = [1, 1]} : vector<8x384xf32> to vector<8x128xf32>
    %79 = vector.extract_strided_slice %58 {offsets = [0, 256], sizes = [8, 128], strides = [1, 1]} : vector<8x384xf32> to vector<8x128xf32>
    %80 = vector.broadcast %18 : vector<1x128xf32> to vector<8x128xf32>
    %81 = arith.addf %79, %80 : vector<8x128xf32>
    %82 = arith.mulf %69, %81 : vector<8x128xf32>
    %83 = arith.addf %78, %82 : vector<8x128xf32>
    %84 = math.tanh %83 : vector<8x128xf32>
    %cst_45 = arith.constant 1.000000e+00 : f32
    %85 = vector.broadcast %cst_45 : f32 to vector<8x128xf32>
    %86 = arith.subf %85, %77 : vector<8x128xf32>
    %87 = arith.mulf %86, %84 : vector<8x128xf32>
    %88 = arith.mulf %77, %57 : vector<8x128xf32>
    %89 = arith.addf %87, %88 : vector<8x128xf32>
    %c0_46 = arith.constant 0 : index
    %c0_47 = arith.constant 0 : index
    %90 = vector.load %arg11[%c0_46, %c0_47] : memref<8x128xf32, #tpu.memory_space<vmem>>, vector<8x128xf32>
    tpu.vector_store %arg11[%c0_46, %c0_47], %89 {strides = array<i32>} : memref<8x128xf32, #tpu.memory_space<vmem>>, vector<8x128xf32>,
    %91 = arith.index_cast %c1_i32 : i32 to index
    %c0_48 = arith.constant 0 : index
    %c0_49 = arith.constant 0 : index
    %92 = vector.load %arg9[%91, %c0_48, %c0_49] : memref<8x8x128xf32, #tpu.memory_space<vmem>>, vector<1x8x128xf32>
    %93 = vector.shape_cast %92 : vector<1x8x128xf32> to vector<8x128xf32>
    %94 = vector.shape_cast %89 : vector<8x128xf32> to vector<1x8x128xf32>
    tpu.vector_store %arg9[%91, %c0_48, %c0_49], %94 {strides = array<i32>} : memref<8x8x128xf32, #tpu.memory_space<vmem>>, vector<1x8x128xf32>,
    %c2_i32 = arith.constant 2 : i32
    %c0_50 = arith.constant 0 : index
    %c0_51 = arith.constant 0 : index
    %95 = vector.load %arg11[%c0_50, %c0_51] : memref<8x128xf32, #tpu.memory_space<vmem>>, vector<8x128xf32>
    %cst_52 = arith.constant dense<0.000000e+00> : vector<8x384xf32>
    %96 = tpu.matmul %95, %16, %cst_52 {dimension_numbers = #tpu.dot_dimension_numbers<[1], [0], [0], [1], [0, 0, 1, 1], [], []>} : vector<8x128xf32>, vector<128x384xf32>, vector<8x384xf32> -> vector<8x384xf32>
    %97 = arith.index_cast %c2_i32 : i32 to index
    %c0_53 = arith.constant 0 : index
    %c0_54 = arith.constant 0 : index
    %98 = vector.load %arg10[%97, %c0_53, %c0_54] : memref<8x8x384xf32, #tpu.memory_space<vmem>>, vector<1x8x384xf32>
    %99 = vector.shape_cast %98 : vector<1x8x384xf32> to vector<8x384xf32>
    %100 = vector.extract_strided_slice %99 {offsets = [0, 0], sizes = [8, 128], strides = [1, 1]} : vector<8x384xf32> to vector<8x128xf32>
    %101 = vector.extract_strided_slice %96 {offsets = [0, 0], sizes = [8, 128], strides = [1, 1]} : vector<8x384xf32> to vector<8x128xf32>
    %102 = arith.addf %100, %101 : vector<8x128xf32>
    %103 = arith.negf %102 : vector<8x128xf32>
    %104 = math.exp %103 : vector<8x128xf32>
    %cst_55 = arith.constant 1.000000e+00 : f32
    %105 = vector.broadcast %cst_55 : f32 to vector<8x128xf32>
    %106 = arith.addf %105, %104 : vector<8x128xf32>
    %107 = arith.divf %105, %106 : vector<8x128xf32>
    %108 = vector.extract_strided_slice %99 {offsets = [0, 128], sizes = [8, 128], strides = [1, 1]} : vector<8x384xf32> to vector<8x128xf32>
    %109 = vector.extract_strided_slice %96 {offsets = [0, 128], sizes = [8, 128], strides = [1, 1]} : vector<8x384xf32> to vector<8x128xf32>
    %110 = arith.addf %108, %109 : vector<8x128xf32>
    %111 = arith.negf %110 : vector<8x128xf32>
    %112 = math.exp %111 : vector<8x128xf32>
    %cst_56 = arith.constant 1.000000e+00 : f32
    %113 = vector.broadcast %cst_56 : f32 to vector<8x128xf32>
    %114 = arith.addf %113, %112 : vector<8x128xf32>
    %115 = arith.divf %113, %114 : vector<8x128xf32>
    %116 = vector.extract_strided_slice %99 {offsets = [0, 256], sizes = [8, 128], strides = [1, 1]} : vector<8x384xf32> to vector<8x128xf32>
    %117 = vector.extract_strided_slice %96 {offsets = [0, 256], sizes = [8, 128], strides = [1, 1]} : vector<8x384xf32> to vector<8x128xf32>
    %118 = vector.broadcast %18 : vector<1x128xf32> to vector<8x128xf32>
    %119 = arith.addf %117, %118 : vector<8x128xf32>
    %120 = arith.mulf %107, %119 : vector<8x128xf32>
    %121 = arith.addf %116, %120 : vector<8x128xf32>
    %122 = math.tanh %121 : vector<8x128xf32>
    %cst_57 = arith.constant 1.000000e+00 : f32
    %123 = vector.broadcast %cst_57 : f32 to vector<8x128xf32>
    %124 = arith.subf %123, %115 : vector<8x128xf32>
    %125 = arith.mulf %124, %122 : vector<8x128xf32>
    %126 = arith.mulf %115, %95 : vector<8x128xf32>
    %127 = arith.addf %125, %126 : vector<8x128xf32>
    %c0_58 = arith.constant 0 : index
    %c0_59 = arith.constant 0 : index
    %128 = vector.load %arg11[%c0_58, %c0_59] : memref<8x128xf32, #tpu.memory_space<vmem>>, vector<8x128xf32>
    tpu.vector_store %arg11[%c0_58, %c0_59], %127 {strides = array<i32>} : memref<8x128xf32, #tpu.memory_space<vmem>>, vector<8x128xf32>,
    %129 = arith.index_cast %c2_i32 : i32 to index
    %c0_60 = arith.constant 0 : index
    %c0_61 = arith.constant 0 : index
    %130 = vector.load %arg9[%129, %c0_60, %c0_61] : memref<8x8x128xf32, #tpu.memory_space<vmem>>, vector<1x8x128xf32>
    %131 = vector.shape_cast %130 : vector<1x8x128xf32> to vector<8x128xf32>
    %132 = vector.shape_cast %127 : vector<8x128xf32> to vector<1x8x128xf32>
    tpu.vector_store %arg9[%129, %c0_60, %c0_61], %132 {strides = array<i32>} : memref<8x8x128xf32, #tpu.memory_space<vmem>>, vector<1x8x128xf32>,
    %c3_i32 = arith.constant 3 : i32
    %c0_62 = arith.constant 0 : index
    %c0_63 = arith.constant 0 : index
    %133 = vector.load %arg11[%c0_62, %c0_63] : memref<8x128xf32, #tpu.memory_space<vmem>>, vector<8x128xf32>
    %cst_64 = arith.constant dense<0.000000e+00> : vector<8x384xf32>
    %134 = tpu.matmul %133, %16, %cst_64 {dimension_numbers = #tpu.dot_dimension_numbers<[1], [0], [0], [1], [0, 0, 1, 1], [], []>} : vector<8x128xf32>, vector<128x384xf32>, vector<8x384xf32> -> vector<8x384xf32>
    %135 = arith.index_cast %c3_i32 : i32 to index
    %c0_65 = arith.constant 0 : index
    %c0_66 = arith.constant 0 : index
    %136 = vector.load %arg10[%135, %c0_65, %c0_66] : memref<8x8x384xf32, #tpu.memory_space<vmem>>, vector<1x8x384xf32>
    %137 = vector.shape_cast %136 : vector<1x8x384xf32> to vector<8x384xf32>
    %138 = vector.extract_strided_slice %137 {offsets = [0, 0], sizes = [8, 128], strides = [1, 1]} : vector<8x384xf32> to vector<8x128xf32>
    %139 = vector.extract_strided_slice %134 {offsets = [0, 0], sizes = [8, 128], strides = [1, 1]} : vector<8x384xf32> to vector<8x128xf32>
    %140 = arith.addf %138, %139 : vector<8x128xf32>
    %141 = arith.negf %140 : vector<8x128xf32>
    %142 = math.exp %141 : vector<8x128xf32>
    %cst_67 = arith.constant 1.000000e+00 : f32
    %143 = vector.broadcast %cst_67 : f32 to vector<8x128xf32>
    %144 = arith.addf %143, %142 : vector<8x128xf32>
    %145 = arith.divf %143, %144 : vector<8x128xf32>
    %146 = vector.extract_strided_slice %137 {offsets = [0, 128], sizes = [8, 128], strides = [1, 1]} : vector<8x384xf32> to vector<8x128xf32>
    %147 = vector.extract_strided_slice %134 {offsets = [0, 128], sizes = [8, 128], strides = [1, 1]} : vector<8x384xf32> to vector<8x128xf32>
    %148 = arith.addf %146, %147 : vector<8x128xf32>
    %149 = arith.negf %148 : vector<8x128xf32>
    %150 = math.exp %149 : vector<8x128xf32>
    %cst_68 = arith.constant 1.000000e+00 : f32
    %151 = vector.broadcast %cst_68 : f32 to vector<8x128xf32>
    %152 = arith.addf %151, %150 : vector<8x128xf32>
    %153 = arith.divf %151, %152 : vector<8x128xf32>
    %154 = vector.extract_strided_slice %137 {offsets = [0, 256], sizes = [8, 128], strides = [1, 1]} : vector<8x384xf32> to vector<8x128xf32>
    %155 = vector.extract_strided_slice %134 {offsets = [0, 256], sizes = [8, 128], strides = [1, 1]} : vector<8x384xf32> to vector<8x128xf32>
    %156 = vector.broadcast %18 : vector<1x128xf32> to vector<8x128xf32>
    %157 = arith.addf %155, %156 : vector<8x128xf32>
    %158 = arith.mulf %145, %157 : vector<8x128xf32>
    %159 = arith.addf %154, %158 : vector<8x128xf32>
    %160 = math.tanh %159 : vector<8x128xf32>
    %cst_69 = arith.constant 1.000000e+00 : f32
    %161 = vector.broadcast %cst_69 : f32 to vector<8x128xf32>
    %162 = arith.subf %161, %153 : vector<8x128xf32>
    %163 = arith.mulf %162, %160 : vector<8x128xf32>
    %164 = arith.mulf %153, %133 : vector<8x128xf32>
    %165 = arith.addf %163, %164 : vector<8x128xf32>
    %c0_70 = arith.constant 0 : index
    %c0_71 = arith.constant 0 : index
    %166 = vector.load %arg11[%c0_70, %c0_71] : memref<8x128xf32, #tpu.memory_space<vmem>>, vector<8x128xf32>
    tpu.vector_store %arg11[%c0_70, %c0_71], %165 {strides = array<i32>} : memref<8x128xf32, #tpu.memory_space<vmem>>, vector<8x128xf32>,
    %167 = arith.index_cast %c3_i32 : i32 to index
    %c0_72 = arith.constant 0 : index
    %c0_73 = arith.constant 0 : index
    %168 = vector.load %arg9[%167, %c0_72, %c0_73] : memref<8x8x128xf32, #tpu.memory_space<vmem>>, vector<1x8x128xf32>
    %169 = vector.shape_cast %168 : vector<1x8x128xf32> to vector<8x128xf32>
    %170 = vector.shape_cast %165 : vector<8x128xf32> to vector<1x8x128xf32>
    tpu.vector_store %arg9[%167, %c0_72, %c0_73], %170 {strides = array<i32>} : memref<8x8x128xf32, #tpu.memory_space<vmem>>, vector<1x8x128xf32>,
    %c4_i32 = arith.constant 4 : i32
    %c0_74 = arith.constant 0 : index
    %c0_75 = arith.constant 0 : index
    %171 = vector.load %arg11[%c0_74, %c0_75] : memref<8x128xf32, #tpu.memory_space<vmem>>, vector<8x128xf32>
    %cst_76 = arith.constant dense<0.000000e+00> : vector<8x384xf32>
    %172 = tpu.matmul %171, %16, %cst_76 {dimension_numbers = #tpu.dot_dimension_numbers<[1], [0], [0], [1], [0, 0, 1, 1], [], []>} : vector<8x128xf32>, vector<128x384xf32>, vector<8x384xf32> -> vector<8x384xf32>
    %173 = arith.index_cast %c4_i32 : i32 to index
    %c0_77 = arith.constant 0 : index
    %c0_78 = arith.constant 0 : index
    %174 = vector.load %arg10[%173, %c0_77, %c0_78] : memref<8x8x384xf32, #tpu.memory_space<vmem>>, vector<1x8x384xf32>
    %175 = vector.shape_cast %174 : vector<1x8x384xf32> to vector<8x384xf32>
    %176 = vector.extract_strided_slice %175 {offsets = [0, 0], sizes = [8, 128], strides = [1, 1]} : vector<8x384xf32> to vector<8x128xf32>
    %177 = vector.extract_strided_slice %172 {offsets = [0, 0], sizes = [8, 128], strides = [1, 1]} : vector<8x384xf32> to vector<8x128xf32>
    %178 = arith.addf %176, %177 : vector<8x128xf32>
    %179 = arith.negf %178 : vector<8x128xf32>
    %180 = math.exp %179 : vector<8x128xf32>
    %cst_79 = arith.constant 1.000000e+00 : f32
    %181 = vector.broadcast %cst_79 : f32 to vector<8x128xf32>
    %182 = arith.addf %181, %180 : vector<8x128xf32>
    %183 = arith.divf %181, %182 : vector<8x128xf32>
    %184 = vector.extract_strided_slice %175 {offsets = [0, 128], sizes = [8, 128], strides = [1, 1]} : vector<8x384xf32> to vector<8x128xf32>
    %185 = vector.extract_strided_slice %172 {offsets = [0, 128], sizes = [8, 128], strides = [1, 1]} : vector<8x384xf32> to vector<8x128xf32>
    %186 = arith.addf %184, %185 : vector<8x128xf32>
    %187 = arith.negf %186 : vector<8x128xf32>
    %188 = math.exp %187 : vector<8x128xf32>
    %cst_80 = arith.constant 1.000000e+00 : f32
    %189 = vector.broadcast %cst_80 : f32 to vector<8x128xf32>
    %190 = arith.addf %189, %188 : vector<8x128xf32>
    %191 = arith.divf %189, %190 : vector<8x128xf32>
    %192 = vector.extract_strided_slice %175 {offsets = [0, 256], sizes = [8, 128], strides = [1, 1]} : vector<8x384xf32> to vector<8x128xf32>
    %193 = vector.extract_strided_slice %172 {offsets = [0, 256], sizes = [8, 128], strides = [1, 1]} : vector<8x384xf32> to vector<8x128xf32>
    %194 = vector.broadcast %18 : vector<1x128xf32> to vector<8x128xf32>
    %195 = arith.addf %193, %194 : vector<8x128xf32>
    %196 = arith.mulf %183, %195 : vector<8x128xf32>
    %197 = arith.addf %192, %196 : vector<8x128xf32>
    %198 = math.tanh %197 : vector<8x128xf32>
    %cst_81 = arith.constant 1.000000e+00 : f32
    %199 = vector.broadcast %cst_81 : f32 to vector<8x128xf32>
    %200 = arith.subf %199, %191 : vector<8x128xf32>
    %201 = arith.mulf %200, %198 : vector<8x128xf32>
    %202 = arith.mulf %191, %171 : vector<8x128xf32>
    %203 = arith.addf %201, %202 : vector<8x128xf32>
    %c0_82 = arith.constant 0 : index
    %c0_83 = arith.constant 0 : index
    %204 = vector.load %arg11[%c0_82, %c0_83] : memref<8x128xf32, #tpu.memory_space<vmem>>, vector<8x128xf32>
    tpu.vector_store %arg11[%c0_82, %c0_83], %203 {strides = array<i32>} : memref<8x128xf32, #tpu.memory_space<vmem>>, vector<8x128xf32>,
    %205 = arith.index_cast %c4_i32 : i32 to index
    %c0_84 = arith.constant 0 : index
    %c0_85 = arith.constant 0 : index
    %206 = vector.load %arg9[%205, %c0_84, %c0_85] : memref<8x8x128xf32, #tpu.memory_space<vmem>>, vector<1x8x128xf32>
    %207 = vector.shape_cast %206 : vector<1x8x128xf32> to vector<8x128xf32>
    %208 = vector.shape_cast %203 : vector<8x128xf32> to vector<1x8x128xf32>
    tpu.vector_store %arg9[%205, %c0_84, %c0_85], %208 {strides = array<i32>} : memref<8x8x128xf32, #tpu.memory_space<vmem>>, vector<1x8x128xf32>,
    %c5_i32 = arith.constant 5 : i32
    %c0_86 = arith.constant 0 : index
    %c0_87 = arith.constant 0 : index
    %209 = vector.load %arg11[%c0_86, %c0_87] : memref<8x128xf32, #tpu.memory_space<vmem>>, vector<8x128xf32>
    %cst_88 = arith.constant dense<0.000000e+00> : vector<8x384xf32>
    %210 = tpu.matmul %209, %16, %cst_88 {dimension_numbers = #tpu.dot_dimension_numbers<[1], [0], [0], [1], [0, 0, 1, 1], [], []>} : vector<8x128xf32>, vector<128x384xf32>, vector<8x384xf32> -> vector<8x384xf32>
    %211 = arith.index_cast %c5_i32 : i32 to index
    %c0_89 = arith.constant 0 : index
    %c0_90 = arith.constant 0 : index
    %212 = vector.load %arg10[%211, %c0_89, %c0_90] : memref<8x8x384xf32, #tpu.memory_space<vmem>>, vector<1x8x384xf32>
    %213 = vector.shape_cast %212 : vector<1x8x384xf32> to vector<8x384xf32>
    %214 = vector.extract_strided_slice %213 {offsets = [0, 0], sizes = [8, 128], strides = [1, 1]} : vector<8x384xf32> to vector<8x128xf32>
    %215 = vector.extract_strided_slice %210 {offsets = [0, 0], sizes = [8, 128], strides = [1, 1]} : vector<8x384xf32> to vector<8x128xf32>
    %216 = arith.addf %214, %215 : vector<8x128xf32>
    %217 = arith.negf %216 : vector<8x128xf32>
    %218 = math.exp %217 : vector<8x128xf32>
    %cst_91 = arith.constant 1.000000e+00 : f32
    %219 = vector.broadcast %cst_91 : f32 to vector<8x128xf32>
    %220 = arith.addf %219, %218 : vector<8x128xf32>
    %221 = arith.divf %219, %220 : vector<8x128xf32>
    %222 = vector.extract_strided_slice %213 {offsets = [0, 128], sizes = [8, 128], strides = [1, 1]} : vector<8x384xf32> to vector<8x128xf32>
    %223 = vector.extract_strided_slice %210 {offsets = [0, 128], sizes = [8, 128], strides = [1, 1]} : vector<8x384xf32> to vector<8x128xf32>
    %224 = arith.addf %222, %223 : vector<8x128xf32>
    %225 = arith.negf %224 : vector<8x128xf32>
    %226 = math.exp %225 : vector<8x128xf32>
    %cst_92 = arith.constant 1.000000e+00 : f32
    %227 = vector.broadcast %cst_92 : f32 to vector<8x128xf32>
    %228 = arith.addf %227, %226 : vector<8x128xf32>
    %229 = arith.divf %227, %228 : vector<8x128xf32>
    %230 = vector.extract_strided_slice %213 {offsets = [0, 256], sizes = [8, 128], strides = [1, 1]} : vector<8x384xf32> to vector<8x128xf32>
    %231 = vector.extract_strided_slice %210 {offsets = [0, 256], sizes = [8, 128], strides = [1, 1]} : vector<8x384xf32> to vector<8x128xf32>
    %232 = vector.broadcast %18 : vector<1x128xf32> to vector<8x128xf32>
    %233 = arith.addf %231, %232 : vector<8x128xf32>
    %234 = arith.mulf %221, %233 : vector<8x128xf32>
    %235 = arith.addf %230, %234 : vector<8x128xf32>
    %236 = math.tanh %235 : vector<8x128xf32>
    %cst_93 = arith.constant 1.000000e+00 : f32
    %237 = vector.broadcast %cst_93 : f32 to vector<8x128xf32>
    %238 = arith.subf %237, %229 : vector<8x128xf32>
    %239 = arith.mulf %238, %236 : vector<8x128xf32>
    %240 = arith.mulf %229, %209 : vector<8x128xf32>
    %241 = arith.addf %239, %240 : vector<8x128xf32>
    %c0_94 = arith.constant 0 : index
    %c0_95 = arith.constant 0 : index
    %242 = vector.load %arg11[%c0_94, %c0_95] : memref<8x128xf32, #tpu.memory_space<vmem>>, vector<8x128xf32>
    tpu.vector_store %arg11[%c0_94, %c0_95], %241 {strides = array<i32>} : memref<8x128xf32, #tpu.memory_space<vmem>>, vector<8x128xf32>,
    %243 = arith.index_cast %c5_i32 : i32 to index
    %c0_96 = arith.constant 0 : index
    %c0_97 = arith.constant 0 : index
    %244 = vector.load %arg9[%243, %c0_96, %c0_97] : memref<8x8x128xf32, #tpu.memory_space<vmem>>, vector<1x8x128xf32>
    %245 = vector.shape_cast %244 : vector<1x8x128xf32> to vector<8x128xf32>
    %246 = vector.shape_cast %241 : vector<8x128xf32> to vector<1x8x128xf32>
    tpu.vector_store %arg9[%243, %c0_96, %c0_97], %246 {strides = array<i32>} : memref<8x8x128xf32, #tpu.memory_space<vmem>>, vector<1x8x128xf32>,
    %c6_i32 = arith.constant 6 : i32
    %c0_98 = arith.constant 0 : index
    %c0_99 = arith.constant 0 : index
    %247 = vector.load %arg11[%c0_98, %c0_99] : memref<8x128xf32, #tpu.memory_space<vmem>>, vector<8x128xf32>
    %cst_100 = arith.constant dense<0.000000e+00> : vector<8x384xf32>
    %248 = tpu.matmul %247, %16, %cst_100 {dimension_numbers = #tpu.dot_dimension_numbers<[1], [0], [0], [1], [0, 0, 1, 1], [], []>} : vector<8x128xf32>, vector<128x384xf32>, vector<8x384xf32> -> vector<8x384xf32>
    %249 = arith.index_cast %c6_i32 : i32 to index
    %c0_101 = arith.constant 0 : index
    %c0_102 = arith.constant 0 : index
    %250 = vector.load %arg10[%249, %c0_101, %c0_102] : memref<8x8x384xf32, #tpu.memory_space<vmem>>, vector<1x8x384xf32>
    %251 = vector.shape_cast %250 : vector<1x8x384xf32> to vector<8x384xf32>
    %252 = vector.extract_strided_slice %251 {offsets = [0, 0], sizes = [8, 128], strides = [1, 1]} : vector<8x384xf32> to vector<8x128xf32>
    %253 = vector.extract_strided_slice %248 {offsets = [0, 0], sizes = [8, 128], strides = [1, 1]} : vector<8x384xf32> to vector<8x128xf32>
    %254 = arith.addf %252, %253 : vector<8x128xf32>
    %255 = arith.negf %254 : vector<8x128xf32>
    %256 = math.exp %255 : vector<8x128xf32>
    %cst_103 = arith.constant 1.000000e+00 : f32
    %257 = vector.broadcast %cst_103 : f32 to vector<8x128xf32>
    %258 = arith.addf %257, %256 : vector<8x128xf32>
    %259 = arith.divf %257, %258 : vector<8x128xf32>
    %260 = vector.extract_strided_slice %251 {offsets = [0, 128], sizes = [8, 128], strides = [1, 1]} : vector<8x384xf32> to vector<8x128xf32>
    %261 = vector.extract_strided_slice %248 {offsets = [0, 128], sizes = [8, 128], strides = [1, 1]} : vector<8x384xf32> to vector<8x128xf32>
    %262 = arith.addf %260, %261 : vector<8x128xf32>
    %263 = arith.negf %262 : vector<8x128xf32>
    %264 = math.exp %263 : vector<8x128xf32>
    %cst_104 = arith.constant 1.000000e+00 : f32
    %265 = vector.broadcast %cst_104 : f32 to vector<8x128xf32>
    %266 = arith.addf %265, %264 : vector<8x128xf32>
    %267 = arith.divf %265, %266 : vector<8x128xf32>
    %268 = vector.extract_strided_slice %251 {offsets = [0, 256], sizes = [8, 128], strides = [1, 1]} : vector<8x384xf32> to vector<8x128xf32>
    %269 = vector.extract_strided_slice %248 {offsets = [0, 256], sizes = [8, 128], strides = [1, 1]} : vector<8x384xf32> to vector<8x128xf32>
    %270 = vector.broadcast %18 : vector<1x128xf32> to vector<8x128xf32>
    %271 = arith.addf %269, %270 : vector<8x128xf32>
    %272 = arith.mulf %259, %271 : vector<8x128xf32>
    %273 = arith.addf %268, %272 : vector<8x128xf32>
    %274 = math.tanh %273 : vector<8x128xf32>
    %cst_105 = arith.constant 1.000000e+00 : f32
    %275 = vector.broadcast %cst_105 : f32 to vector<8x128xf32>
    %276 = arith.subf %275, %267 : vector<8x128xf32>
    %277 = arith.mulf %276, %274 : vector<8x128xf32>
    %278 = arith.mulf %267, %247 : vector<8x128xf32>
    %279 = arith.addf %277, %278 : vector<8x128xf32>
    %c0_106 = arith.constant 0 : index
    %c0_107 = arith.constant 0 : index
    %280 = vector.load %arg11[%c0_106, %c0_107] : memref<8x128xf32, #tpu.memory_space<vmem>>, vector<8x128xf32>
    tpu.vector_store %arg11[%c0_106, %c0_107], %279 {strides = array<i32>} : memref<8x128xf32, #tpu.memory_space<vmem>>, vector<8x128xf32>,
    %281 = arith.index_cast %c6_i32 : i32 to index
    %c0_108 = arith.constant 0 : index
    %c0_109 = arith.constant 0 : index
    %282 = vector.load %arg9[%281, %c0_108, %c0_109] : memref<8x8x128xf32, #tpu.memory_space<vmem>>, vector<1x8x128xf32>
    %283 = vector.shape_cast %282 : vector<1x8x128xf32> to vector<8x128xf32>
    %284 = vector.shape_cast %279 : vector<8x128xf32> to vector<1x8x128xf32>
    tpu.vector_store %arg9[%281, %c0_108, %c0_109], %284 {strides = array<i32>} : memref<8x8x128xf32, #tpu.memory_space<vmem>>, vector<1x8x128xf32>,
    %c7_i32 = arith.constant 7 : i32
    %c0_110 = arith.constant 0 : index
    %c0_111 = arith.constant 0 : index
    %285 = vector.load %arg11[%c0_110, %c0_111] : memref<8x128xf32, #tpu.memory_space<vmem>>, vector<8x128xf32>
    %cst_112 = arith.constant dense<0.000000e+00> : vector<8x384xf32>
    %286 = tpu.matmul %285, %16, %cst_112 {dimension_numbers = #tpu.dot_dimension_numbers<[1], [0], [0], [1], [0, 0, 1, 1], [], []>} : vector<8x128xf32>, vector<128x384xf32>, vector<8x384xf32> -> vector<8x384xf32>
    %287 = arith.index_cast %c7_i32 : i32 to index
    %c0_113 = arith.constant 0 : index
    %c0_114 = arith.constant 0 : index
    %288 = vector.load %arg10[%287, %c0_113, %c0_114] : memref<8x8x384xf32, #tpu.memory_space<vmem>>, vector<1x8x384xf32>
    %289 = vector.shape_cast %288 : vector<1x8x384xf32> to vector<8x384xf32>
    %290 = vector.extract_strided_slice %289 {offsets = [0, 0], sizes = [8, 128], strides = [1, 1]} : vector<8x384xf32> to vector<8x128xf32>
    %291 = vector.extract_strided_slice %286 {offsets = [0, 0], sizes = [8, 128], strides = [1, 1]} : vector<8x384xf32> to vector<8x128xf32>
    %292 = arith.addf %290, %291 : vector<8x128xf32>
    %293 = arith.negf %292 : vector<8x128xf32>
    %294 = math.exp %293 : vector<8x128xf32>
    %cst_115 = arith.constant 1.000000e+00 : f32
    %295 = vector.broadcast %cst_115 : f32 to vector<8x128xf32>
    %296 = arith.addf %295, %294 : vector<8x128xf32>
    %297 = arith.divf %295, %296 : vector<8x128xf32>
    %298 = vector.extract_strided_slice %289 {offsets = [0, 128], sizes = [8, 128], strides = [1, 1]} : vector<8x384xf32> to vector<8x128xf32>
    %299 = vector.extract_strided_slice %286 {offsets = [0, 128], sizes = [8, 128], strides = [1, 1]} : vector<8x384xf32> to vector<8x128xf32>
    %300 = arith.addf %298, %299 : vector<8x128xf32>
    %301 = arith.negf %300 : vector<8x128xf32>
    %302 = math.exp %301 : vector<8x128xf32>
    %cst_116 = arith.constant 1.000000e+00 : f32
    %303 = vector.broadcast %cst_116 : f32 to vector<8x128xf32>
    %304 = arith.addf %303, %302 : vector<8x128xf32>
    %305 = arith.divf %303, %304 : vector<8x128xf32>
    %306 = vector.extract_strided_slice %289 {offsets = [0, 256], sizes = [8, 128], strides = [1, 1]} : vector<8x384xf32> to vector<8x128xf32>
    %307 = vector.extract_strided_slice %286 {offsets = [0, 256], sizes = [8, 128], strides = [1, 1]} : vector<8x384xf32> to vector<8x128xf32>
    %308 = vector.broadcast %18 : vector<1x128xf32> to vector<8x128xf32>
    %309 = arith.addf %307, %308 : vector<8x128xf32>
    %310 = arith.mulf %297, %309 : vector<8x128xf32>
    %311 = arith.addf %306, %310 : vector<8x128xf32>
    %312 = math.tanh %311 : vector<8x128xf32>
    %cst_117 = arith.constant 1.000000e+00 : f32
    %313 = vector.broadcast %cst_117 : f32 to vector<8x128xf32>
    %314 = arith.subf %313, %305 : vector<8x128xf32>
    %315 = arith.mulf %314, %312 : vector<8x128xf32>
    %316 = arith.mulf %305, %285 : vector<8x128xf32>
    %317 = arith.addf %315, %316 : vector<8x128xf32>
    %c0_118 = arith.constant 0 : index
    %c0_119 = arith.constant 0 : index
    %318 = vector.load %arg11[%c0_118, %c0_119] : memref<8x128xf32, #tpu.memory_space<vmem>>, vector<8x128xf32>
    tpu.vector_store %arg11[%c0_118, %c0_119], %317 {strides = array<i32>} : memref<8x128xf32, #tpu.memory_space<vmem>>, vector<8x128xf32>,
    %319 = arith.index_cast %c7_i32 : i32 to index
    %c0_120 = arith.constant 0 : index
    %c0_121 = arith.constant 0 : index
    %320 = vector.load %arg9[%319, %c0_120, %c0_121] : memref<8x8x128xf32, #tpu.memory_space<vmem>>, vector<1x8x128xf32>
    %321 = vector.shape_cast %320 : vector<1x8x128xf32> to vector<8x128xf32>
    %322 = vector.shape_cast %317 : vector<8x128xf32> to vector<1x8x128xf32>
    tpu.vector_store %arg9[%319, %c0_120, %c0_121], %322 {strides = array<i32>} : memref<8x8x128xf32, #tpu.memory_space<vmem>>, vector<1x8x128xf32>,
    %c8_i32 = arith.constant 8 : i32
    %c0_122 = arith.constant 0 : index
    %c0_123 = arith.constant 0 : index
    %c0_124 = arith.constant 0 : index
    %323 = vector.load %arg9[%c0_122, %c0_123, %c0_124] : memref<8x8x128xf32, #tpu.memory_space<vmem>>, vector<8x8x128xf32>
    %324 = vector.shape_cast %323 : vector<8x8x128xf32> to vector<64x128xf32>
    %c1 = arith.constant 1 : index
    %c0_125 = arith.constant 0 : index
    %c0_126 = arith.constant 0 : index
    %325 = vector.load %arg2[%c1, %c0_125, %c0_126] : memref<2x128x384xf32, #tpu.memory_space<vmem>>, vector<1x128x384xf32>
    %326 = vector.shape_cast %325 : vector<1x128x384xf32> to vector<128x384xf32>
    %cst_127 = arith.constant dense<0.000000e+00> : vector<64x384xf32>
    %327 = tpu.matmul %324, %326, %cst_127 {dimension_numbers = #tpu.dot_dimension_numbers<[1], [0], [0], [1], [0, 0, 1, 1], [], []>} : vector<64x128xf32>, vector<128x384xf32>, vector<64x384xf32> -> vector<64x384xf32>
    %c1_128 = arith.constant 1 : index
    %c0_129 = arith.constant 0 : index
    %c0_130 = arith.constant 0 : index
    %328 = vector.load %arg4[%c1_128, %c0_129, %c0_130] : memref<2x1x384xf32, #tpu.memory_space<vmem>>, vector<1x1x384xf32>
    %329 = vector.shape_cast %328 : vector<1x1x384xf32> to vector<1x384xf32>
    %330 = vector.broadcast %329 : vector<1x384xf32> to vector<64x384xf32>
    %331 = arith.addf %327, %330 : vector<64x384xf32>
    %332 = vector.shape_cast %331 : vector<64x384xf32> to vector<8x8x384xf32>
    %c0_131 = arith.constant 0 : index
    %c0_132 = arith.constant 0 : index
    %c0_133 = arith.constant 0 : index
    %333 = vector.load %arg10[%c0_131, %c0_132, %c0_133] : memref<8x8x384xf32, #tpu.memory_space<vmem>>, vector<8x8x384xf32>
    tpu.vector_store %arg10[%c0_131, %c0_132, %c0_133], %332 {strides = array<i32>} : memref<8x8x384xf32, #tpu.memory_space<vmem>>, vector<8x8x384xf32>,
    %cst_134 = arith.constant 0.000000e+00 : f32
    %334 = vector.broadcast %cst_134 : f32 to vector<8x128xf32>
    %c0_135 = arith.constant 0 : index
    %c0_136 = arith.constant 0 : index
    %335 = vector.load %arg11[%c0_135, %c0_136] : memref<8x128xf32, #tpu.memory_space<vmem>>, vector<8x128xf32>
    tpu.vector_store %arg11[%c0_135, %c0_136], %334 {strides = array<i32>} : memref<8x128xf32, #tpu.memory_space<vmem>>, vector<8x128xf32>,
    %c1_137 = arith.constant 1 : index
    %c0_138 = arith.constant 0 : index
    %c0_139 = arith.constant 0 : index
    %336 = vector.load %arg3[%c1_137, %c0_138, %c0_139] : memref<2x128x384xf32, #tpu.memory_space<vmem>>, vector<1x128x384xf32>
    %337 = vector.shape_cast %336 : vector<1x128x384xf32> to vector<128x384xf32>
    %c1_140 = arith.constant 1 : index
    %c0_141 = arith.constant 0 : index
    %c0_142 = arith.constant 0 : index
    %338 = vector.load %arg5[%c1_140, %c0_141, %c0_142] : memref<2x1x128xf32, #tpu.memory_space<vmem>>, vector<1x1x128xf32>
    %339 = vector.shape_cast %338 : vector<1x1x128xf32> to vector<1x128xf32>
    %c0_i32_143 = arith.constant 0 : i32
    %c0_144 = arith.constant 0 : index
    %c0_145 = arith.constant 0 : index
    %340 = vector.load %arg11[%c0_144, %c0_145] : memref<8x128xf32, #tpu.memory_space<vmem>>, vector<8x128xf32>
    %cst_146 = arith.constant dense<0.000000e+00> : vector<8x384xf32>
    %341 = tpu.matmul %340, %337, %cst_146 {dimension_numbers = #tpu.dot_dimension_numbers<[1], [0], [0], [1], [0, 0, 1, 1], [], []>} : vector<8x128xf32>, vector<128x384xf32>, vector<8x384xf32> -> vector<8x384xf32>
    %342 = arith.index_cast %c0_i32_143 : i32 to index
    %c0_147 = arith.constant 0 : index
    %c0_148 = arith.constant 0 : index
    %343 = vector.load %arg10[%342, %c0_147, %c0_148] : memref<8x8x384xf32, #tpu.memory_space<vmem>>, vector<1x8x384xf32>
    %344 = vector.shape_cast %343 : vector<1x8x384xf32> to vector<8x384xf32>
    %345 = vector.extract_strided_slice %344 {offsets = [0, 0], sizes = [8, 128], strides = [1, 1]} : vector<8x384xf32> to vector<8x128xf32>
    %346 = vector.extract_strided_slice %341 {offsets = [0, 0], sizes = [8, 128], strides = [1, 1]} : vector<8x384xf32> to vector<8x128xf32>
    %347 = arith.addf %345, %346 : vector<8x128xf32>
    %348 = arith.negf %347 : vector<8x128xf32>
    %349 = math.exp %348 : vector<8x128xf32>
    %cst_149 = arith.constant 1.000000e+00 : f32
    %350 = vector.broadcast %cst_149 : f32 to vector<8x128xf32>
    %351 = arith.addf %350, %349 : vector<8x128xf32>
    %352 = arith.divf %350, %351 : vector<8x128xf32>
    %353 = vector.extract_strided_slice %344 {offsets = [0, 128], sizes = [8, 128], strides = [1, 1]} : vector<8x384xf32> to vector<8x128xf32>
    %354 = vector.extract_strided_slice %341 {offsets = [0, 128], sizes = [8, 128], strides = [1, 1]} : vector<8x384xf32> to vector<8x128xf32>
    %355 = arith.addf %353, %354 : vector<8x128xf32>
    %356 = arith.negf %355 : vector<8x128xf32>
    %357 = math.exp %356 : vector<8x128xf32>
    %cst_150 = arith.constant 1.000000e+00 : f32
    %358 = vector.broadcast %cst_150 : f32 to vector<8x128xf32>
    %359 = arith.addf %358, %357 : vector<8x128xf32>
    %360 = arith.divf %358, %359 : vector<8x128xf32>
    %361 = vector.extract_strided_slice %344 {offsets = [0, 256], sizes = [8, 128], strides = [1, 1]} : vector<8x384xf32> to vector<8x128xf32>
    %362 = vector.extract_strided_slice %341 {offsets = [0, 256], sizes = [8, 128], strides = [1, 1]} : vector<8x384xf32> to vector<8x128xf32>
    %363 = vector.broadcast %339 : vector<1x128xf32> to vector<8x128xf32>
    %364 = arith.addf %362, %363 : vector<8x128xf32>
    %365 = arith.mulf %352, %364 : vector<8x128xf32>
    %366 = arith.addf %361, %365 : vector<8x128xf32>
    %367 = math.tanh %366 : vector<8x128xf32>
    %cst_151 = arith.constant 1.000000e+00 : f32
    %368 = vector.broadcast %cst_151 : f32 to vector<8x128xf32>
    %369 = arith.subf %368, %360 : vector<8x128xf32>
    %370 = arith.mulf %369, %367 : vector<8x128xf32>
    %371 = arith.mulf %360, %340 : vector<8x128xf32>
    %372 = arith.addf %370, %371 : vector<8x128xf32>
    %c0_152 = arith.constant 0 : index
    %c0_153 = arith.constant 0 : index
    %373 = vector.load %arg11[%c0_152, %c0_153] : memref<8x128xf32, #tpu.memory_space<vmem>>, vector<8x128xf32>
    tpu.vector_store %arg11[%c0_152, %c0_153], %372 {strides = array<i32>} : memref<8x128xf32, #tpu.memory_space<vmem>>, vector<8x128xf32>,
    %374 = arith.index_cast %c0_i32_143 : i32 to index
    %c0_154 = arith.constant 0 : index
    %c0_155 = arith.constant 0 : index
    %375 = vector.load %arg9[%374, %c0_154, %c0_155] : memref<8x8x128xf32, #tpu.memory_space<vmem>>, vector<1x8x128xf32>
    %376 = vector.shape_cast %375 : vector<1x8x128xf32> to vector<8x128xf32>
    %377 = vector.shape_cast %372 : vector<8x128xf32> to vector<1x8x128xf32>
    tpu.vector_store %arg9[%374, %c0_154, %c0_155], %377 {strides = array<i32>} : memref<8x8x128xf32, #tpu.memory_space<vmem>>, vector<1x8x128xf32>,
    %c1_i32_156 = arith.constant 1 : i32
    %c0_157 = arith.constant 0 : index
    %c0_158 = arith.constant 0 : index
    %378 = vector.load %arg11[%c0_157, %c0_158] : memref<8x128xf32, #tpu.memory_space<vmem>>, vector<8x128xf32>
    %cst_159 = arith.constant dense<0.000000e+00> : vector<8x384xf32>
    %379 = tpu.matmul %378, %337, %cst_159 {dimension_numbers = #tpu.dot_dimension_numbers<[1], [0], [0], [1], [0, 0, 1, 1], [], []>} : vector<8x128xf32>, vector<128x384xf32>, vector<8x384xf32> -> vector<8x384xf32>
    %380 = arith.index_cast %c1_i32_156 : i32 to index
    %c0_160 = arith.constant 0 : index
    %c0_161 = arith.constant 0 : index
    %381 = vector.load %arg10[%380, %c0_160, %c0_161] : memref<8x8x384xf32, #tpu.memory_space<vmem>>, vector<1x8x384xf32>
    %382 = vector.shape_cast %381 : vector<1x8x384xf32> to vector<8x384xf32>
    %383 = vector.extract_strided_slice %382 {offsets = [0, 0], sizes = [8, 128], strides = [1, 1]} : vector<8x384xf32> to vector<8x128xf32>
    %384 = vector.extract_strided_slice %379 {offsets = [0, 0], sizes = [8, 128], strides = [1, 1]} : vector<8x384xf32> to vector<8x128xf32>
    %385 = arith.addf %383, %384 : vector<8x128xf32>
    %386 = arith.negf %385 : vector<8x128xf32>
    %387 = math.exp %386 : vector<8x128xf32>
    %cst_162 = arith.constant 1.000000e+00 : f32
    %388 = vector.broadcast %cst_162 : f32 to vector<8x128xf32>
    %389 = arith.addf %388, %387 : vector<8x128xf32>
    %390 = arith.divf %388, %389 : vector<8x128xf32>
    %391 = vector.extract_strided_slice %382 {offsets = [0, 128], sizes = [8, 128], strides = [1, 1]} : vector<8x384xf32> to vector<8x128xf32>
    %392 = vector.extract_strided_slice %379 {offsets = [0, 128], sizes = [8, 128], strides = [1, 1]} : vector<8x384xf32> to vector<8x128xf32>
    %393 = arith.addf %391, %392 : vector<8x128xf32>
    %394 = arith.negf %393 : vector<8x128xf32>
    %395 = math.exp %394 : vector<8x128xf32>
    %cst_163 = arith.constant 1.000000e+00 : f32
    %396 = vector.broadcast %cst_163 : f32 to vector<8x128xf32>
    %397 = arith.addf %396, %395 : vector<8x128xf32>
    %398 = arith.divf %396, %397 : vector<8x128xf32>
    %399 = vector.extract_strided_slice %382 {offsets = [0, 256], sizes = [8, 128], strides = [1, 1]} : vector<8x384xf32> to vector<8x128xf32>
    %400 = vector.extract_strided_slice %379 {offsets = [0, 256], sizes = [8, 128], strides = [1, 1]} : vector<8x384xf32> to vector<8x128xf32>
    %401 = vector.broadcast %339 : vector<1x128xf32> to vector<8x128xf32>
    %402 = arith.addf %400, %401 : vector<8x128xf32>
    %403 = arith.mulf %390, %402 : vector<8x128xf32>
    %404 = arith.addf %399, %403 : vector<8x128xf32>
    %405 = math.tanh %404 : vector<8x128xf32>
    %cst_164 = arith.constant 1.000000e+00 : f32
    %406 = vector.broadcast %cst_164 : f32 to vector<8x128xf32>
    %407 = arith.subf %406, %398 : vector<8x128xf32>
    %408 = arith.mulf %407, %405 : vector<8x128xf32>
    %409 = arith.mulf %398, %378 : vector<8x128xf32>
    %410 = arith.addf %408, %409 : vector<8x128xf32>
    %c0_165 = arith.constant 0 : index
    %c0_166 = arith.constant 0 : index
    %411 = vector.load %arg11[%c0_165, %c0_166] : memref<8x128xf32, #tpu.memory_space<vmem>>, vector<8x128xf32>
    tpu.vector_store %arg11[%c0_165, %c0_166], %410 {strides = array<i32>} : memref<8x128xf32, #tpu.memory_space<vmem>>, vector<8x128xf32>,
    %412 = arith.index_cast %c1_i32_156 : i32 to index
    %c0_167 = arith.constant 0 : index
    %c0_168 = arith.constant 0 : index
    %413 = vector.load %arg9[%412, %c0_167, %c0_168] : memref<8x8x128xf32, #tpu.memory_space<vmem>>, vector<1x8x128xf32>
    %414 = vector.shape_cast %413 : vector<1x8x128xf32> to vector<8x128xf32>
    %415 = vector.shape_cast %410 : vector<8x128xf32> to vector<1x8x128xf32>
    tpu.vector_store %arg9[%412, %c0_167, %c0_168], %415 {strides = array<i32>} : memref<8x8x128xf32, #tpu.memory_space<vmem>>, vector<1x8x128xf32>,
    %c2_i32_169 = arith.constant 2 : i32
    %c0_170 = arith.constant 0 : index
    %c0_171 = arith.constant 0 : index
    %416 = vector.load %arg11[%c0_170, %c0_171] : memref<8x128xf32, #tpu.memory_space<vmem>>, vector<8x128xf32>
    %cst_172 = arith.constant dense<0.000000e+00> : vector<8x384xf32>
    %417 = tpu.matmul %416, %337, %cst_172 {dimension_numbers = #tpu.dot_dimension_numbers<[1], [0], [0], [1], [0, 0, 1, 1], [], []>} : vector<8x128xf32>, vector<128x384xf32>, vector<8x384xf32> -> vector<8x384xf32>
    %418 = arith.index_cast %c2_i32_169 : i32 to index
    %c0_173 = arith.constant 0 : index
    %c0_174 = arith.constant 0 : index
    %419 = vector.load %arg10[%418, %c0_173, %c0_174] : memref<8x8x384xf32, #tpu.memory_space<vmem>>, vector<1x8x384xf32>
    %420 = vector.shape_cast %419 : vector<1x8x384xf32> to vector<8x384xf32>
    %421 = vector.extract_strided_slice %420 {offsets = [0, 0], sizes = [8, 128], strides = [1, 1]} : vector<8x384xf32> to vector<8x128xf32>
    %422 = vector.extract_strided_slice %417 {offsets = [0, 0], sizes = [8, 128], strides = [1, 1]} : vector<8x384xf32> to vector<8x128xf32>
    %423 = arith.addf %421, %422 : vector<8x128xf32>
    %424 = arith.negf %423 : vector<8x128xf32>
    %425 = math.exp %424 : vector<8x128xf32>
    %cst_175 = arith.constant 1.000000e+00 : f32
    %426 = vector.broadcast %cst_175 : f32 to vector<8x128xf32>
    %427 = arith.addf %426, %425 : vector<8x128xf32>
    %428 = arith.divf %426, %427 : vector<8x128xf32>
    %429 = vector.extract_strided_slice %420 {offsets = [0, 128], sizes = [8, 128], strides = [1, 1]} : vector<8x384xf32> to vector<8x128xf32>
    %430 = vector.extract_strided_slice %417 {offsets = [0, 128], sizes = [8, 128], strides = [1, 1]} : vector<8x384xf32> to vector<8x128xf32>
    %431 = arith.addf %429, %430 : vector<8x128xf32>
    %432 = arith.negf %431 : vector<8x128xf32>
    %433 = math.exp %432 : vector<8x128xf32>
    %cst_176 = arith.constant 1.000000e+00 : f32
    %434 = vector.broadcast %cst_176 : f32 to vector<8x128xf32>
    %435 = arith.addf %434, %433 : vector<8x128xf32>
    %436 = arith.divf %434, %435 : vector<8x128xf32>
    %437 = vector.extract_strided_slice %420 {offsets = [0, 256], sizes = [8, 128], strides = [1, 1]} : vector<8x384xf32> to vector<8x128xf32>
    %438 = vector.extract_strided_slice %417 {offsets = [0, 256], sizes = [8, 128], strides = [1, 1]} : vector<8x384xf32> to vector<8x128xf32>
    %439 = vector.broadcast %339 : vector<1x128xf32> to vector<8x128xf32>
    %440 = arith.addf %438, %439 : vector<8x128xf32>
    %441 = arith.mulf %428, %440 : vector<8x128xf32>
    %442 = arith.addf %437, %441 : vector<8x128xf32>
    %443 = math.tanh %442 : vector<8x128xf32>
    %cst_177 = arith.constant 1.000000e+00 : f32
    %444 = vector.broadcast %cst_177 : f32 to vector<8x128xf32>
    %445 = arith.subf %444, %436 : vector<8x128xf32>
    %446 = arith.mulf %445, %443 : vector<8x128xf32>
    %447 = arith.mulf %436, %416 : vector<8x128xf32>
    %448 = arith.addf %446, %447 : vector<8x128xf32>
    %c0_178 = arith.constant 0 : index
    %c0_179 = arith.constant 0 : index
    %449 = vector.load %arg11[%c0_178, %c0_179] : memref<8x128xf32, #tpu.memory_space<vmem>>, vector<8x128xf32>
    tpu.vector_store %arg11[%c0_178, %c0_179], %448 {strides = array<i32>} : memref<8x128xf32, #tpu.memory_space<vmem>>, vector<8x128xf32>,
    %450 = arith.index_cast %c2_i32_169 : i32 to index
    %c0_180 = arith.constant 0 : index
    %c0_181 = arith.constant 0 : index
    %451 = vector.load %arg9[%450, %c0_180, %c0_181] : memref<8x8x128xf32, #tpu.memory_space<vmem>>, vector<1x8x128xf32>
    %452 = vector.shape_cast %451 : vector<1x8x128xf32> to vector<8x128xf32>
    %453 = vector.shape_cast %448 : vector<8x128xf32> to vector<1x8x128xf32>
    tpu.vector_store %arg9[%450, %c0_180, %c0_181], %453 {strides = array<i32>} : memref<8x8x128xf32, #tpu.memory_space<vmem>>, vector<1x8x128xf32>,
    %c3_i32_182 = arith.constant 3 : i32
    %c0_183 = arith.constant 0 : index
    %c0_184 = arith.constant 0 : index
    %454 = vector.load %arg11[%c0_183, %c0_184] : memref<8x128xf32, #tpu.memory_space<vmem>>, vector<8x128xf32>
    %cst_185 = arith.constant dense<0.000000e+00> : vector<8x384xf32>
    %455 = tpu.matmul %454, %337, %cst_185 {dimension_numbers = #tpu.dot_dimension_numbers<[1], [0], [0], [1], [0, 0, 1, 1], [], []>} : vector<8x128xf32>, vector<128x384xf32>, vector<8x384xf32> -> vector<8x384xf32>
    %456 = arith.index_cast %c3_i32_182 : i32 to index
    %c0_186 = arith.constant 0 : index
    %c0_187 = arith.constant 0 : index
    %457 = vector.load %arg10[%456, %c0_186, %c0_187] : memref<8x8x384xf32, #tpu.memory_space<vmem>>, vector<1x8x384xf32>
    %458 = vector.shape_cast %457 : vector<1x8x384xf32> to vector<8x384xf32>
    %459 = vector.extract_strided_slice %458 {offsets = [0, 0], sizes = [8, 128], strides = [1, 1]} : vector<8x384xf32> to vector<8x128xf32>
    %460 = vector.extract_strided_slice %455 {offsets = [0, 0], sizes = [8, 128], strides = [1, 1]} : vector<8x384xf32> to vector<8x128xf32>
    %461 = arith.addf %459, %460 : vector<8x128xf32>
    %462 = arith.negf %461 : vector<8x128xf32>
    %463 = math.exp %462 : vector<8x128xf32>
    %cst_188 = arith.constant 1.000000e+00 : f32
    %464 = vector.broadcast %cst_188 : f32 to vector<8x128xf32>
    %465 = arith.addf %464, %463 : vector<8x128xf32>
    %466 = arith.divf %464, %465 : vector<8x128xf32>
    %467 = vector.extract_strided_slice %458 {offsets = [0, 128], sizes = [8, 128], strides = [1, 1]} : vector<8x384xf32> to vector<8x128xf32>
    %468 = vector.extract_strided_slice %455 {offsets = [0, 128], sizes = [8, 128], strides = [1, 1]} : vector<8x384xf32> to vector<8x128xf32>
    %469 = arith.addf %467, %468 : vector<8x128xf32>
    %470 = arith.negf %469 : vector<8x128xf32>
    %471 = math.exp %470 : vector<8x128xf32>
    %cst_189 = arith.constant 1.000000e+00 : f32
    %472 = vector.broadcast %cst_189 : f32 to vector<8x128xf32>
    %473 = arith.addf %472, %471 : vector<8x128xf32>
    %474 = arith.divf %472, %473 : vector<8x128xf32>
    %475 = vector.extract_strided_slice %458 {offsets = [0, 256], sizes = [8, 128], strides = [1, 1]} : vector<8x384xf32> to vector<8x128xf32>
    %476 = vector.extract_strided_slice %455 {offsets = [0, 256], sizes = [8, 128], strides = [1, 1]} : vector<8x384xf32> to vector<8x128xf32>
    %477 = vector.broadcast %339 : vector<1x128xf32> to vector<8x128xf32>
    %478 = arith.addf %476, %477 : vector<8x128xf32>
    %479 = arith.mulf %466, %478 : vector<8x128xf32>
    %480 = arith.addf %475, %479 : vector<8x128xf32>
    %481 = math.tanh %480 : vector<8x128xf32>
    %cst_190 = arith.constant 1.000000e+00 : f32
    %482 = vector.broadcast %cst_190 : f32 to vector<8x128xf32>
    %483 = arith.subf %482, %474 : vector<8x128xf32>
    %484 = arith.mulf %483, %481 : vector<8x128xf32>
    %485 = arith.mulf %474, %454 : vector<8x128xf32>
    %486 = arith.addf %484, %485 : vector<8x128xf32>
    %c0_191 = arith.constant 0 : index
    %c0_192 = arith.constant 0 : index
    %487 = vector.load %arg11[%c0_191, %c0_192] : memref<8x128xf32, #tpu.memory_space<vmem>>, vector<8x128xf32>
    tpu.vector_store %arg11[%c0_191, %c0_192], %486 {strides = array<i32>} : memref<8x128xf32, #tpu.memory_space<vmem>>, vector<8x128xf32>,
    %488 = arith.index_cast %c3_i32_182 : i32 to index
    %c0_193 = arith.constant 0 : index
    %c0_194 = arith.constant 0 : index
    %489 = vector.load %arg9[%488, %c0_193, %c0_194] : memref<8x8x128xf32, #tpu.memory_space<vmem>>, vector<1x8x128xf32>
    %490 = vector.shape_cast %489 : vector<1x8x128xf32> to vector<8x128xf32>
    %491 = vector.shape_cast %486 : vector<8x128xf32> to vector<1x8x128xf32>
    tpu.vector_store %arg9[%488, %c0_193, %c0_194], %491 {strides = array<i32>} : memref<8x8x128xf32, #tpu.memory_space<vmem>>, vector<1x8x128xf32>,
    %c4_i32_195 = arith.constant 4 : i32
    %c0_196 = arith.constant 0 : index
    %c0_197 = arith.constant 0 : index
    %492 = vector.load %arg11[%c0_196, %c0_197] : memref<8x128xf32, #tpu.memory_space<vmem>>, vector<8x128xf32>
    %cst_198 = arith.constant dense<0.000000e+00> : vector<8x384xf32>
    %493 = tpu.matmul %492, %337, %cst_198 {dimension_numbers = #tpu.dot_dimension_numbers<[1], [0], [0], [1], [0, 0, 1, 1], [], []>} : vector<8x128xf32>, vector<128x384xf32>, vector<8x384xf32> -> vector<8x384xf32>
    %494 = arith.index_cast %c4_i32_195 : i32 to index
    %c0_199 = arith.constant 0 : index
    %c0_200 = arith.constant 0 : index
    %495 = vector.load %arg10[%494, %c0_199, %c0_200] : memref<8x8x384xf32, #tpu.memory_space<vmem>>, vector<1x8x384xf32>
    %496 = vector.shape_cast %495 : vector<1x8x384xf32> to vector<8x384xf32>
    %497 = vector.extract_strided_slice %496 {offsets = [0, 0], sizes = [8, 128], strides = [1, 1]} : vector<8x384xf32> to vector<8x128xf32>
    %498 = vector.extract_strided_slice %493 {offsets = [0, 0], sizes = [8, 128], strides = [1, 1]} : vector<8x384xf32> to vector<8x128xf32>
    %499 = arith.addf %497, %498 : vector<8x128xf32>
    %500 = arith.negf %499 : vector<8x128xf32>
    %501 = math.exp %500 : vector<8x128xf32>
    %cst_201 = arith.constant 1.000000e+00 : f32
    %502 = vector.broadcast %cst_201 : f32 to vector<8x128xf32>
    %503 = arith.addf %502, %501 : vector<8x128xf32>
    %504 = arith.divf %502, %503 : vector<8x128xf32>
    %505 = vector.extract_strided_slice %496 {offsets = [0, 128], sizes = [8, 128], strides = [1, 1]} : vector<8x384xf32> to vector<8x128xf32>
    %506 = vector.extract_strided_slice %493 {offsets = [0, 128], sizes = [8, 128], strides = [1, 1]} : vector<8x384xf32> to vector<8x128xf32>
    %507 = arith.addf %505, %506 : vector<8x128xf32>
    %508 = arith.negf %507 : vector<8x128xf32>
    %509 = math.exp %508 : vector<8x128xf32>
    %cst_202 = arith.constant 1.000000e+00 : f32
    %510 = vector.broadcast %cst_202 : f32 to vector<8x128xf32>
    %511 = arith.addf %510, %509 : vector<8x128xf32>
    %512 = arith.divf %510, %511 : vector<8x128xf32>
    %513 = vector.extract_strided_slice %496 {offsets = [0, 256], sizes = [8, 128], strides = [1, 1]} : vector<8x384xf32> to vector<8x128xf32>
    %514 = vector.extract_strided_slice %493 {offsets = [0, 256], sizes = [8, 128], strides = [1, 1]} : vector<8x384xf32> to vector<8x128xf32>
    %515 = vector.broadcast %339 : vector<1x128xf32> to vector<8x128xf32>
    %516 = arith.addf %514, %515 : vector<8x128xf32>
    %517 = arith.mulf %504, %516 : vector<8x128xf32>
    %518 = arith.addf %513, %517 : vector<8x128xf32>
    %519 = math.tanh %518 : vector<8x128xf32>
    %cst_203 = arith.constant 1.000000e+00 : f32
    %520 = vector.broadcast %cst_203 : f32 to vector<8x128xf32>
    %521 = arith.subf %520, %512 : vector<8x128xf32>
    %522 = arith.mulf %521, %519 : vector<8x128xf32>
    %523 = arith.mulf %512, %492 : vector<8x128xf32>
    %524 = arith.addf %522, %523 : vector<8x128xf32>
    %c0_204 = arith.constant 0 : index
    %c0_205 = arith.constant 0 : index
    %525 = vector.load %arg11[%c0_204, %c0_205] : memref<8x128xf32, #tpu.memory_space<vmem>>, vector<8x128xf32>
    tpu.vector_store %arg11[%c0_204, %c0_205], %524 {strides = array<i32>} : memref<8x128xf32, #tpu.memory_space<vmem>>, vector<8x128xf32>,
    %526 = arith.index_cast %c4_i32_195 : i32 to index
    %c0_206 = arith.constant 0 : index
    %c0_207 = arith.constant 0 : index
    %527 = vector.load %arg9[%526, %c0_206, %c0_207] : memref<8x8x128xf32, #tpu.memory_space<vmem>>, vector<1x8x128xf32>
    %528 = vector.shape_cast %527 : vector<1x8x128xf32> to vector<8x128xf32>
    %529 = vector.shape_cast %524 : vector<8x128xf32> to vector<1x8x128xf32>
    tpu.vector_store %arg9[%526, %c0_206, %c0_207], %529 {strides = array<i32>} : memref<8x8x128xf32, #tpu.memory_space<vmem>>, vector<1x8x128xf32>,
    %c5_i32_208 = arith.constant 5 : i32
    %c0_209 = arith.constant 0 : index
    %c0_210 = arith.constant 0 : index
    %530 = vector.load %arg11[%c0_209, %c0_210] : memref<8x128xf32, #tpu.memory_space<vmem>>, vector<8x128xf32>
    %cst_211 = arith.constant dense<0.000000e+00> : vector<8x384xf32>
    %531 = tpu.matmul %530, %337, %cst_211 {dimension_numbers = #tpu.dot_dimension_numbers<[1], [0], [0], [1], [0, 0, 1, 1], [], []>} : vector<8x128xf32>, vector<128x384xf32>, vector<8x384xf32> -> vector<8x384xf32>
    %532 = arith.index_cast %c5_i32_208 : i32 to index
    %c0_212 = arith.constant 0 : index
    %c0_213 = arith.constant 0 : index
    %533 = vector.load %arg10[%532, %c0_212, %c0_213] : memref<8x8x384xf32, #tpu.memory_space<vmem>>, vector<1x8x384xf32>
    %534 = vector.shape_cast %533 : vector<1x8x384xf32> to vector<8x384xf32>
    %535 = vector.extract_strided_slice %534 {offsets = [0, 0], sizes = [8, 128], strides = [1, 1]} : vector<8x384xf32> to vector<8x128xf32>
    %536 = vector.extract_strided_slice %531 {offsets = [0, 0], sizes = [8, 128], strides = [1, 1]} : vector<8x384xf32> to vector<8x128xf32>
    %537 = arith.addf %535, %536 : vector<8x128xf32>
    %538 = arith.negf %537 : vector<8x128xf32>
    %539 = math.exp %538 : vector<8x128xf32>
    %cst_214 = arith.constant 1.000000e+00 : f32
    %540 = vector.broadcast %cst_214 : f32 to vector<8x128xf32>
    %541 = arith.addf %540, %539 : vector<8x128xf32>
    %542 = arith.divf %540, %541 : vector<8x128xf32>
    %543 = vector.extract_strided_slice %534 {offsets = [0, 128], sizes = [8, 128], strides = [1, 1]} : vector<8x384xf32> to vector<8x128xf32>
    %544 = vector.extract_strided_slice %531 {offsets = [0, 128], sizes = [8, 128], strides = [1, 1]} : vector<8x384xf32> to vector<8x128xf32>
    %545 = arith.addf %543, %544 : vector<8x128xf32>
    %546 = arith.negf %545 : vector<8x128xf32>
    %547 = math.exp %546 : vector<8x128xf32>
    %cst_215 = arith.constant 1.000000e+00 : f32
    %548 = vector.broadcast %cst_215 : f32 to vector<8x128xf32>
    %549 = arith.addf %548, %547 : vector<8x128xf32>
    %550 = arith.divf %548, %549 : vector<8x128xf32>
    %551 = vector.extract_strided_slice %534 {offsets = [0, 256], sizes = [8, 128], strides = [1, 1]} : vector<8x384xf32> to vector<8x128xf32>
    %552 = vector.extract_strided_slice %531 {offsets = [0, 256], sizes = [8, 128], strides = [1, 1]} : vector<8x384xf32> to vector<8x128xf32>
    %553 = vector.broadcast %339 : vector<1x128xf32> to vector<8x128xf32>
    %554 = arith.addf %552, %553 : vector<8x128xf32>
    %555 = arith.mulf %542, %554 : vector<8x128xf32>
    %556 = arith.addf %551, %555 : vector<8x128xf32>
    %557 = math.tanh %556 : vector<8x128xf32>
    %cst_216 = arith.constant 1.000000e+00 : f32
    %558 = vector.broadcast %cst_216 : f32 to vector<8x128xf32>
    %559 = arith.subf %558, %550 : vector<8x128xf32>
    %560 = arith.mulf %559, %557 : vector<8x128xf32>
    %561 = arith.mulf %550, %530 : vector<8x128xf32>
    %562 = arith.addf %560, %561 : vector<8x128xf32>
    %c0_217 = arith.constant 0 : index
    %c0_218 = arith.constant 0 : index
    %563 = vector.load %arg11[%c0_217, %c0_218] : memref<8x128xf32, #tpu.memory_space<vmem>>, vector<8x128xf32>
    tpu.vector_store %arg11[%c0_217, %c0_218], %562 {strides = array<i32>} : memref<8x128xf32, #tpu.memory_space<vmem>>, vector<8x128xf32>,
    %564 = arith.index_cast %c5_i32_208 : i32 to index
    %c0_219 = arith.constant 0 : index
    %c0_220 = arith.constant 0 : index
    %565 = vector.load %arg9[%564, %c0_219, %c0_220] : memref<8x8x128xf32, #tpu.memory_space<vmem>>, vector<1x8x128xf32>
    %566 = vector.shape_cast %565 : vector<1x8x128xf32> to vector<8x128xf32>
    %567 = vector.shape_cast %562 : vector<8x128xf32> to vector<1x8x128xf32>
    tpu.vector_store %arg9[%564, %c0_219, %c0_220], %567 {strides = array<i32>} : memref<8x8x128xf32, #tpu.memory_space<vmem>>, vector<1x8x128xf32>,
    %c6_i32_221 = arith.constant 6 : i32
    %c0_222 = arith.constant 0 : index
    %c0_223 = arith.constant 0 : index
    %568 = vector.load %arg11[%c0_222, %c0_223] : memref<8x128xf32, #tpu.memory_space<vmem>>, vector<8x128xf32>
    %cst_224 = arith.constant dense<0.000000e+00> : vector<8x384xf32>
    %569 = tpu.matmul %568, %337, %cst_224 {dimension_numbers = #tpu.dot_dimension_numbers<[1], [0], [0], [1], [0, 0, 1, 1], [], []>} : vector<8x128xf32>, vector<128x384xf32>, vector<8x384xf32> -> vector<8x384xf32>
    %570 = arith.index_cast %c6_i32_221 : i32 to index
    %c0_225 = arith.constant 0 : index
    %c0_226 = arith.constant 0 : index
    %571 = vector.load %arg10[%570, %c0_225, %c0_226] : memref<8x8x384xf32, #tpu.memory_space<vmem>>, vector<1x8x384xf32>
    %572 = vector.shape_cast %571 : vector<1x8x384xf32> to vector<8x384xf32>
    %573 = vector.extract_strided_slice %572 {offsets = [0, 0], sizes = [8, 128], strides = [1, 1]} : vector<8x384xf32> to vector<8x128xf32>
    %574 = vector.extract_strided_slice %569 {offsets = [0, 0], sizes = [8, 128], strides = [1, 1]} : vector<8x384xf32> to vector<8x128xf32>
    %575 = arith.addf %573, %574 : vector<8x128xf32>
    %576 = arith.negf %575 : vector<8x128xf32>
    %577 = math.exp %576 : vector<8x128xf32>
    %cst_227 = arith.constant 1.000000e+00 : f32
    %578 = vector.broadcast %cst_227 : f32 to vector<8x128xf32>
    %579 = arith.addf %578, %577 : vector<8x128xf32>
    %580 = arith.divf %578, %579 : vector<8x128xf32>
    %581 = vector.extract_strided_slice %572 {offsets = [0, 128], sizes = [8, 128], strides = [1, 1]} : vector<8x384xf32> to vector<8x128xf32>
    %582 = vector.extract_strided_slice %569 {offsets = [0, 128], sizes = [8, 128], strides = [1, 1]} : vector<8x384xf32> to vector<8x128xf32>
    %583 = arith.addf %581, %582 : vector<8x128xf32>
    %584 = arith.negf %583 : vector<8x128xf32>
    %585 = math.exp %584 : vector<8x128xf32>
    %cst_228 = arith.constant 1.000000e+00 : f32
    %586 = vector.broadcast %cst_228 : f32 to vector<8x128xf32>
    %587 = arith.addf %586, %585 : vector<8x128xf32>
    %588 = arith.divf %586, %587 : vector<8x128xf32>
    %589 = vector.extract_strided_slice %572 {offsets = [0, 256], sizes = [8, 128], strides = [1, 1]} : vector<8x384xf32> to vector<8x128xf32>
    %590 = vector.extract_strided_slice %569 {offsets = [0, 256], sizes = [8, 128], strides = [1, 1]} : vector<8x384xf32> to vector<8x128xf32>
    %591 = vector.broadcast %339 : vector<1x128xf32> to vector<8x128xf32>
    %592 = arith.addf %590, %591 : vector<8x128xf32>
    %593 = arith.mulf %580, %592 : vector<8x128xf32>
    %594 = arith.addf %589, %593 : vector<8x128xf32>
    %595 = math.tanh %594 : vector<8x128xf32>
    %cst_229 = arith.constant 1.000000e+00 : f32
    %596 = vector.broadcast %cst_229 : f32 to vector<8x128xf32>
    %597 = arith.subf %596, %588 : vector<8x128xf32>
    %598 = arith.mulf %597, %595 : vector<8x128xf32>
    %599 = arith.mulf %588, %568 : vector<8x128xf32>
    %600 = arith.addf %598, %599 : vector<8x128xf32>
    %c0_230 = arith.constant 0 : index
    %c0_231 = arith.constant 0 : index
    %601 = vector.load %arg11[%c0_230, %c0_231] : memref<8x128xf32, #tpu.memory_space<vmem>>, vector<8x128xf32>
    tpu.vector_store %arg11[%c0_230, %c0_231], %600 {strides = array<i32>} : memref<8x128xf32, #tpu.memory_space<vmem>>, vector<8x128xf32>,
    %602 = arith.index_cast %c6_i32_221 : i32 to index
    %c0_232 = arith.constant 0 : index
    %c0_233 = arith.constant 0 : index
    %603 = vector.load %arg9[%602, %c0_232, %c0_233] : memref<8x8x128xf32, #tpu.memory_space<vmem>>, vector<1x8x128xf32>
    %604 = vector.shape_cast %603 : vector<1x8x128xf32> to vector<8x128xf32>
    %605 = vector.shape_cast %600 : vector<8x128xf32> to vector<1x8x128xf32>
    tpu.vector_store %arg9[%602, %c0_232, %c0_233], %605 {strides = array<i32>} : memref<8x8x128xf32, #tpu.memory_space<vmem>>, vector<1x8x128xf32>,
    %c7_i32_234 = arith.constant 7 : i32
    %c0_235 = arith.constant 0 : index
    %c0_236 = arith.constant 0 : index
    %606 = vector.load %arg11[%c0_235, %c0_236] : memref<8x128xf32, #tpu.memory_space<vmem>>, vector<8x128xf32>
    %cst_237 = arith.constant dense<0.000000e+00> : vector<8x384xf32>
    %607 = tpu.matmul %606, %337, %cst_237 {dimension_numbers = #tpu.dot_dimension_numbers<[1], [0], [0], [1], [0, 0, 1, 1], [], []>} : vector<8x128xf32>, vector<128x384xf32>, vector<8x384xf32> -> vector<8x384xf32>
    %608 = arith.index_cast %c7_i32_234 : i32 to index
    %c0_238 = arith.constant 0 : index
    %c0_239 = arith.constant 0 : index
    %609 = vector.load %arg10[%608, %c0_238, %c0_239] : memref<8x8x384xf32, #tpu.memory_space<vmem>>, vector<1x8x384xf32>
    %610 = vector.shape_cast %609 : vector<1x8x384xf32> to vector<8x384xf32>
    %611 = vector.extract_strided_slice %610 {offsets = [0, 0], sizes = [8, 128], strides = [1, 1]} : vector<8x384xf32> to vector<8x128xf32>
    %612 = vector.extract_strided_slice %607 {offsets = [0, 0], sizes = [8, 128], strides = [1, 1]} : vector<8x384xf32> to vector<8x128xf32>
    %613 = arith.addf %611, %612 : vector<8x128xf32>
    %614 = arith.negf %613 : vector<8x128xf32>
    %615 = math.exp %614 : vector<8x128xf32>
    %cst_240 = arith.constant 1.000000e+00 : f32
    %616 = vector.broadcast %cst_240 : f32 to vector<8x128xf32>
    %617 = arith.addf %616, %615 : vector<8x128xf32>
    %618 = arith.divf %616, %617 : vector<8x128xf32>
    %619 = vector.extract_strided_slice %610 {offsets = [0, 128], sizes = [8, 128], strides = [1, 1]} : vector<8x384xf32> to vector<8x128xf32>
    %620 = vector.extract_strided_slice %607 {offsets = [0, 128], sizes = [8, 128], strides = [1, 1]} : vector<8x384xf32> to vector<8x128xf32>
    %621 = arith.addf %619, %620 : vector<8x128xf32>
    %622 = arith.negf %621 : vector<8x128xf32>
    %623 = math.exp %622 : vector<8x128xf32>
    %cst_241 = arith.constant 1.000000e+00 : f32
    %624 = vector.broadcast %cst_241 : f32 to vector<8x128xf32>
    %625 = arith.addf %624, %623 : vector<8x128xf32>
    %626 = arith.divf %624, %625 : vector<8x128xf32>
    %627 = vector.extract_strided_slice %610 {offsets = [0, 256], sizes = [8, 128], strides = [1, 1]} : vector<8x384xf32> to vector<8x128xf32>
    %628 = vector.extract_strided_slice %607 {offsets = [0, 256], sizes = [8, 128], strides = [1, 1]} : vector<8x384xf32> to vector<8x128xf32>
    %629 = vector.broadcast %339 : vector<1x128xf32> to vector<8x128xf32>
    %630 = arith.addf %628, %629 : vector<8x128xf32>
    %631 = arith.mulf %618, %630 : vector<8x128xf32>
    %632 = arith.addf %627, %631 : vector<8x128xf32>
    %633 = math.tanh %632 : vector<8x128xf32>
    %cst_242 = arith.constant 1.000000e+00 : f32
    %634 = vector.broadcast %cst_242 : f32 to vector<8x128xf32>
    %635 = arith.subf %634, %626 : vector<8x128xf32>
    %636 = arith.mulf %635, %633 : vector<8x128xf32>
    %637 = arith.mulf %626, %606 : vector<8x128xf32>
    %638 = arith.addf %636, %637 : vector<8x128xf32>
    %c0_243 = arith.constant 0 : index
    %c0_244 = arith.constant 0 : index
    %639 = vector.load %arg11[%c0_243, %c0_244] : memref<8x128xf32, #tpu.memory_space<vmem>>, vector<8x128xf32>
    tpu.vector_store %arg11[%c0_243, %c0_244], %638 {strides = array<i32>} : memref<8x128xf32, #tpu.memory_space<vmem>>, vector<8x128xf32>,
    %640 = arith.index_cast %c7_i32_234 : i32 to index
    %c0_245 = arith.constant 0 : index
    %c0_246 = arith.constant 0 : index
    %641 = vector.load %arg9[%640, %c0_245, %c0_246] : memref<8x8x128xf32, #tpu.memory_space<vmem>>, vector<1x8x128xf32>
    %642 = vector.shape_cast %641 : vector<1x8x128xf32> to vector<8x128xf32>
    %643 = vector.shape_cast %638 : vector<8x128xf32> to vector<1x8x128xf32>
    tpu.vector_store %arg9[%640, %c0_245, %c0_246], %643 {strides = array<i32>} : memref<8x8x128xf32, #tpu.memory_space<vmem>>, vector<1x8x128xf32>,
    %c8_i32_247 = arith.constant 8 : i32
    %c0_248 = arith.constant 0 : index
    %c0_249 = arith.constant 0 : index
    %644 = vector.load %arg11[%c0_248, %c0_249] : memref<8x128xf32, #tpu.memory_space<vmem>>, vector<8x128xf32>
    %c0_250 = arith.constant 0 : index
    %c0_251 = arith.constant 0 : index
    %645 = vector.load %arg6[%c0_250, %c0_251] : memref<128x128xf32, #tpu.memory_space<vmem>>, vector<128x128xf32>
    %cst_252 = arith.constant dense<0.000000e+00> : vector<8x128xf32>
    %646 = tpu.matmul %644, %645, %cst_252 {dimension_numbers = #tpu.dot_dimension_numbers<[1], [0], [0], [1], [0, 0, 1, 1], [], []>} : vector<8x128xf32>, vector<128x128xf32>, vector<8x128xf32> -> vector<8x128xf32>
    %c0_253 = arith.constant 0 : index
    %c0_254 = arith.constant 0 : index
    %647 = vector.load %arg7[%c0_253, %c0_254] : memref<1x128xf32, #tpu.memory_space<vmem>>, vector<1x128xf32>
    %648 = vector.broadcast %647 : vector<1x128xf32> to vector<8x128xf32>
    %649 = arith.addf %646, %648 : vector<8x128xf32>
    %c0_255 = arith.constant 0 : index
    %c0_256 = arith.constant 0 : index
    %650 = vector.load %arg8[%c0_255, %c0_256] : memref<8x128xf32, #tpu.memory_space<vmem>>, vector<8x128xf32>
    tpu.vector_store %arg8[%c0_255, %c0_256], %649 {strides = array<i32>} : memref<8x128xf32, #tpu.memory_space<vmem>>, vector<8x128xf32>,
    return
  }
  func.func @transform_0(%arg0: i32) -> (i32, i32, i32) {
    %c0_i32 = arith.constant 0 : i32
    %c0_i32_0 = arith.constant 0 : i32
    %c0_i32_1 = arith.constant 0 : i32
    return %c0_i32, %arg0, %c0_i32_0 : i32, i32, i32
  }
  func.func @transform_1(%arg0: i32) -> (i32, i32, i32) {
    %c0_i32 = arith.constant 0 : i32
    %c0_i32_0 = arith.constant 0 : i32
    %c0_i32_1 = arith.constant 0 : i32
    %c0_i32_2 = arith.constant 0 : i32
    return %c0_i32, %c0_i32_0, %c0_i32_1 : i32, i32, i32
  }
  func.func @transform_2(%arg0: i32) -> (i32, i32, i32) {
    %c0_i32 = arith.constant 0 : i32
    %c0_i32_0 = arith.constant 0 : i32
    %c0_i32_1 = arith.constant 0 : i32
    %c0_i32_2 = arith.constant 0 : i32
    return %c0_i32, %c0_i32_0, %c0_i32_1 : i32, i32, i32
  }
  func.func @transform_3(%arg0: i32) -> (i32, i32, i32) {
    %c0_i32 = arith.constant 0 : i32
    %c0_i32_0 = arith.constant 0 : i32
    %c0_i32_1 = arith.constant 0 : i32
    %c0_i32_2 = arith.constant 0 : i32
    return %c0_i32, %c0_i32_0, %c0_i32_1 : i32, i32, i32
  }
  func.func @transform_4(%arg0: i32) -> (i32, i32, i32) {
    %c0_i32 = arith.constant 0 : i32
    %c0_i32_0 = arith.constant 0 : i32
    %c0_i32_1 = arith.constant 0 : i32
    %c0_i32_2 = arith.constant 0 : i32
    return %c0_i32, %c0_i32_0, %c0_i32_1 : i32, i32, i32
  }
  func.func @transform_5(%arg0: i32) -> (i32, i32) {
    %c0_i32 = arith.constant 0 : i32
    %c0_i32_0 = arith.constant 0 : i32
    %c0_i32_1 = arith.constant 0 : i32
    return %c0_i32, %c0_i32_0 : i32, i32
  }
  func.func @transform_6(%arg0: i32) -> (i32, i32) {
    %c0_i32 = arith.constant 0 : i32
    %c0_i32_0 = arith.constant 0 : i32
    %c0_i32_1 = arith.constant 0 : i32
    return %c0_i32, %c0_i32_0 : i32, i32
  }
  func.func @transform_7(%arg0: i32) -> (i32, i32) {
    %c0_i32 = arith.constant 0 : i32
    %c0_i32_0 = arith.constant 0 : i32
    return %arg0, %c0_i32 : i32, i32
  }
}

</mosaic_0001>

<bundles_post_ra>
// kernel: gru_forward.1
= control target key start
LH: loop header
LB: loop body
LE: loop exit
PB: predicated region body
PF: predicated region fallthrough
CT: control target
= control target key end

     0   :  { %12 = vsyncpa [#allocation6], 0  ;;  %s6937_s0 = inlined_call_operand.vmem [shape: f32[8,8,128], index: 0, kind: input, shape index: {}]   ;;  %s6938_s1 = inlined_call_operand.hbm [shape: f32[2,128,384], index: 1, kind: input, shape index: {}]   ;;  %s6939_s2 = inlined_call_operand.hbm [shape: f32[2,128,384], index: 2, kind: input, shape index: {}]   ;;  %s6940_s3 = inlined_call_operand.vmem [shape: f32[2,1,384], index: 3, kind: input, shape index: {}]   ;;  %s6941_s4 = inlined_call_operand.vmem [shape: f32[2,1,128], index: 4, kind: input, shape index: {}]   ;;  %s6942_s5 = inlined_call_operand.hbm [shape: f32[128,128], index: 5, kind: input, shape index: {}]   ;;  %s6943_s6 = inlined_call_operand.vmem [shape: f32[1,128], index: 6, kind: input, shape index: {}]   ;;  %s6944_s7 = inlined_call_operand.vmem [shape: f32[8,128], index: 7, kind: output, shape index: {}]  }
   0x1   :  { %13 = vsyncpa [#allocation8], 0  ;;  %s5036_s24 = smov [#allocation7]   ;;  %s5037_s26 = smov [#allocation5]  }
   0x2   :  { %s33_s25 = sshll.u32 %s5036_s24, 4  ;;  %s21_s27 = sshll.u32 %s5037_s26, 4  ;;  %s34_s25 = int_to_ptr.vmem [resolvable:$true] %s33_s25  ;;  %s22_s27 = int_to_ptr.vmem [resolvable:$true] %s21_s27 }
   0x3   :  { %s4980_s28 = scalar_lea.vmem %s34_s25, 12288  ;;  %p4985_p1 = scmp.lt.s32.totalorder %s34_s25, %s34_s25 }
   0x4   :  { %p4981_p0 = scmp.ne.s32.totalorder %s34_s25, %s4980_s28  ;;  %p4986_p2 = scmp.lt.s32.totalorder %s4980_s28, %s4980_s28 }
   0x6   :  { %p4987_p3 = por %p4986_p2, %p4985_p1 }
   0x8   :  { %p4988_p4 = pnand %p4987_p3, %p4981_p0 }
   0xa   :  { %4991 = shalt.err (!%p4988_p4)
}
   0xb   :  { %s5038_s29 = smov 384   ;;  %s5039_s30 = smov 24  }
   0xc   :  { %39 = dma.hbm_to_vmem [thread:$0]  %s6939_s2, 12288, %s34_s25, [#allocation8], %s5038_s29, %s5038_s29, %s5039_s30  }
   0xd   :  { %s5000_s10 = scalar_lea.vmem %s22_s27, 12288  ;;  %p5005_p6 = scmp.lt.s32.totalorder %s22_s27, %s22_s27 }
   0xe   :  { %p5001_p5 = scmp.ne.s32.totalorder %s22_s27, %s5000_s10  ;;  %p5006_p7 = scmp.lt.s32.totalorder %s5000_s10, %s5000_s10 }
  0x10   :  { %p5007_p8 = por %p5006_p7, %p5005_p6 }
  0x12   :  { %p5008_p9 = pnand %p5007_p8, %p5001_p5 }
  0x14   :  { %5011 = shalt.err (!%p5008_p9)
}
  0x15   :  { %27 = dma.hbm_to_vmem [thread:$0]  %s6938_s1, 12288, %s22_s27, [#allocation6], %s5038_s29, %s5038_s29, %s5039_s30  }
  0x16   :  { %s5040_s13 = smov [#allocation9]  }
  0x17   :  { %s49_s14 = sshll.u32 %s5040_s13, 4  ;;  %s50_s14 = int_to_ptr.vmem [resolvable:$true] %s49_s14 }
  0x18   :  { %s5020_s15 = scalar_lea.vmem %s50_s14, 2048  ;;  %p5025_p11 = scmp.lt.s32.totalorder %s50_s14, %s50_s14 }
  0x19   :  { %p5021_p10 = scmp.ne.s32.totalorder %s50_s14, %s5020_s15  ;;  %p5026_p12 = scmp.lt.s32.totalorder %s5020_s15, %s5020_s15 }
  0x1b   :  { %p5027_p13 = por %p5026_p12, %p5025_p11 }
  0x1d   :  { %p5028_p0 = pnand %p5027_p13, %p5021_p10 }
  0x1f   :  { %5031 = shalt.err (!%p5028_p0)
}
  0x20   :  { %s5041_s2 = smov 128   ;;  %s5042_s16 = smov 8  }
  0x21   :  { %55 = dma.hbm_to_vmem [thread:$0]  %s6942_s5, 2048, %s50_s14, [#allocation8], %s5041_s2, %s5041_s2, %s5042_s16  }
  0x22   :  { %5032 = dma.done.wait [#allocation6], 12288  }
  0x23   :  { %5033 = vsyncadd [#allocation6], 4294955008 }
  0x24   :  { %5034 = dma.done.wait [#allocation8], 14336  }
  0x25   :  { %5035 = vsyncadd [#allocation8], 4294952960  ;;  %v6945_v0 = vmov 0.0   ;;  %v137_v1 = vld [vmem:[#allocation5 + $0x170] sm:$0xff]  ;;  %v136_v2 = vld [vmem:[#allocation5 + $0x168] sm:$0xff]  ;;  %vm5044_vm0 = vmmov 0  }
  0x26   :  { %220 = vmatprep.mubr.f32.mxu0 %v6945_v0  ;;  %v134_v3 = vld [vmem:[#allocation5 + $0x158] sm:$0xff]  ;;  %156 = vmatprep.subr.mxu0 %v137_v1  ;;  %v133_v4 = vld [vmem:[#allocation5 + $0x150] sm:$0xff]  ;;  %v131_v5 = vld [vmem:[#allocation5 + $0x140] sm:$0xff] }
  0x27   :  { %157 = vmatpush1.msra.mxu0 %v136_v2  ;;  %v130_v6 = vld [vmem:[#allocation5 + $0x138] sm:$0xff]  ;;  %v128_v7 = vld [vmem:[#allocation5 + $0x128] sm:$0xff]  ;;  %v127_v8 = vld [vmem:[#allocation5 + $0x120] sm:$0xff] }
  0x28   :  { %158 = vmatprep.subr.mxu0 %v134_v3  ;;  %v125_v9 = vld [vmem:[#allocation5 + $0x110] sm:$0xff]  ;;  %v124_v10 = vld [vmem:[#allocation5 + $0x108] sm:$0xff]  ;;  %v122_v11 = vld [vmem:[#allocation5 + $0xf8] sm:$0xff] }
  0x29   :  { %159 = vmatpush1.msra.mxu0 %v133_v4  ;;  %v121_v12 = vld [vmem:[#allocation5 + $0xf0] sm:$0xff]  ;;  %v119_v13 = vld [vmem:[#allocation5 + $0xe0] sm:$0xff]  ;;  %v138_v14 = vld [vmem:[#allocation5 + $0x178] sm:$0xff] }
  0x2a   :  { %160 = vmatprep.subr.mxu0 %v131_v5  ;;  %v118_v15 = vld [vmem:[#allocation5 + $0xd8] sm:$0xff]  ;;  %4022 = vmatprep.subr.mxu1 %v138_v14  ;;  %v135_v16 = vld [vmem:[#allocation5 + $0x160] sm:$0xff]  ;;  %v116_v17 = vld [vmem:[#allocation5 + $0xc8] sm:$0xff] }
  0x2b   :  { %161 = vmatpush1.msra.mxu0 %v130_v6  ;;  %4023 = vmatpush3.msra.mxu1 %v138_v14  ;;  %v132_v18 = vld [vmem:[#allocation5 + $0x148] sm:$0xff]  ;;  %v115_v19 = vld [vmem:[#allocation5 + $0xc0] sm:$0xff]  ;;  %v113_v20 = vld [vmem:[#allocation5 + $0xb0] sm:$0xff] }
  0x2c   :  { %162 = vmatprep.subr.mxu0 %v128_v7  ;;  %4024 = vmatprep.subr.mxu1 %v135_v16  ;;  %v129_v21 = vld [vmem:[#allocation5 + $0x130] sm:$0xff]  ;;  %v112_v22 = vld [vmem:[#allocation5 + $0xa8] sm:$0xff]  ;;  %v110_v23 = vld [vmem:[#allocation5 + $0x98] sm:$0xff] }
  0x2d   :  { %163 = vmatpush1.msra.mxu0 %v127_v8  ;;  %4025 = vmatpush3.msra.mxu1 %v135_v16  ;;  %v126_v24 = vld [vmem:[#allocation5 + $0x118] sm:$0xff]  ;;  %v109_v25 = vld [vmem:[#allocation5 + $0x90] sm:$0xff]  ;;  %v107_v26 = vld [vmem:[#allocation5 + $0x80] sm:$0xff] }
  0x2e   :  { %164 = vmatprep.subr.mxu0 %v125_v9  ;;  %4026 = vmatprep.subr.mxu1 %v132_v18  ;;  %v123_v27 = vld [vmem:[#allocation5 + $0x100] sm:$0xff]  ;;  %v106_v28 = vld [vmem:[#allocation5 + $0x78] sm:$0xff]  ;;  %v104_v29 = vld [vmem:[#allocation5 + $0x68] sm:$0xff] }
  0x2f   :  { %165 = vmatpush1.msra.mxu0 %v124_v10  ;;  %4027 = vmatpush3.msra.mxu1 %v132_v18  ;;  %v120_v30 = vld [vmem:[#allocation5 + $0xe8] sm:$0xff]  ;;  %v103_v31 = vld [vmem:[#allocation5 + $0x60] sm:$0xff]  ;;  %v101_v32 = vld [vmem:[#allocation5 + $0x50] sm:$0xff] }
  0x30   :  { %166 = vmatprep.subr.mxu0 %v122_v11  ;;  %4028 = vmatprep.subr.mxu1 %v129_v21  ;;  %v117_v33 = vld [vmem:[#allocation5 + $0xd0] sm:$0xff]  ;;  %v100_v34 = vld [vmem:[#allocation5 + $0x48] sm:$0xff]  ;;  %v98_v35 = vld [vmem:[#allocation5 + $0x38] sm:$0xff] }
  0x31   :  { %167 = vmatpush1.msra.mxu0 %v121_v12  ;;  %4029 = vmatpush3.msra.mxu1 %v129_v21  ;;  %v114_v36 = vld [vmem:[#allocation5 + $0xb8] sm:$0xff]  ;;  %v97_v37 = vld [vmem:[#allocation5 + $0x30] sm:$0xff]  ;;  %v95_v38 = vld [vmem:[#allocation5 + $0x20] sm:$0xff] }
  0x32   :  { %168 = vmatprep.subr.mxu0 %v119_v13  ;;  %4030 = vmatprep.subr.mxu1 %v126_v24  ;;  %v111_v39 = vld [vmem:[#allocation5 + $0xa0] sm:$0xff]  ;;  %v94_v40 = vld [vmem:[#allocation5 + $0x18] sm:$0xff]  ;;  %v92_v41 = vld [vmem:[#allocation5 + $0x8] sm:$0xff] }
  0x33   :  { %169 = vmatpush1.msra.mxu0 %v118_v15  ;;  %4031 = vmatpush3.msra.mxu1 %v126_v24  ;;  %v108_v42 = vld [vmem:[#allocation5 + $0x88] sm:$0xff]  ;;  %v91_v43 = vld [vmem:[#allocation5] sm:$0xff]  ;;  %v5100_v45 = vld [vmem:[#allocation7 + $0x170] sm:$0xff] }
  0x34   :  { %170 = vmatprep.subr.mxu0 %v116_v17  ;;  %4032 = vmatprep.subr.mxu1 %v123_v27  ;;  %v5098_v44 = vld [vmem:[%s6937_s0] sm:$0xff]  ;;  %6998 = vst [vmem:[#allocation12_spill] sm:$0xff] %v5100_v45  ;;  %v5102_v46 = vld [vmem:[#allocation7 + $0x168] sm:$0xff]  ;;  %v5104_v47 = vld [vmem:[#allocation7 + $0x158] sm:$0xff] }
  0x35   :  { %171 = vmatpush1.msra.mxu0 %v115_v19  ;;  %4033 = vmatpush3.msra.mxu1 %v123_v27  ;;  %v105_v48 = vld [vmem:[#allocation5 + $0x70] sm:$0xff]  ;;  %v5115_v50 = vld [vmem:[%s6937_s0 + $0x8] sm:$0xff]  ;;  %v5117_v51 = vld [vmem:[#allocation7 + $0x140] sm:$0xff] }
  0x36   :  { %172 = vmatprep.subr.mxu0 %v113_v20  ;;  %4034 = vmatprep.subr.mxu1 %v120_v30  ;;  %v5108_v49 = vld [vmem:[#allocation7 + $0x150] sm:$0xff]  ;;  %v5120_v52 = vld [vmem:[#allocation7 + $0x138] sm:$0xff]  ;;  %v5123_v53 = vld [vmem:[#allocation7 + $0x128] sm:$0xff] }
  0x37   :  { %173 = vmatpush1.msra.mxu0 %v112_v22  ;;  %4035 = vmatpush3.msra.mxu1 %v120_v30  ;;  %v102_v54 = vld [vmem:[#allocation5 + $0x58] sm:$0xff]  ;;  %v5127_v55 = vld [vmem:[#allocation7 + $0x120] sm:$0xff]  ;;  %v5134_v56 = vld [vmem:[%s6937_s0 + $0x10] sm:$0xff] }
  0x38   :  { %174 = vmatprep.subr.mxu0 %v110_v23  ;;  %4036 = vmatprep.subr.mxu1 %v117_v33  ;;  %v5136_v57 = vld [vmem:[#allocation7 + $0x110] sm:$0xff]  ;;  %v5139_v58 = vld [vmem:[#allocation7 + $0x108] sm:$0xff]  ;;  %v5142_v59 = vld [vmem:[#allocation7 + $0xf8] sm:$0xff] }
  0x39   :  { %175 = vmatpush1.msra.mxu0 %v109_v25  ;;  %4037 = vmatpush3.msra.mxu1 %v117_v33  ;;  %v99_v60 = vld [vmem:[#allocation5 + $0x40] sm:$0xff]  ;;  %v5146_v61 = vld [vmem:[#allocation7 + $0xf0] sm:$0xff]  ;;  %v5153_v62 = vld [vmem:[%s6937_s0 + $0x18] sm:$0xff] }
  0x3a   :  { %176 = vmatprep.subr.mxu0 %v107_v26  ;;  %4038 = vmatprep.subr.mxu1 %v114_v36  ;;  %v5155_v63 = vld [vmem:[#allocation7 + $0xe0] sm:$0xff]  ;;  %v5158_v1 = vld [vmem:[#allocation7 + $0xd8] sm:$0xff]  ;;  %v5161_v2 = vld [vmem:[#allocation7 + $0xc8] sm:$0xff] }
  0x3b   :  { %177 = vmatpush1.msra.mxu0 %v106_v28  ;;  %4039 = vmatpush3.msra.mxu1 %v114_v36  ;;  %v96_v3 = vld [vmem:[#allocation5 + $0x28] sm:$0xff]  ;;  %v5165_v4 = vld [vmem:[#allocation7 + $0xc0] sm:$0xff]  ;;  %v5174_v6 = vld [vmem:[#allocation7 + $0xb0] sm:$0xff] }
  0x3c   :  { %178 = vmatprep.subr.mxu0 %v104_v29  ;;  %4040 = vmatprep.subr.mxu1 %v111_v39  ;;  %v5172_v5 = vld [vmem:[%s6937_s0 + $0x20] sm:$0xff]  ;;  %v5177_v7 = vld [vmem:[#allocation7 + $0xa8] sm:$0xff]  ;;  %v5180_v8 = vld [vmem:[#allocation7 + $0x98] sm:$0xff] }
  0x3d   :  { %179 = vmatpush1.msra.mxu0 %v103_v31  ;;  %4041 = vmatpush3.msra.mxu1 %v111_v39  ;;  %v93_v9 = vld [vmem:[#allocation5 + $0x10] sm:$0xff]  ;;  %v72_v11 = vld [vmem:[%s6937_s0 + $0x28] sm:$0xff]  ;;  %v5191_v12 = vld [vmem:[#allocation7 + $0x80] sm:$0xff] }
  0x3e   :  { %180 = vmatprep.subr.mxu0 %v101_v32  ;;  %4042 = vmatprep.subr.mxu1 %v108_v42  ;;  %v5184_v10 = vld [vmem:[#allocation7 + $0x90] sm:$0xff]  ;;  %v5194_v13 = vld [vmem:[#allocation7 + $0x78] sm:$0xff]  ;;  %v5197_v14 = vld [vmem:[#allocation7 + $0x68] sm:$0xff] }
  0x3f   :  { %181 = vmatpush1.msra.mxu0 %v100_v34  ;;  %4043 = vmatpush3.msra.mxu1 %v108_v42  ;;  %v5200_v15 = vld [vmem:[#allocation7 + $0x60] sm:$0xff]  ;;  %v73_v16 = vld [vmem:[%s6937_s0 + $0x30] sm:$0xff]  ;;  %v5210_v18 = vld [vmem:[#allocation7 + $0x48] sm:$0xff]  ;;  %v141_v42 = vlaneseq }
  0x40   :  { %182 = vmatprep.subr.mxu0 %v98_v35  ;;  %4044 = vmatprep.subr.mxu1 %v105_v48  ;;  %v5207_v17 = vld [vmem:[#allocation7 + $0x50] sm:$0xff]  ;;  %v5214_v19 = vld [vmem:[#allocation7 + $0x38] sm:$0xff]  ;;  %v5227_v23 = vld [vmem:[#allocation7 + $0x20] sm:$0xff] }
  0x41   :  { %183 = vmatpush1.msra.mxu0 %v97_v37  ;;  %4045 = vmatpush3.msra.mxu1 %v105_v48  ;;  %v5218_v20 = vld [vmem:[#allocation7 + $0x30] sm:$0xff]  ;;  %v5220_v21 = vld [vmem:[#allocation7 + $0x178] sm:$0xff]  ;;  %v5234_v25 = vld [vmem:[#allocation7 + $0x8] sm:$0xff] }
  0x42   :  { %184 = vmatprep.subr.mxu0 %v95_v38  ;;  %4046 = vmatprep.subr.mxu1 %v102_v54  ;;  %v74_v22 = vld [vmem:[%s6937_s0 + $0x38] sm:$0xff]  ;;  %7000 = vst [vmem:[#allocation14_spill] sm:$0xff] %v5234_v25  ;;  %v5238_v26 = vld [vmem:[#allocation7] sm:$0xff]  ;;  %v5246_v28 = vld [vmem:[#allocation7 + $0x148] sm:$0xff] }
  0x43   :  { %185 = vmatpush1.msra.mxu0 %v94_v40  ;;  %4047 = vmatpush3.msra.mxu1 %v102_v54  ;;  %v5230_v24 = vld [vmem:[#allocation7 + $0x18] sm:$0xff]  ;;  %7001 = vst [vmem:[#allocation15_spill] sm:$0xff] %v5238_v26  ;;  %v5240_v27 = vld [vmem:[#allocation7 + $0x160] sm:$0xff]  ;;  %v5252_v29 = vld [vmem:[#allocation7 + $0x130] sm:$0xff] }
  0x44   :  { %186 = vmatprep.subr.mxu0 %v92_v41  ;;  %4048 = vmatprep.subr.mxu1 %v99_v60  ;;  %6999 = vst [vmem:[#allocation13_spill] sm:$0xff] %v5230_v24  ;;  %v5257_v30 = vld [vmem:[#allocation7 + $0x118] sm:$0xff]  ;;  %v5263_v31 = vld [vmem:[#allocation7 + $0x100] sm:$0xff]  ;;  %v5269_v32 = vld [vmem:[#allocation7 + $0xe8] sm:$0xff] }
  0x45   :  { %187 = vmatpush1.msra.mxu0 %v91_v43  ;;  %4049 = vmatpush3.msra.mxu1 %v99_v60  ;;  %v5273_v33 = vld [vmem:[#allocation7 + $0xd0] sm:$0xff]  ;;  %v5279_v34 = vld [vmem:[#allocation7 + $0xb8] sm:$0xff]  ;;  %v5285_v35 = vld [vmem:[#allocation7 + $0xa0] sm:$0xff]  ;;  %v5380_v43 = vshrl.u32 %v141_v42, 7 }
  0x46   :  { %221 = vmatmul.mubr.f32.vlgmr.msra.gmra.mxu0 %v5098_v44  ;;  %449 = vmatprep.subr.mxu0 %v5100_v45  ;;  %v5291_v36 = vld [vmem:[#allocation7 + $0x88] sm:$0xff]  ;;  %v5297_v37 = vld [vmem:[#allocation7 + $0x70] sm:$0xff]  ;;  %v5303_v38 = vld [vmem:[#allocation7 + $0x58] sm:$0xff] }
  0x47   :  { %450 = vmatpush1.msra.mxu0 %v5102_v46  ;;  %226 = vmatprep.mubr.f32.mxu0 %v6945_v0  ;;  %v5309_v39 = vld [vmem:[#allocation7 + $0x40] sm:$0xff]  ;;  %v5315_v40 = vld [vmem:[#allocation7 + $0x28] sm:$0xff]  ;;  %v5321_v41 = vld [vmem:[#allocation7 + $0x10] sm:$0xff]  ;;  %7004 = vst [vmem:[#allocation18_spill] sm:$0xff] %v5380_v43  ;;  %v6958_v54 = vsub.s32 1, %v5380_v43 }
  0x48   :  { %451 = vmatprep.subr.mxu0 %v5104_v47  ;;  %4050 = vmatprep.subr.mxu1 %v96_v3  ;;  %7002 = vst [vmem:[#allocation16_spill] sm:$0xff] %v5315_v40  ;;  %7003 = vst [vmem:[#allocation17_spill] sm:$0xff] %v5321_v41  ;;  %v139_v48 = vld [vmem:[%s6940_s3] sm:$0x7] }
  0x49   :  { %452 = vmatpush1.msra.mxu0 %v5108_v49  ;;  %4051 = vmatpush3.msra.mxu1 %v96_v3  ;;  %v148_v3 = vrot.slane %v139_v48, %v6958_v54 }
  0x4a   :  { %227 = vmatmul.mubr.f32.gmra.mxu0 %v5115_v50  ;;  %453 = vmatprep.subr.mxu0 %v5117_v51 }
  0x4b   :  { %454 = vmatpush1.msra.mxu0 %v5120_v52  ;;  %232 = vmatprep.mubr.f32.mxu0 %v6945_v0 }
  0x4c   :  { %455 = vmatprep.subr.mxu0 %v5123_v53  ;;  %4052 = vmatprep.subr.mxu1 %v93_v9 }
  0x4d   :  { %456 = vmatpush1.msra.mxu0 %v5127_v55  ;;  %4053 = vmatpush3.msra.mxu1 %v93_v9 }
  0x4e   :  { %233 = vmatmul.mubr.f32.gmra.mxu0 %v5134_v56  ;;  %457 = vmatprep.subr.mxu0 %v5136_v57 }
  0x4f   :  { %458 = vmatpush1.msra.mxu0 %v5139_v58  ;;  %238 = vmatprep.mubr.f32.mxu0 %v6945_v0 }
  0x50   :  { %459 = vmatprep.subr.mxu0 %v5142_v59  ;;  %4054 = vmatprep.mubr.f32.mxu1 %v5098_v44  ;;  %v6953_v44 = vsub.s32 0, %v5380_v43 }
  0x51   :  { %460 = vmatpush1.msra.mxu0 %v5146_v61  ;;  %4066 = vmatprep.subr.mxu1 %v6945_v0 }
  0x52   :  { %239 = vmatmul.mubr.f32.gmra.mxu0 %v5153_v62  ;;  %461 = vmatprep.subr.mxu0 %v5155_v63  ;;  %v144_v60 = vrot.slane %v139_v48, %v6953_v44 }
  0x53   :  { %462 = vmatpush1.msra.mxu0 %v5158_v1  ;;  %244 = vmatprep.mubr.f32.mxu0 %v6945_v0 }
  0x54   :  { %463 = vmatprep.subr.mxu0 %v5161_v2  ;;  %4055 = vmatmul.mubr.f32.vlgmr.msra.gmra.mxu1 %v5115_v50 }
  0x55   :  { %464 = vmatpush1.msra.mxu0 %v5165_v4  ;;  %4067 = vmatpush3.msra.mxu1 %v5220_v21 }
  0x56   :  { %245 = vmatmul.mubr.f32.gmra.mxu0 %v5172_v5  ;;  %465 = vmatprep.subr.mxu0 %v5174_v6 }
  0x57   :  { %466 = vmatpush1.msra.mxu0 %v5177_v7  ;;  %250 = vmatprep.mubr.f32.mxu0 %v6945_v0 }
  0x58   :  { %467 = vmatprep.subr.mxu0 %v5180_v8  ;;  %4068 = vmatprep.subr.mxu1 %v6945_v0 }
  0x59   :  { %468 = vmatpush1.msra.mxu0 %v5184_v10  ;;  %4069 = vmatpush3.msra.mxu1 %v5240_v27 }
  0x5a   :  { %251 = vmatmul.mubr.f32.gmra.mxu0 %v72_v11  ;;  %469 = vmatprep.subr.mxu0 %v5191_v12 }
  0x5b   :  { %470 = vmatpush1.msra.mxu0 %v5194_v13  ;;  %256 = vmatprep.mubr.f32.mxu0 %v6945_v0 }
  0x5c   :  { %471 = vmatprep.subr.mxu0 %v5197_v14  ;;  %4070 = vmatprep.subr.mxu1 %v6945_v0 }
  0x5d   :  { %472 = vmatpush1.msra.mxu0 %v5200_v15  ;;  %4071 = vmatpush3.msra.mxu1 %v5246_v28 }
  0x5e   :  { %257 = vmatmul.mubr.f32.gmra.mxu0 %v73_v16  ;;  %473 = vmatprep.subr.mxu0 %v5207_v17 }
  0x5f   :  { %474 = vmatpush1.msra.mxu0 %v5210_v18  ;;  %262 = vmatprep.mubr.f32.mxu0 %v6945_v0 }
  0x60   :  { %475 = vmatprep.subr.mxu0 %v5214_v19  ;;  %4057 = vmatprep.mubr.f32.mxu1 %v5134_v56 }
  0x61   :  { %476 = vmatpush1.msra.mxu0 %v5218_v20  ;;  %4072 = vmatprep.subr.mxu1 %v6945_v0 }
  0x62   :  { %263 = vmatmul.mubr.f32.gmra.mxu0 %v74_v22  ;;  %477 = vmatprep.subr.mxu0 %v5227_v23 }
  0x63   :  { %478 = vmatpush1.msra.mxu0 %v5230_v24  ;;  %513 = vmatprep.mubr.f32.mxu0 %v6945_v0 }
  0x64   :  { %479 = vmatprep.subr.mxu0 %v5234_v25  ;;  %4058 = vmatmul.mubr.f32.gmra.mxu1 %v5153_v62 }
  0x65   :  { %480 = vmatpush1.msra.mxu0 %v5238_v26  ;;  %4073 = vmatpush3.msra.mxu1 %v5252_v29 }
  0x66   :  { %514 = vmatmul.mubr.f32.vlgmr.msra.gmra.mxu0 %v6945_v0  ;;  %4060 = vmatprep.mubr.f32.mxu1 %v5172_v5 }
  0x67   :  { %4074 = vmatprep.subr.mxu1 %v6945_v0  ;;  %624 = vmatprep.subr.mxu0 %v5100_v45 }
  0x68   :  { %4075 = vmatpush3.msra.mxu1 %v5257_v30  ;;  %625 = vmatpush1.msra.mxu0 %v5102_v46 }
  0x69   :  { %4076 = vmatprep.subr.mxu1 %v6945_v0  ;;  %4061 = vmatmul.mubr.f32.gmra.mxu1 %v72_v11 }
  0x6a   :  { %4077 = vmatpush3.msra.mxu1 %v5263_v31  ;;  %4063 = vmatprep.mubr.f32.mxu1 %v73_v16 }
  0x6b   :  { %4078 = vmatprep.subr.mxu1 %v6945_v0  ;;  %626 = vmatprep.subr.mxu0 %v5104_v47 }
  0x6c   :  { %4079 = vmatpush3.msra.mxu1 %v5269_v32  ;;  %627 = vmatpush1.msra.mxu0 %v5108_v49 }
  0x6d   :  { %4080 = vmatprep.subr.mxu1 %v6945_v0  ;;  %4064 = vmatmul.mubr.f32.gmra.mxu1 %v74_v22 }
  0x6e   :  { %4081 = vmatpush3.msra.mxu1 %v5273_v33  ;;  %4098 = vmatprep.mubr.msk.f32.mxu1 %vm5044_vm0, %v6945_v0 }
  0x6f   :  { %4082 = vmatprep.subr.mxu1 %v6945_v0  ;;  %628 = vmatprep.subr.mxu0 %v5117_v51 }
  0x70   :  { %4083 = vmatpush3.msra.mxu1 %v5279_v34  ;;  %629 = vmatpush1.msra.mxu0 %v5120_v52 }
  0x71   :  { %4084 = vmatprep.subr.mxu1 %v6945_v0  ;;  %630 = vmatprep.subr.mxu0 %v5123_v53 }
  0x72   :  { %4085 = vmatpush3.msra.mxu1 %v5285_v35  ;;  %631 = vmatpush1.msra.mxu0 %v5127_v55 }
  0x73   :  { %4086 = vmatprep.subr.mxu1 %v6945_v0  ;;  %632 = vmatprep.subr.mxu0 %v5136_v57 }
  0x74   :  { %4087 = vmatpush3.msra.mxu1 %v5291_v36  ;;  %633 = vmatpush1.msra.mxu0 %v5139_v58 }
  0x75   :  { %4088 = vmatprep.subr.mxu1 %v6945_v0  ;;  %634 = vmatprep.subr.mxu0 %v5142_v59 }
  0x76   :  { %4089 = vmatpush3.msra.mxu1 %v5297_v37  ;;  %635 = vmatpush1.msra.mxu0 %v5146_v61 }
  0x77   :  { %4090 = vmatprep.subr.mxu1 %v6945_v0  ;;  %636 = vmatprep.subr.mxu0 %v5155_v63 }
  0x78   :  { %4091 = vmatpush3.msra.mxu1 %v5303_v38  ;;  %637 = vmatpush1.msra.mxu0 %v5158_v1 }
  0x79   :  { %4092 = vmatprep.subr.mxu1 %v6945_v0  ;;  %638 = vmatprep.subr.mxu0 %v5161_v2 }
  0x7a   :  { %4093 = vmatpush3.msra.mxu1 %v5309_v39  ;;  %639 = vmatpush1.msra.mxu0 %v5165_v4 }
  0x7b   :  { %4094 = vmatprep.subr.mxu1 %v6945_v0  ;;  %640 = vmatprep.subr.mxu0 %v5174_v6 }
  0x7c   :  { %4095 = vmatpush3.msra.mxu1 %v5315_v40  ;;  %641 = vmatpush1.msra.mxu0 %v5177_v7 }
  0x7d   :  { %4096 = vmatprep.subr.mxu1 %v6945_v0  ;;  %642 = vmatprep.subr.mxu0 %v5180_v8 }
  0x7e   :  { %4097 = vmatpush3.msra.mxu1 %v5321_v41  ;;  %643 = vmatpush1.msra.mxu0 %v5184_v10 }
  0x7f   :  { %4099 = vmatmul.mubr.f32.vlgmr.msra.gmra.mxu1 %v6945_v0  ;;  %4101 = vmatprep.subr.mxu1 %v6945_v0 }
  0x80   :  { %4102 = vmatpush3.msra.mxu1 %v5220_v21  ;;  %644 = vmatprep.subr.mxu0 %v5191_v12 }
  0x81   :  { %4103 = vmatprep.subr.mxu1 %v6945_v0  ;;  %645 = vmatpush1.msra.mxu0 %v5194_v13 }
  0x82   :  { %4104 = vmatpush3.msra.mxu1 %v5240_v27  ;;  %646 = vmatprep.subr.mxu0 %v5197_v14 }
  0x83   :  { %4105 = vmatprep.subr.mxu1 %v6945_v0  ;;  %647 = vmatpush1.msra.mxu0 %v5200_v15 }
  0x84   :  { %4106 = vmatpush3.msra.mxu1 %v5246_v28  ;;  %648 = vmatprep.subr.mxu0 %v5207_v17 }
  0x85   :  { %4107 = vmatprep.subr.mxu1 %v6945_v0  ;;  %649 = vmatpush1.msra.mxu0 %v5210_v18 }
  0x86   :  { %4108 = vmatpush3.msra.mxu1 %v5252_v29  ;;  %650 = vmatprep.subr.mxu0 %v5214_v19 }
  0x87   :  { %4109 = vmatprep.subr.mxu1 %v6945_v0  ;;  %651 = vmatpush1.msra.mxu0 %v5218_v20 }
  0x88   :  { %4110 = vmatpush3.msra.mxu1 %v5257_v30  ;;  %652 = vmatprep.subr.mxu0 %v5227_v23 }
  0x89   :  { %4111 = vmatprep.subr.mxu1 %v6945_v0  ;;  %653 = vmatpush1.msra.mxu0 %v5230_v24 }
  0x8a   :  { %4112 = vmatpush3.msra.mxu1 %v5263_v31  ;;  %654 = vmatprep.subr.mxu0 %v5234_v25 }
  0x8b   :  { %4113 = vmatprep.subr.mxu1 %v6945_v0  ;;  %655 = vmatpush1.msra.mxu0 %v5238_v26 }
  0x8c   :  { %4114 = vmatpush3.msra.mxu1 %v5269_v32  ;;  %688 = vmatprep.mubr.f32.mxu0 %v6945_v0 }
  0x8d   :  { %4115 = vmatprep.subr.mxu1 %v6945_v0  ;;  %4133 = vmatprep.mubr.msk.f32.mxu1 %vm5044_vm0, %v6945_v0 }
  0x8e   :  { %4116 = vmatpush3.msra.mxu1 %v5273_v33  ;;  %795 = vmatprep.subr.mxu0 %v5100_v45 }
  0x8f   :  { %4117 = vmatprep.subr.mxu1 %v6945_v0 }
  0x90   :  { %4118 = vmatpush3.msra.mxu1 %v5279_v34 }
  0x91   :  { %4119 = vmatprep.subr.mxu1 %v6945_v0 }
  0x92   :  { %4120 = vmatpush3.msra.mxu1 %v5285_v35 }
  0x93   :  { %4121 = vmatprep.subr.mxu1 %v6945_v0 }
  0x94   :  { %4122 = vmatpush3.msra.mxu1 %v5291_v36 }
  0x95   :  { %4123 = vmatprep.subr.mxu1 %v6945_v0 }
  0x96   :  { %4124 = vmatpush3.msra.mxu1 %v5297_v37 }
  0x97   :  { %4125 = vmatprep.subr.mxu1 %v6945_v0 }
  0x98   :  { %4126 = vmatpush3.msra.mxu1 %v5303_v38 }
  0x99   :  { %4127 = vmatprep.subr.mxu1 %v6945_v0 }
  0x9a   :  { %4128 = vmatpush3.msra.mxu1 %v5309_v39 }
  0x9b   :  { %4129 = vmatprep.subr.mxu1 %v6945_v0 }
  0x9c   :  { %4130 = vmatpush3.msra.mxu1 %v5315_v40 }
  0x9d   :  { %4131 = vmatprep.subr.mxu1 %v6945_v0 }
  0x9e   :  { %4132 = vmatpush3.msra.mxu1 %v5321_v41 }
  0x9f   :  { %4136 = vmatprep.subr.mxu1 %v6945_v0 }
 0x106   :  { %v222_v50 = vpop.f32.mrf.mxu0 }
 0x108   :  { %v224_v56 = vpop.f32.mrf.mxu0 }
 0x10a   :  { %v228_v62 = vpop.f32.mrf.mxu0 }
 0x10b   :  { %v5391_v5 = vadd.f32 %v228_v62, %v144_v60 }
 0x10c   :  { %v230_v9 = vpop.f32.mrf.mxu0 }
 0x10d   :  { %7005 = vst [vmem:[#allocation19_spill] sm:$0xff] %v5391_v5  ;;  %v5393_v11 = vadd.f32 %v230_v9, %v148_v3  ;;  %v6961_v9 = vsub.s32 2, %v5380_v43 }
 0x10e   :  { %v234_v16 = vpop.f32.mrf.mxu0 }
 0x10f   :  { %7006 = vst [vmem:[#allocation20_spill] sm:$0xff] %v5393_v11  ;;  %v5395_v22 = vadd.f32 %v234_v16, %v144_v60 }
 0x110   :  { %v236_v42 = vpop.f32.mrf.mxu0 }
 0x111   :  { %7007 = vst [vmem:[#allocation21_spill] sm:$0xff] %v5395_v22  ;;  %v5397_v0 = vadd.f32 %v236_v42, %v148_v3 }
 0x112   :  { %v240_v45 = vpop.f32.mrf.mxu0 }
 0x113   :  { %7008 = vst [vmem:[#allocation22_spill] sm:$0xff] %v5397_v0  ;;  %v5399_v41 = vadd.f32 %v240_v45, %v144_v60  ;;  %v152_v45 = vrot.slane %v139_v48, %v6961_v9 }
 0x114   :  { %v242_v26 = vpop.f32.mrf.mxu0 }
 0x115   :  { %7009 = vst [vmem:[#allocation23_spill] sm:$0xff] %v5399_v41  ;;  %v5401_v44 = vadd.f32 %v242_v26, %v148_v3 }
 0x116   :  { %v246_v25 = vpop.f32.mrf.mxu0 }
 0x117   :  { %7010 = vst [vmem:[#allocation24_spill] sm:$0xff] %v5401_v44  ;;  %v5403_v40 = vadd.f32 %v246_v25, %v144_v60  ;;  %v4056_v25 = vpop.f32.mrf.mxu1 }
 0x118   :  { %v248_v62 = vpop.f32.mrf.mxu0 }
 0x119   :  { %7011 = vst [vmem:[#allocation25_spill] sm:$0xff] %v5403_v40  ;;  %v5405_v54 = vadd.f32 %v248_v62, %v148_v3  ;;  %v5418_v62 = vadd.f32 %v4056_v25, %v152_v45 }
 0x11a   :  { %v252_v11 = vpop.f32.mrf.mxu0 }
 0x11b   :  { %7012 = vst [vmem:[#allocation26_spill] sm:$0xff] %v5405_v54  ;;  %v5408_v16 = vadd.f32 %v252_v11, %v144_v60 }
 0x11c   :  { %v254_v22 = vpop.f32.mrf.mxu0 }
 0x11d   :  { %7013 = vst [vmem:[#allocation27_spill] sm:$0xff] %v5408_v16  ;;  %v5410_v42 = vadd.f32 %v254_v22, %v148_v3  ;;  %v223_v16 = vadd.f32 %v222_v50, %v144_v60 }
 0x11e   :  { %v258_v41 = vpop.f32.mrf.mxu0 }
 0x11f   :  { %7014 = vst [vmem:[#allocation28_spill] sm:$0xff] %v5410_v42  ;;  %v5414_v26 = vadd.f32 %v258_v41, %v144_v60  ;;  %v335_v42 = vpop.f32.mrf.mxu1 }
 0x120   :  { %v260_v44 = vpop.f32.mrf.mxu0 }
 0x121   :  { %7015 = vst [vmem:[#allocation29_spill] sm:$0xff] %v5414_v26  ;;  %v5416_v40 = vadd.f32 %v260_v44, %v148_v3  ;;  %v225_v44 = vadd.f32 %v224_v56, %v148_v3 }
 0x122   :  { %v264_v54 = vpop.f32.mrf.mxu0 }
 0x123   :  { %7016 = vst [vmem:[#allocation30_spill] sm:$0xff] %v5416_v40  ;;  %v5420_v0 = vadd.f32 %v264_v54, %v144_v60 }
 0x124   :  { %v266_v11 = vpop.f32.mrf.mxu0  ;;  %v4059_v48 = vpop.f32.mrf.mxu1 }
 0x125   :  { %7017 = vst [vmem:[#allocation31_spill] sm:$0xff] %v5420_v0  ;;  %v5422_v5 = vadd.f32 %v266_v11, %v148_v3  ;;  %v5424_v41 = vadd.f32 %v4059_v48, %v152_v45 }
 0x126   :  { %v515_v22 = vpop.f32.mrf.mxu0  ;;  %v345_v24 = vpop.f32.mrf.mxu1 }
 0x127   :  { %7018 = vst [vmem:[#allocation32_spill] sm:$0xff] %v5422_v5  ;;  %v593_v43 = vadd.f32 %v515_v22, %v223_v16  ;;  %7019 = vst [vmem:[#allocation33_spill] sm:$0xff] %v5424_v41  ;;  %v5426_v25 = vadd.f32 %v345_v24, %v152_v45 }
 0x128   :  { %v517_v26 = vpop.f32.mrf.mxu0 }
 0x129   :  { %v3648_v9 = vmul.f32 -1.442695, %v593_v43  ;;  %7020 = vst [vmem:[#allocation34_spill] sm:$0xff] %v5426_v25  ;;  %v4062_v40 = vpop.f32.mrf.mxu1  ;;  %v600_v54 = vadd.f32 %v517_v26, %v225_v44 }
 0x12a   :  { %v5428_v0 = vadd.f32 %v4062_v40, %v152_v45  ;;  %v5439_v40 = vld [vmem:[%s6941_s4] ss:$0 sm:$0xff] }
 0x12b   :  { %4714 = vpow2.f32 %v3648_v9  ;;  %v355_v50 = vpop.f32.mrf.mxu1  ;;  %v3649_v5 = vmul.f32 -1.442695, %v600_v54 }
 0x12c   :  { %7021 = vst [vmem:[#allocation35_spill] sm:$0xff] %v5428_v0  ;;  %v5430_v60 = vadd.f32 %v355_v50, %v152_v45  ;;  %v336_v50 = vadd.f32 %v335_v42, %v152_v45  ;;  %v7026_v42 = vmov 0.0  }
 0x12d   :  { %v4065_v11 = vpop.f32.mrf.mxu1  ;;  %4716 = vpow2.f32 %v3649_v5 }
 0x12e   :  { %7022 = vst [vmem:[#allocation36_spill] sm:$0xff] %v5430_v60  ;;  %v5432_v16 = vadd.f32 %v4065_v11, %v152_v45 }
 0x12f   :  { %v365_v43 = vpop.f32.mrf.mxu1 }
 0x130   :  { %7023 = vst [vmem:[#allocation37_spill] sm:$0xff] %v5432_v16  ;;  %v5434_v22 = vadd.f32 %v365_v43, %v152_v45  ;;  %v7027_v45 = vld [vmem:[#allocation13_spill] sm:$0xff] }
 0x132   :  { %7024 = vst [vmem:[#allocation38_spill] sm:$0xff] %v5434_v22 }
 0x138   :  { %v4715_v48 = vpop.eup %4714 }
 0x139   :  { %v597_v56 = vadd.f32 1.0, %v4715_v48 }
 0x13a   :  { %v4717_v24 = vpop.eup %4716 }
 0x13b   :  { %4718 = vrcp.f32 %v597_v56  ;;  %v604_v26 = vadd.f32 1.0, %v4717_v24  ;;  %v7030_v24 = vld [vmem:[#allocation15_spill] sm:$0xff] }
 0x13d   :  { %4720 = vrcp.f32 %v604_v26 }
 0x13f   :  { %v586_v3 = vpop.f32.mrf.mxu1 }
 0x140   :  { %v613_v44 = vadd.f32 %v5439_v40, %v586_v3  ;;  %v7031_v3 = vld [vmem:[#allocation17_spill] sm:$0xff] }
 0x141   :  { %v4100_v9 = vpop.f32.mrf.mxu1 }
 0x142   :  { %v7032_v9 = vld [vmem:[#allocation12_spill] sm:$0xff] }
 0x148   :  { %v4719_v54 = vpop.eup %4718 }
 0x149   :  { %v614_v11 = vmul.f32 %v4719_v54, %v613_v44  ;;  %v7033_v54 = vld [vmem:[#allocation19_spill] sm:$0xff] }
 0x14a   :  { %v4721_v5 = vpop.eup %4720 }
 0x14b   :  { %v615_v43 = vadd.f32 %v614_v11, %v336_v50  ;;  %v617_v48 = vsub.f32 1.0, %v4721_v5  ;;  %v619_v22 = vmul.f32 0.0, %v4721_v5 }
 0x14d   :  { %4722 = vtanh.f32 %v615_v43 }
 0x15a   :  { %v4723_v56 = vpop.eup %4722 }
 0x15b   :  { %v618_v16 = vmul.f32 %v4723_v56, %v617_v48  ;;  %v7034_v48 = vld [vmem:[#allocation20_spill] sm:$0xff] }
 0x15d   :  { %v5442_v0 = vadd.f32 %v619_v22, %v618_v16  ;;  %v7028_v16 = vld [vmem:[#allocation16_spill] sm:$0xff]  ;;  %v7029_v22 = vld [vmem:[#allocation14_spill] sm:$0xff] }
 0x15f   :  { %7025 = vst [vmem:[#allocation39_spill] sm:$0xff] %v5442_v0  ;;  %689 = vmatmul.mubr.f32.vlgmr.msra.gmra.mxu0 %v5442_v0  ;;  %4134 = vmatmul.mubr.f32.vlgmr.msra.gmra.mxu1 %v5442_v0 }
 0x160   :  { %796 = vmatpush1.msra.mxu0 %v5102_v46  ;;  %4137 = vmatpush3.msra.mxu1 %v5220_v21 }
 0x161   :  { %797 = vmatprep.subr.mxu0 %v5104_v47  ;;  %4138 = vmatprep.subr.mxu1 %v7026_v42 }
 0x162   :  { %798 = vmatpush1.msra.mxu0 %v5108_v49  ;;  %4139 = vmatpush3.msra.mxu1 %v5240_v27 }
 0x163   :  { %799 = vmatprep.subr.mxu0 %v5117_v51  ;;  %4140 = vmatprep.subr.mxu1 %v7026_v42 }
 0x164   :  { %800 = vmatpush1.msra.mxu0 %v5120_v52  ;;  %4141 = vmatpush3.msra.mxu1 %v5246_v28 }
 0x165   :  { %801 = vmatprep.subr.mxu0 %v5123_v53  ;;  %4142 = vmatprep.subr.mxu1 %v7026_v42 }
 0x166   :  { %802 = vmatpush1.msra.mxu0 %v5127_v55  ;;  %4143 = vmatpush3.msra.mxu1 %v5252_v29 }
 0x167   :  { %803 = vmatprep.subr.mxu0 %v5136_v57  ;;  %4144 = vmatprep.subr.mxu1 %v7026_v42 }
 0x168   :  { %804 = vmatpush1.msra.mxu0 %v5139_v58  ;;  %4145 = vmatpush3.msra.mxu1 %v5257_v30 }
 0x169   :  { %805 = vmatprep.subr.mxu0 %v5142_v59  ;;  %4146 = vmatprep.subr.mxu1 %v7026_v42 }
 0x16a   :  { %806 = vmatpush1.msra.mxu0 %v5146_v61  ;;  %4147 = vmatpush3.msra.mxu1 %v5263_v31 }
 0x16b   :  { %807 = vmatprep.subr.mxu0 %v5155_v63  ;;  %4148 = vmatprep.subr.mxu1 %v7026_v42 }
 0x16c   :  { %808 = vmatpush1.msra.mxu0 %v5158_v1  ;;  %4149 = vmatpush3.msra.mxu1 %v5269_v32 }
 0x16d   :  { %809 = vmatprep.subr.mxu0 %v5161_v2  ;;  %4150 = vmatprep.subr.mxu1 %v7026_v42 }
 0x16e   :  { %810 = vmatpush1.msra.mxu0 %v5165_v4  ;;  %4151 = vmatpush3.msra.mxu1 %v5273_v33 }
 0x16f   :  { %811 = vmatprep.subr.mxu0 %v5174_v6  ;;  %4152 = vmatprep.subr.mxu1 %v7026_v42 }
 0x170   :  { %812 = vmatpush1.msra.mxu0 %v5177_v7  ;;  %4153 = vmatpush3.msra.mxu1 %v5279_v34 }
 0x171   :  { %813 = vmatprep.subr.mxu0 %v5180_v8  ;;  %4154 = vmatprep.subr.mxu1 %v7026_v42 }
 0x172   :  { %814 = vmatpush1.msra.mxu0 %v5184_v10  ;;  %4155 = vmatpush3.msra.mxu1 %v5285_v35 }
 0x173   :  { %815 = vmatprep.subr.mxu0 %v5191_v12  ;;  %4156 = vmatprep.subr.mxu1 %v7026_v42 }
 0x174   :  { %816 = vmatpush1.msra.mxu0 %v5194_v13  ;;  %4157 = vmatpush3.msra.mxu1 %v5291_v36 }
 0x175   :  { %817 = vmatprep.subr.mxu0 %v5197_v14  ;;  %4158 = vmatprep.subr.mxu1 %v7026_v42 }
 0x176   :  { %818 = vmatpush1.msra.mxu0 %v5200_v15  ;;  %4159 = vmatpush3.msra.mxu1 %v5297_v37 }
 0x177   :  { %819 = vmatprep.subr.mxu0 %v5207_v17  ;;  %4160 = vmatprep.subr.mxu1 %v7026_v42 }
 0x178   :  { %820 = vmatpush1.msra.mxu0 %v5210_v18  ;;  %4161 = vmatpush3.msra.mxu1 %v5303_v38 }
 0x179   :  { %821 = vmatprep.subr.mxu0 %v5214_v19  ;;  %4162 = vmatprep.subr.mxu1 %v7026_v42 }
 0x17a   :  { %822 = vmatpush1.msra.mxu0 %v5218_v20  ;;  %4163 = vmatpush3.msra.mxu1 %v5309_v39 }
 0x17b   :  { %823 = vmatprep.subr.mxu0 %v5227_v23  ;;  %4164 = vmatprep.subr.mxu1 %v7026_v42 }
 0x17c   :  { %824 = vmatpush1.msra.mxu0 %v7027_v45  ;;  %4165 = vmatpush3.msra.mxu1 %v7028_v16 }
 0x17d   :  { %825 = vmatprep.subr.mxu0 %v7029_v22  ;;  %4166 = vmatprep.subr.mxu1 %v7026_v42 }
 0x17e   :  { %826 = vmatpush1.msra.mxu0 %v7030_v24  ;;  %859 = vmatprep.mubr.f32.mxu0 %v7026_v42 }
 0x17f   :  { %4167 = vmatpush3.msra.mxu1 %v7031_v3  ;;  %4168 = vmatprep.mubr.msk.f32.mxu1 %vm5044_vm0, %v7026_v42 }
 0x180   :  { %966 = vmatprep.subr.mxu0 %v7032_v9  ;;  %4171 = vmatprep.subr.mxu1 %v7026_v42 }
 0x21f   :  { %v690_v26 = vpop.f32.mrf.mxu0  ;;  %v761_v44 = vpop.f32.mrf.mxu1 }
 0x220   :  { %v769_v50 = vadd.f32 %v690_v26, %v7033_v54  ;;  %v783_v9 = vadd.f32 %v5439_v40, %v761_v44 }
 0x221   :  { %v4135_v11 = vpop.f32.mrf.mxu1  ;;  %v692_v5 = vpop.f32.mrf.mxu0 }
 0x222   :  { %v3651_v43 = vmul.f32 -1.442695, %v769_v50  ;;  %v776_v56 = vadd.f32 %v692_v5, %v7034_v48 }
 0x224   :  { %4724 = vpow2.f32 %v3651_v43  ;;  %v3652_v60 = vmul.f32 -1.442695, %v776_v56 }
 0x226   :  { %4726 = vpow2.f32 %v3652_v60 }
 0x231   :  { %v4725_v41 = vpop.eup %4724 }
 0x232   :  { %v773_v25 = vadd.f32 1.0, %v4725_v41  ;;  %v7037_v41 = vld [vmem:[#allocation14_spill] sm:$0xff] }
 0x233   :  { %v4727_v3 = vpop.eup %4726 }
 0x234   :  { %4728 = vrcp.f32 %v773_v25  ;;  %v780_v24 = vadd.f32 1.0, %v4727_v3  ;;  %v7038_v25 = vld [vmem:[#allocation15_spill] sm:$0xff] }
 0x236   :  { %4730 = vrcp.f32 %v780_v24 }
 0x241   :  { %v4729_v22 = vpop.eup %4728 }
 0x242   :  { %v784_v16 = vmul.f32 %v4729_v22, %v783_v9  ;;  %v7040_v22 = vld [vmem:[#allocation12_spill] sm:$0xff]  ;;  %v7041_v9 = vld [vmem:[#allocation21_spill] sm:$0xff] }
 0x243   :  { %v4731_v54 = vpop.eup %4730 }
 0x244   :  { %v785_v26 = vadd.f32 %v784_v16, %v5418_v62  ;;  %v787_v50 = vsub.f32 1.0, %v4731_v54  ;;  %v789_v5 = vmul.f32 %v4731_v54, %v5442_v0  ;;  %v7036_v62 = vld [vmem:[#allocation16_spill] sm:$0xff]  ;;  %v7039_v16 = vld [vmem:[#allocation17_spill] sm:$0xff]  ;;  %v7042_v54 = vld [vmem:[#allocation22_spill] sm:$0xff] }
 0x246   :  { %4732 = vtanh.f32 %v785_v26 }
 0x253   :  { %v4733_v11 = vpop.eup %4732 }
 0x254   :  { %v788_v43 = vmul.f32 %v4733_v11, %v787_v50 }
 0x256   :  { %v5518_v60 = vadd.f32 %v789_v5, %v788_v43 }
 0x258   :  { %7035 = vst [vmem:[#allocation13_spill] sm:$0xff] %v5518_v60  ;;  %860 = vmatmul.mubr.f32.vlgmr.msra.gmra.mxu0 %v5518_v60  ;;  %4169 = vmatmul.mubr.f32.vlgmr.msra.gmra.mxu1 %v5518_v60 }
 0x259   :  { %967 = vmatpush1.msra.mxu0 %v5102_v46  ;;  %4172 = vmatpush3.msra.mxu1 %v5220_v21 }
 0x25a   :  { %968 = vmatprep.subr.mxu0 %v5104_v47  ;;  %4173 = vmatprep.subr.mxu1 %v7026_v42 }
 0x25b   :  { %969 = vmatpush1.msra.mxu0 %v5108_v49  ;;  %4174 = vmatpush3.msra.mxu1 %v5240_v27 }
 0x25c   :  { %970 = vmatprep.subr.mxu0 %v5117_v51  ;;  %4175 = vmatprep.subr.mxu1 %v7026_v42 }
 0x25d   :  { %971 = vmatpush1.msra.mxu0 %v5120_v52  ;;  %4176 = vmatpush3.msra.mxu1 %v5246_v28 }
 0x25e   :  { %972 = vmatprep.subr.mxu0 %v5123_v53  ;;  %4177 = vmatprep.subr.mxu1 %v7026_v42 }
 0x25f   :  { %973 = vmatpush1.msra.mxu0 %v5127_v55  ;;  %4178 = vmatpush3.msra.mxu1 %v5252_v29 }
 0x260   :  { %974 = vmatprep.subr.mxu0 %v5136_v57  ;;  %4179 = vmatprep.subr.mxu1 %v7026_v42 }
 0x261   :  { %975 = vmatpush1.msra.mxu0 %v5139_v58  ;;  %4180 = vmatpush3.msra.mxu1 %v5257_v30 }
 0x262   :  { %976 = vmatprep.subr.mxu0 %v5142_v59  ;;  %4181 = vmatprep.subr.mxu1 %v7026_v42 }
 0x263   :  { %977 = vmatpush1.msra.mxu0 %v5146_v61  ;;  %4182 = vmatpush3.msra.mxu1 %v5263_v31 }
 0x264   :  { %978 = vmatprep.subr.mxu0 %v5155_v63  ;;  %4183 = vmatprep.subr.mxu1 %v7026_v42 }
 0x265   :  { %979 = vmatpush1.msra.mxu0 %v5158_v1  ;;  %4184 = vmatpush3.msra.mxu1 %v5269_v32 }
 0x266   :  { %980 = vmatprep.subr.mxu0 %v5161_v2  ;;  %4185 = vmatprep.subr.mxu1 %v7026_v42 }
 0x267   :  { %981 = vmatpush1.msra.mxu0 %v5165_v4  ;;  %4186 = vmatpush3.msra.mxu1 %v5273_v33 }
 0x268   :  { %982 = vmatprep.subr.mxu0 %v5174_v6  ;;  %4187 = vmatprep.subr.mxu1 %v7026_v42 }
 0x269   :  { %983 = vmatpush1.msra.mxu0 %v5177_v7  ;;  %4188 = vmatpush3.msra.mxu1 %v5279_v34 }
 0x26a   :  { %984 = vmatprep.subr.mxu0 %v5180_v8  ;;  %4189 = vmatprep.subr.mxu1 %v7026_v42 }
 0x26b   :  { %985 = vmatpush1.msra.mxu0 %v5184_v10  ;;  %4190 = vmatpush3.msra.mxu1 %v5285_v35 }
 0x26c   :  { %986 = vmatprep.subr.mxu0 %v5191_v12  ;;  %4191 = vmatprep.subr.mxu1 %v7026_v42 }
 0x26d   :  { %987 = vmatpush1.msra.mxu0 %v5194_v13  ;;  %4192 = vmatpush3.msra.mxu1 %v5291_v36 }
 0x26e   :  { %988 = vmatprep.subr.mxu0 %v5197_v14  ;;  %4193 = vmatprep.subr.mxu1 %v7026_v42 }
 0x26f   :  { %989 = vmatpush1.msra.mxu0 %v5200_v15  ;;  %4194 = vmatpush3.msra.mxu1 %v5297_v37 }
 0x270   :  { %990 = vmatprep.subr.mxu0 %v5207_v17  ;;  %4195 = vmatprep.subr.mxu1 %v7026_v42 }
 0x271   :  { %991 = vmatpush1.msra.mxu0 %v5210_v18  ;;  %4196 = vmatpush3.msra.mxu1 %v5303_v38 }
 0x272   :  { %992 = vmatprep.subr.mxu0 %v5214_v19  ;;  %4197 = vmatprep.subr.mxu1 %v7026_v42 }
 0x273   :  { %993 = vmatpush1.msra.mxu0 %v5218_v20  ;;  %4198 = vmatpush3.msra.mxu1 %v5309_v39 }
 0x274   :  { %994 = vmatprep.subr.mxu0 %v5227_v23  ;;  %4199 = vmatprep.subr.mxu1 %v7026_v42 }
 0x275   :  { %995 = vmatpush1.msra.mxu0 %v7027_v45  ;;  %4200 = vmatpush3.msra.mxu1 %v7036_v62  ;;  %v7043_v62 = vld [vmem:[#allocation34_spill] sm:$0xff] }
 0x276   :  { %996 = vmatprep.subr.mxu0 %v7037_v41  ;;  %4201 = vmatprep.subr.mxu1 %v7026_v42 }
 0x277   :  { %997 = vmatpush1.msra.mxu0 %v7038_v25  ;;  %1030 = vmatprep.mubr.f32.mxu0 %v7026_v42 }
 0x278   :  { %4202 = vmatpush3.msra.mxu1 %v7039_v16  ;;  %4203 = vmatprep.mubr.msk.f32.mxu1 %vm5044_vm0, %v7026_v42 }
 0x279   :  { %1137 = vmatprep.subr.mxu0 %v7040_v22  ;;  %4206 = vmatprep.subr.mxu1 %v7026_v42 }
 0x318   :  { %v861_v24 = vpop.f32.mrf.mxu0  ;;  %v932_v3 = vpop.f32.mrf.mxu1 }
 0x319   :  { %v940_v44 = vadd.f32 %v861_v24, %v7041_v9  ;;  %v954_v22 = vadd.f32 %v5439_v40, %v932_v3  ;;  %v5694_v3 = vld [vmem:[#allocation7 + $0x138] sm:$0xff] }
 0x31a   :  { %v4170_v48 = vpop.f32.mrf.mxu1  ;;  %v863_v26 = vpop.f32.mrf.mxu0 }
 0x31b   :  { %v3653_v56 = vmul.f32 -1.442695, %v940_v44  ;;  %v947_v50 = vadd.f32 %v863_v26, %v7042_v54 }
 0x31d   :  { %4734 = vpow2.f32 %v3653_v56  ;;  %v3654_v11 = vmul.f32 -1.442695, %v947_v50  ;;  %v5698_v50 = vld [vmem:[#allocation7 + $0x128] sm:$0xff] }
 0x31f   :  { %4736 = vpow2.f32 %v3654_v11  ;;  %v5702_v11 = vld [vmem:[#allocation7 + $0x120] sm:$0xff] }
 0x32a   :  { %v4735_v43 = vpop.eup %4734 }
 0x32b   :  { %v944_v5 = vadd.f32 1.0, %v4735_v43  ;;  %v5710_v43 = vld [vmem:[#allocation7 + $0x108] sm:$0xff] }
 0x32c   :  { %v4737_v0 = vpop.eup %4736 }
 0x32d   :  { %4738 = vrcp.f32 %v944_v5  ;;  %v951_v16 = vadd.f32 1.0, %v4737_v0  ;;  %v7045_v0 = vld [vmem:[#allocation16_spill] sm:$0xff]  ;;  %v5718_v5 = vld [vmem:[#allocation7 + $0xf0] sm:$0xff] }
 0x32f   :  { %4740 = vrcp.f32 %v951_v16  ;;  %v5690_v16 = vld [vmem:[#allocation7 + $0x140] sm:$0xff] }
 0x33a   :  { %v4739_v25 = vpop.eup %4738 }
 0x33b   :  { %v955_v41 = vmul.f32 %v4739_v25, %v954_v22  ;;  %v5686_v25 = vld [vmem:[#allocation7 + $0x150] sm:$0xff]  ;;  %v5726_v22 = vld [vmem:[#allocation7 + $0xd8] sm:$0xff] }
 0x33c   :  { %v4741_v9 = vpop.eup %4740 }
 0x33d   :  { %v956_v24 = vadd.f32 %v955_v41, %v7043_v62  ;;  %v958_v44 = vsub.f32 1.0, %v4741_v9  ;;  %v960_v26 = vmul.f32 %v4741_v9, %v5518_v60  ;;  %v5679_v62 = vld [vmem:[#allocation7 + $0x178] sm:$0xff]  ;;  %v5742_v9 = vld [vmem:[#allocation7 + $0xa8] sm:$0xff] }
 0x33e   :  { %v5682_v41 = vld [vmem:[#allocation7 + $0x158] sm:$0xff] }
 0x33f   :  { %4742 = vtanh.f32 %v956_v24  ;;  %v5734_v24 = vld [vmem:[#allocation7 + $0xc0] sm:$0xff] }
 0x34c   :  { %v4743_v48 = vpop.eup %4742 }
 0x34d   :  { %v959_v56 = vmul.f32 %v4743_v48, %v958_v44  ;;  %v5750_v44 = vld [vmem:[#allocation7 + $0x90] sm:$0xff]  ;;  %v5758_v48 = vld [vmem:[#allocation7 + $0x78] sm:$0xff] }
 0x34f   :  { %v5594_v54 = vadd.f32 %v960_v26, %v959_v56  ;;  %v5766_v56 = vld [vmem:[#allocation7 + $0x60] sm:$0xff]  ;;  %v5774_v26 = vld [vmem:[#allocation7 + $0x48] sm:$0xff] }
 0x351   :  { %7044 = vst [vmem:[#allocation19_spill] sm:$0xff] %v5594_v54  ;;  %1031 = vmatmul.mubr.f32.vlgmr.msra.gmra.mxu0 %v5594_v54  ;;  %4204 = vmatmul.mubr.f32.vlgmr.msra.gmra.mxu1 %v5594_v54 }
 0x352   :  { %1138 = vmatpush1.msra.mxu0 %v5102_v46  ;;  %4207 = vmatpush3.msra.mxu1 %v5220_v21  ;;  %v7046_v46 = vld [vmem:[#allocation14_spill] sm:$0xff] }
 0x353   :  { %1139 = vmatprep.subr.mxu0 %v5104_v47  ;;  %4208 = vmatprep.subr.mxu1 %v7026_v42  ;;  %v7047_v47 = vld [vmem:[#allocation15_spill] sm:$0xff] }
 0x354   :  { %1140 = vmatpush1.msra.mxu0 %v5108_v49  ;;  %4209 = vmatpush3.msra.mxu1 %v5240_v27  ;;  %v7048_v49 = vld [vmem:[#allocation17_spill] sm:$0xff] }
 0x355   :  { %1141 = vmatprep.subr.mxu0 %v5117_v51  ;;  %4210 = vmatprep.subr.mxu1 %v7026_v42  ;;  %v5663_v51 = vld [vmem:[#allocation7 + $0x170] sm:$0xff] }
 0x356   :  { %1142 = vmatpush1.msra.mxu0 %v5120_v52  ;;  %4211 = vmatpush3.msra.mxu1 %v5246_v28 }
 0x357   :  { %1143 = vmatprep.subr.mxu0 %v5123_v53  ;;  %4212 = vmatprep.subr.mxu1 %v7026_v42 }
 0x358   :  { %1144 = vmatpush1.msra.mxu0 %v5127_v55  ;;  %4213 = vmatpush3.msra.mxu1 %v5252_v29  ;;  %v7049_v55 = vld [vmem:[#allocation23_spill] sm:$0xff] }
 0x359   :  { %1145 = vmatprep.subr.mxu0 %v5136_v57  ;;  %4214 = vmatprep.subr.mxu1 %v7026_v42 }
 0x35a   :  { %1146 = vmatpush1.msra.mxu0 %v5139_v58  ;;  %4215 = vmatpush3.msra.mxu1 %v5257_v30 }
 0x35b   :  { %1147 = vmatprep.subr.mxu0 %v5142_v59  ;;  %4216 = vmatprep.subr.mxu1 %v7026_v42 }
 0x35c   :  { %1148 = vmatpush1.msra.mxu0 %v5146_v61  ;;  %4217 = vmatpush3.msra.mxu1 %v5263_v31 }
 0x35d   :  { %1149 = vmatprep.subr.mxu0 %v5155_v63  ;;  %4218 = vmatprep.subr.mxu1 %v7026_v42  ;;  %v7050_v63 = vld [vmem:[#allocation24_spill] sm:$0xff] }
 0x35e   :  { %1150 = vmatpush1.msra.mxu0 %v5158_v1  ;;  %4219 = vmatpush3.msra.mxu1 %v5269_v32 }
 0x35f   :  { %1151 = vmatprep.subr.mxu0 %v5161_v2  ;;  %4220 = vmatprep.subr.mxu1 %v7026_v42 }
 0x360   :  { %1152 = vmatpush1.msra.mxu0 %v5165_v4  ;;  %4221 = vmatpush3.msra.mxu1 %v5273_v33 }
 0x361   :  { %1153 = vmatprep.subr.mxu0 %v5174_v6  ;;  %4222 = vmatprep.subr.mxu1 %v7026_v42 }
 0x362   :  { %1154 = vmatpush1.msra.mxu0 %v5177_v7  ;;  %4223 = vmatpush3.msra.mxu1 %v5279_v34 }
 0x363   :  { %1155 = vmatprep.subr.mxu0 %v5180_v8  ;;  %4224 = vmatprep.subr.mxu1 %v7026_v42 }
 0x364   :  { %1156 = vmatpush1.msra.mxu0 %v5184_v10  ;;  %4225 = vmatpush3.msra.mxu1 %v5285_v35 }
 0x365   :  { %1157 = vmatprep.subr.mxu0 %v5191_v12  ;;  %4226 = vmatprep.subr.mxu1 %v7026_v42 }
 0x366   :  { %1158 = vmatpush1.msra.mxu0 %v5194_v13  ;;  %4227 = vmatpush3.msra.mxu1 %v5291_v36 }
 0x367   :  { %1159 = vmatprep.subr.mxu0 %v5197_v14  ;;  %4228 = vmatprep.subr.mxu1 %v7026_v42  ;;  %v7051_v14 = vld [vmem:[#allocation33_spill] sm:$0xff] }
 0x368   :  { %1160 = vmatpush1.msra.mxu0 %v5200_v15  ;;  %4229 = vmatpush3.msra.mxu1 %v5297_v37 }
 0x369   :  { %1161 = vmatprep.subr.mxu0 %v5207_v17  ;;  %4230 = vmatprep.subr.mxu1 %v7026_v42 }
 0x36a   :  { %1162 = vmatpush1.msra.mxu0 %v5210_v18  ;;  %4231 = vmatpush3.msra.mxu1 %v5303_v38 }
 0x36b   :  { %1163 = vmatprep.subr.mxu0 %v5214_v19  ;;  %4232 = vmatprep.subr.mxu1 %v7026_v42 }
 0x36c   :  { %1164 = vmatpush1.msra.mxu0 %v5218_v20  ;;  %4233 = vmatpush3.msra.mxu1 %v5309_v39 }
 0x36d   :  { %1165 = vmatprep.subr.mxu0 %v5227_v23  ;;  %4234 = vmatprep.subr.mxu1 %v7026_v42 }
 0x36e   :  { %1166 = vmatpush1.msra.mxu0 %v7027_v45  ;;  %4235 = vmatpush3.msra.mxu1 %v7045_v0  ;;  %v5676_v45 = vld [vmem:[#allocation7 + $0x168] sm:$0xff] }
 0x36f   :  { %1167 = vmatprep.subr.mxu0 %v7046_v46  ;;  %4236 = vmatprep.subr.mxu1 %v7026_v42  ;;  %v5782_v46 = vld [vmem:[#allocation7 + $0x30] sm:$0xff] }
 0x370   :  { %1168 = vmatpush1.msra.mxu0 %v7047_v47  ;;  %1201 = vmatprep.mubr.f32.mxu0 %v7026_v42  ;;  %v5790_v47 = vld [vmem:[#allocation7 + $0x18] sm:$0xff] }
 0x371   :  { %4237 = vmatpush3.msra.mxu1 %v7048_v49  ;;  %4238 = vmatprep.mubr.msk.f32.mxu1 %vm5044_vm0, %v7026_v42 }
 0x372   :  { %1308 = vmatprep.subr.mxu0 %v5663_v51  ;;  %4241 = vmatprep.subr.mxu1 %v7026_v42 }
 0x411   :  { %v1032_v52 = vpop.f32.mrf.mxu0  ;;  %v1103_v53 = vpop.f32.mrf.mxu1 }
 0x412   :  { %v1111_v57 = vadd.f32 %v1032_v52, %v7049_v55  ;;  %v1125_v10 = vadd.f32 %v5439_v40, %v1103_v53  ;;  %v5798_v52 = vld [vmem:[#allocation7] sm:$0xff]  ;;  %v7055_v53 = vld [vmem:[#allocation25_spill] sm:$0xff] }
 0x413   :  { %v4205_v58 = vpop.f32.mrf.mxu1  ;;  %v1034_v61 = vpop.f32.mrf.mxu0  ;;  %7054 = vst [vmem:[#allocation21_spill] sm:$0xff] %v5798_v52 }
 0x414   :  { %v3655_v59 = vmul.f32 -1.442695, %v1111_v57  ;;  %v1118_v1 = vadd.f32 %v1034_v61, %v7050_v63  ;;  %v7056_v61 = vld [vmem:[#allocation26_spill] sm:$0xff] }
 0x416   :  { %4744 = vpow2.f32 %v3655_v59  ;;  %v3656_v2 = vmul.f32 -1.442695, %v1118_v1 }
 0x418   :  { %4746 = vpow2.f32 %v3656_v2 }
 0x423   :  { %v4745_v4 = vpop.eup %4744 }
 0x424   :  { %v1115_v6 = vadd.f32 1.0, %v4745_v4 }
 0x425   :  { %v4747_v7 = vpop.eup %4746 }
 0x426   :  { %4748 = vrcp.f32 %v1115_v6  ;;  %v1122_v8 = vadd.f32 1.0, %v4747_v7 }
 0x428   :  { %4750 = vrcp.f32 %v1122_v8 }
 0x433   :  { %v4749_v12 = vpop.eup %4748 }
 0x434   :  { %v1126_v13 = vmul.f32 %v4749_v12, %v1125_v10  ;;  %v7057_v12 = vld [vmem:[#allocation36_spill] sm:$0xff] }
 0x435   :  { %v4751_v17 = vpop.eup %4750 }
 0x436   :  { %v1127_v15 = vadd.f32 %v1126_v13, %v7051_v14  ;;  %v1129_v18 = vsub.f32 1.0, %v4751_v17  ;;  %v1131_v21 = vmul.f32 %v4751_v17, %v5594_v54 }
 0x438   :  { %4752 = vtanh.f32 %v1127_v15 }
 0x445   :  { %v4753_v19 = vpop.eup %4752 }
 0x446   :  { %v1130_v20 = vmul.f32 %v4753_v19, %v1129_v18 }
 0x448   :  { %v5672_v23 = vadd.f32 %v1131_v21, %v1130_v20  ;;  %v5821_v21 = vld [vmem:[#allocation7 + $0x160] sm:$0xff] }
 0x44a   :  { %7052 = vst [vmem:[#allocation20_spill] sm:$0xff] %v5672_v23  ;;  %1202 = vmatmul.mubr.f32.vlgmr.msra.gmra.mxu0 %v5672_v23  ;;  %4239 = vmatmul.mubr.f32.vlgmr.msra.gmra.mxu1 %v5672_v23 }
 0x44b   :  { %1309 = vmatpush1.msra.mxu0 %v5676_v45  ;;  %4242 = vmatpush3.msra.mxu1 %v5679_v62 }
 0x44c   :  { %1310 = vmatprep.subr.mxu0 %v5682_v41  ;;  %4243 = vmatprep.subr.mxu1 %v7026_v42 }
 0x44d   :  { %1311 = vmatpush1.msra.mxu0 %v5686_v25  ;;  %4244 = vmatpush3.msra.mxu1 %v5240_v27  ;;  %v5706_v27 = vld [vmem:[#allocation7 + $0x110] sm:$0xff] }
 0x44e   :  { %1312 = vmatprep.subr.mxu0 %v5690_v16  ;;  %4245 = vmatprep.subr.mxu1 %v7026_v42 }
 0x44f   :  { %1313 = vmatpush1.msra.mxu0 %v5694_v3  ;;  %4246 = vmatpush3.msra.mxu1 %v5246_v28  ;;  %v5714_v28 = vld [vmem:[#allocation7 + $0xf8] sm:$0xff] }
 0x450   :  { %1314 = vmatprep.subr.mxu0 %v5698_v50  ;;  %4247 = vmatprep.subr.mxu1 %v7026_v42 }
 0x451   :  { %1315 = vmatpush1.msra.mxu0 %v5702_v11  ;;  %4248 = vmatpush3.msra.mxu1 %v5252_v29  ;;  %v5722_v29 = vld [vmem:[#allocation7 + $0xe0] sm:$0xff] }
 0x452   :  { %1316 = vmatprep.subr.mxu0 %v5706_v27  ;;  %4249 = vmatprep.subr.mxu1 %v7026_v42 }
 0x453   :  { %1317 = vmatpush1.msra.mxu0 %v5710_v43  ;;  %4250 = vmatpush3.msra.mxu1 %v5257_v30  ;;  %v5730_v30 = vld [vmem:[#allocation7 + $0xc8] sm:$0xff] }
 0x454   :  { %1318 = vmatprep.subr.mxu0 %v5714_v28  ;;  %4251 = vmatprep.subr.mxu1 %v7026_v42 }
 0x455   :  { %1319 = vmatpush1.msra.mxu0 %v5718_v5  ;;  %4252 = vmatpush3.msra.mxu1 %v5263_v31  ;;  %v5738_v31 = vld [vmem:[#allocation7 + $0xb0] sm:$0xff] }
 0x456   :  { %1320 = vmatprep.subr.mxu0 %v5722_v29  ;;  %4253 = vmatprep.subr.mxu1 %v7026_v42 }
 0x457   :  { %1321 = vmatpush1.msra.mxu0 %v5726_v22  ;;  %4254 = vmatpush3.msra.mxu1 %v5269_v32  ;;  %v5746_v32 = vld [vmem:[#allocation7 + $0x98] sm:$0xff] }
 0x458   :  { %1322 = vmatprep.subr.mxu0 %v5730_v30  ;;  %4255 = vmatprep.subr.mxu1 %v7026_v42 }
 0x459   :  { %1323 = vmatpush1.msra.mxu0 %v5734_v24  ;;  %4256 = vmatpush3.msra.mxu1 %v5273_v33  ;;  %v5754_v33 = vld [vmem:[#allocation7 + $0x80] sm:$0xff] }
 0x45a   :  { %1324 = vmatprep.subr.mxu0 %v5738_v31  ;;  %4257 = vmatprep.subr.mxu1 %v7026_v42 }
 0x45b   :  { %1325 = vmatpush1.msra.mxu0 %v5742_v9  ;;  %4258 = vmatpush3.msra.mxu1 %v5279_v34  ;;  %v5762_v34 = vld [vmem:[#allocation7 + $0x68] sm:$0xff] }
 0x45c   :  { %1326 = vmatprep.subr.mxu0 %v5746_v32  ;;  %4259 = vmatprep.subr.mxu1 %v7026_v42 }
 0x45d   :  { %1327 = vmatpush1.msra.mxu0 %v5750_v44  ;;  %4260 = vmatpush3.msra.mxu1 %v5285_v35  ;;  %v5770_v35 = vld [vmem:[#allocation7 + $0x50] sm:$0xff] }
 0x45e   :  { %1328 = vmatprep.subr.mxu0 %v5754_v33  ;;  %4261 = vmatprep.subr.mxu1 %v7026_v42 }
 0x45f   :  { %1329 = vmatpush1.msra.mxu0 %v5758_v48  ;;  %4262 = vmatpush3.msra.mxu1 %v5291_v36  ;;  %v5778_v36 = vld [vmem:[#allocation7 + $0x38] sm:$0xff] }
 0x460   :  { %1330 = vmatprep.subr.mxu0 %v5762_v34  ;;  %4263 = vmatprep.subr.mxu1 %v7026_v42 }
 0x461   :  { %1331 = vmatpush1.msra.mxu0 %v5766_v56  ;;  %4264 = vmatpush3.msra.mxu1 %v5297_v37  ;;  %v5786_v37 = vld [vmem:[#allocation7 + $0x20] sm:$0xff] }
 0x462   :  { %1332 = vmatprep.subr.mxu0 %v5770_v35  ;;  %4265 = vmatprep.subr.mxu1 %v7026_v42 }
 0x463   :  { %1333 = vmatpush1.msra.mxu0 %v5774_v26  ;;  %4266 = vmatpush3.msra.mxu1 %v5303_v38  ;;  %v5794_v38 = vld [vmem:[#allocation7 + $0x8] sm:$0xff] }
 0x464   :  { %1334 = vmatprep.subr.mxu0 %v5778_v36  ;;  %4267 = vmatprep.subr.mxu1 %v7026_v42  ;;  %7053 = vst [vmem:[#allocation12_spill] sm:$0xff] %v5794_v38 }
 0x465   :  { %1335 = vmatpush1.msra.mxu0 %v5782_v46  ;;  %4268 = vmatpush3.msra.mxu1 %v5309_v39 }
 0x466   :  { %1336 = vmatprep.subr.mxu0 %v5786_v37  ;;  %4269 = vmatprep.subr.mxu1 %v7026_v42 }
 0x467   :  { %1337 = vmatpush1.msra.mxu0 %v5790_v47  ;;  %4270 = vmatpush3.msra.mxu1 %v7045_v0 }
 0x468   :  { %1338 = vmatprep.subr.mxu0 %v5794_v38  ;;  %4271 = vmatprep.subr.mxu1 %v7026_v42 }
 0x469   :  { %1339 = vmatpush1.msra.mxu0 %v5798_v52  ;;  %1372 = vmatprep.mubr.f32.mxu0 %v7026_v42 }
 0x46a   :  { %4272 = vmatpush3.msra.mxu1 %v7048_v49  ;;  %4273 = vmatprep.mubr.msk.f32.mxu1 %vm5044_vm0, %v7026_v42 }
 0x46b   :  { %1479 = vmatprep.subr.mxu0 %v5663_v51  ;;  %4276 = vmatprep.subr.mxu1 %v7026_v42 }
 0x50a   :  { %v1203_v39 = vpop.f32.mrf.mxu0  ;;  %v1274_v0 = vpop.f32.mrf.mxu1 }
 0x50b   :  { %v1282_v55 = vadd.f32 %v1203_v39, %v7055_v53  ;;  %v1296_v7 = vadd.f32 %v5439_v40, %v1274_v0  ;;  %v5827_v39 = vld [vmem:[#allocation7 + $0x148] sm:$0xff]  ;;  %v5833_v0 = vld [vmem:[#allocation7 + $0x130] sm:$0xff]  ;;  %v5839_v53 = vld [vmem:[#allocation7 + $0x118] sm:$0xff] }
 0x50c   :  { %v4240_v57 = vpop.f32.mrf.mxu1  ;;  %v1205_v59 = vpop.f32.mrf.mxu0 }
 0x50d   :  { %v3657_v58 = vmul.f32 -1.442695, %v1282_v55  ;;  %v1289_v63 = vadd.f32 %v1205_v59, %v7056_v61  ;;  %v5845_v55 = vld [vmem:[#allocation7 + $0x100] sm:$0xff]  ;;  %v5851_v57 = vld [vmem:[#allocation7 + $0xe8] sm:$0xff]  ;;  %v5863_v59 = vld [vmem:[#allocation7 + $0xb8] sm:$0xff] }
 0x50e   :  { %v5869_v61 = vld [vmem:[#allocation7 + $0xa0] sm:$0xff] }
 0x50f   :  { %4754 = vpow2.f32 %v3657_v58  ;;  %v3658_v1 = vmul.f32 -1.442695, %v1289_v63  ;;  %v5857_v58 = vld [vmem:[#allocation7 + $0xd0] sm:$0xff]  ;;  %v5875_v63 = vld [vmem:[#allocation7 + $0x88] sm:$0xff] }
 0x511   :  { %4756 = vpow2.f32 %v3658_v1  ;;  %v5881_v1 = vld [vmem:[#allocation7 + $0x70] sm:$0xff] }
 0x51c   :  { %v4755_v49 = vpop.eup %4754 }
 0x51d   :  { %v1286_v2 = vadd.f32 1.0, %v4755_v49  ;;  %v5887_v49 = vld [vmem:[#allocation7 + $0x58] sm:$0xff] }
 0x51e   :  { %v4757_v4 = vpop.eup %4756 }
 0x51f   :  { %4758 = vrcp.f32 %v1286_v2  ;;  %v1293_v6 = vadd.f32 1.0, %v4757_v4  ;;  %v5893_v2 = vld [vmem:[#allocation7 + $0x40] sm:$0xff]  ;;  %v5899_v4 = vld [vmem:[#allocation7 + $0x28] sm:$0xff] }
 0x520   :  { %7058 = vst [vmem:[#allocation22_spill] sm:$0xff] %v5899_v4 }
 0x521   :  { %4760 = vrcp.f32 %v1293_v6  ;;  %v5906_v6 = vld [vmem:[#allocation7 + $0x10] sm:$0xff] }
 0x522   :  { %7059 = vst [vmem:[#allocation34_spill] sm:$0xff] %v5906_v6 }
 0x52c   :  { %v4759_v8 = vpop.eup %4758 }
 0x52d   :  { %v1297_v10 = vmul.f32 %v4759_v8, %v1296_v7 }
 0x52e   :  { %v4761_v14 = vpop.eup %4760 }
 0x52f   :  { %v1298_v13 = vadd.f32 %v1297_v10, %v7057_v12  ;;  %v1300_v15 = vsub.f32 1.0, %v4761_v14  ;;  %v1302_v19 = vmul.f32 %v4761_v14, %v5672_v23  ;;  %v7060_v10 = vld [vmem:[#allocation27_spill] sm:$0xff] }
 0x531   :  { %4762 = vtanh.f32 %v1298_v13 }
 0x53e   :  { %v4763_v17 = vpop.eup %4762 }
 0x53f   :  { %v1301_v18 = vmul.f32 %v4763_v17, %v1300_v15  ;;  %v7061_v17 = vld [vmem:[#allocation28_spill] sm:$0xff] }
 0x541   :  { %v5812_v20 = vadd.f32 %v1302_v19, %v1301_v18 }
 0x543   :  { %1373 = vmatmul.mubr.f32.vlgmr.msra.gmra.mxu0 %v5812_v20  ;;  %4274 = vmatmul.mubr.f32.vlgmr.msra.gmra.mxu1 %v5812_v20 }
 0x544   :  { %1480 = vmatpush1.msra.mxu0 %v5676_v45  ;;  %4277 = vmatpush3.msra.mxu1 %v5679_v62 }
 0x545   :  { %1481 = vmatprep.subr.mxu0 %v5682_v41  ;;  %4278 = vmatprep.subr.mxu1 %v7026_v42 }
 0x546   :  { %1482 = vmatpush1.msra.mxu0 %v5686_v25  ;;  %4279 = vmatpush3.msra.mxu1 %v5821_v21 }
 0x547   :  { %1483 = vmatprep.subr.mxu0 %v5690_v16  ;;  %4280 = vmatprep.subr.mxu1 %v7026_v42 }
 0x548   :  { %1484 = vmatpush1.msra.mxu0 %v5694_v3  ;;  %4281 = vmatpush3.msra.mxu1 %v5827_v39 }
 0x549   :  { %1485 = vmatprep.subr.mxu0 %v5698_v50  ;;  %4282 = vmatprep.subr.mxu1 %v7026_v42 }
 0x54a   :  { %1486 = vmatpush1.msra.mxu0 %v5702_v11  ;;  %4283 = vmatpush3.msra.mxu1 %v5833_v0 }
 0x54b   :  { %1487 = vmatprep.subr.mxu0 %v5706_v27  ;;  %4284 = vmatprep.subr.mxu1 %v7026_v42 }
 0x54c   :  { %1488 = vmatpush1.msra.mxu0 %v5710_v43  ;;  %4285 = vmatpush3.msra.mxu1 %v5839_v53 }
 0x54d   :  { %1489 = vmatprep.subr.mxu0 %v5714_v28  ;;  %4286 = vmatprep.subr.mxu1 %v7026_v42 }
 0x54e   :  { %1490 = vmatpush1.msra.mxu0 %v5718_v5  ;;  %4287 = vmatpush3.msra.mxu1 %v5845_v55 }
 0x54f   :  { %1491 = vmatprep.subr.mxu0 %v5722_v29  ;;  %4288 = vmatprep.subr.mxu1 %v7026_v42 }
 0x550   :  { %1492 = vmatpush1.msra.mxu0 %v5726_v22  ;;  %4289 = vmatpush3.msra.mxu1 %v5851_v57 }
 0x551   :  { %1493 = vmatprep.subr.mxu0 %v5730_v30  ;;  %4290 = vmatprep.subr.mxu1 %v7026_v42 }
 0x552   :  { %1494 = vmatpush1.msra.mxu0 %v5734_v24  ;;  %4291 = vmatpush3.msra.mxu1 %v5857_v58 }
 0x553   :  { %1495 = vmatprep.subr.mxu0 %v5738_v31  ;;  %4292 = vmatprep.subr.mxu1 %v7026_v42 }
 0x554   :  { %1496 = vmatpush1.msra.mxu0 %v5742_v9  ;;  %4293 = vmatpush3.msra.mxu1 %v5863_v59 }
 0x555   :  { %1497 = vmatprep.subr.mxu0 %v5746_v32  ;;  %4294 = vmatprep.subr.mxu1 %v7026_v42 }
 0x556   :  { %1498 = vmatpush1.msra.mxu0 %v5750_v44  ;;  %4295 = vmatpush3.msra.mxu1 %v5869_v61 }
 0x557   :  { %1499 = vmatprep.subr.mxu0 %v5754_v33  ;;  %4296 = vmatprep.subr.mxu1 %v7026_v42 }
 0x558   :  { %1500 = vmatpush1.msra.mxu0 %v5758_v48  ;;  %4297 = vmatpush3.msra.mxu1 %v5875_v63 }
 0x559   :  { %1501 = vmatprep.subr.mxu0 %v5762_v34  ;;  %4298 = vmatprep.subr.mxu1 %v7026_v42 }
 0x55a   :  { %1502 = vmatpush1.msra.mxu0 %v5766_v56  ;;  %4299 = vmatpush3.msra.mxu1 %v5881_v1 }
 0x55b   :  { %1503 = vmatprep.subr.mxu0 %v5770_v35  ;;  %4300 = vmatprep.subr.mxu1 %v7026_v42 }
 0x55c   :  { %1504 = vmatpush1.msra.mxu0 %v5774_v26  ;;  %4301 = vmatpush3.msra.mxu1 %v5887_v49 }
 0x55d   :  { %1505 = vmatprep.subr.mxu0 %v5778_v36  ;;  %4302 = vmatprep.subr.mxu1 %v7026_v42 }
 0x55e   :  { %1506 = vmatpush1.msra.mxu0 %v5782_v46  ;;  %4303 = vmatpush3.msra.mxu1 %v5893_v2 }
 0x55f   :  { %1507 = vmatprep.subr.mxu0 %v5786_v37  ;;  %4304 = vmatprep.subr.mxu1 %v7026_v42 }
 0x560   :  { %1508 = vmatpush1.msra.mxu0 %v5790_v47  ;;  %4305 = vmatpush3.msra.mxu1 %v5899_v4  ;;  %v7062_v4 = vld [vmem:[#allocation35_spill] sm:$0xff] }
 0x561   :  { %1509 = vmatprep.subr.mxu0 %v5794_v38  ;;  %4306 = vmatprep.subr.mxu1 %v7026_v42 }
 0x562   :  { %1510 = vmatpush1.msra.mxu0 %v5798_v52  ;;  %1543 = vmatprep.mubr.f32.mxu0 %v7026_v42 }
 0x563   :  { %4307 = vmatpush3.msra.mxu1 %v5906_v6  ;;  %4308 = vmatprep.mubr.msk.f32.mxu1 %vm5044_vm0, %v7026_v42 }
 0x564   :  { %1650 = vmatprep.subr.mxu0 %v5663_v51  ;;  %4311 = vmatprep.subr.mxu1 %v7026_v42 }
 0x603   :  { %v1374_v7 = vpop.f32.mrf.mxu0  ;;  %v1445_v8 = vpop.f32.mrf.mxu1 }
 0x604   :  { %v1453_v12 = vadd.f32 %v1374_v7, %v7060_v10  ;;  %v1467_v51 = vadd.f32 %v5439_v40, %v1445_v8  ;;  %v7063_v40 = vld [vmem:[#allocation22_spill] sm:$0xff]  ;;  %v1856_v8 = vld [vmem:[#allocation5 + $0x258] sm:$0xff] }
 0x605   :  { %v4275_v13 = vpop.f32.mrf.mxu1  ;;  %v1376_v15 = vpop.f32.mrf.mxu0 }
 0x606   :  { %v3659_v14 = vmul.f32 -1.442695, %v1453_v12  ;;  %v1460_v18 = vadd.f32 %v1376_v15, %v7061_v17 }
 0x608   :  { %4764 = vpow2.f32 %v3659_v14  ;;  %v3660_v19 = vmul.f32 -1.442695, %v1460_v18  ;;  %v1854_v18 = vld [vmem:[#allocation5 + $0x248] sm:$0xff] }
 0x60a   :  { %4766 = vpow2.f32 %v3660_v19  ;;  %v1855_v19 = vld [vmem:[#allocation5 + $0x250] sm:$0xff] }
 0x615   :  { %v4765_v23 = vpop.eup %4764 }
 0x616   :  { %v1457_v54 = vadd.f32 1.0, %v4765_v23  ;;  %v7066_v23 = vld [vmem:[#allocation34_spill] sm:$0xff] }
 0x617   :  { %v4767_v60 = vpop.eup %4766 }
 0x618   :  { %4768 = vrcp.f32 %v1457_v54  ;;  %v1464_v6 = vadd.f32 1.0, %v4767_v60  ;;  %v7064_v60 = vld [vmem:[#allocation12_spill] sm:$0xff]  ;;  %v7065_v54 = vld [vmem:[#allocation21_spill] sm:$0xff] }
 0x61a   :  { %4770 = vrcp.f32 %v1464_v6  ;;  %v1858_v6 = vld [vmem:[#allocation5 + $0x268] sm:$0xff] }
 0x625   :  { %v4769_v52 = vpop.eup %4768 }
 0x626   :  { %v1468_v38 = vmul.f32 %v4769_v52, %v1467_v51  ;;  %v1871_v52 = vld [vmem:[#allocation5 + $0x2d0] sm:$0xff]  ;;  %v1853_v51 = vld [vmem:[#allocation5 + $0x240] sm:$0xff] }
 0x627   :  { %v4771_v10 = vpop.eup %4770 }
 0x628   :  { %v1469_v7 = vadd.f32 %v1468_v38, %v7062_v4  ;;  %v1471_v12 = vsub.f32 1.0, %v4771_v10  ;;  %v1473_v15 = vmul.f32 %v4771_v10, %v5812_v20  ;;  %v1873_v38 = vld [vmem:[#allocation5 + $0x2e0] sm:$0xff]  ;;  %v1852_v10 = vld [vmem:[#allocation5 + $0x238] sm:$0xff] }
 0x629   :  { %v1857_v4 = vld [vmem:[#allocation5 + $0x260] sm:$0xff] }
 0x62a   :  { %4772 = vtanh.f32 %v1469_v7  ;;  %v1851_v7 = vld [vmem:[#allocation5 + $0x230] sm:$0xff] }
 0x637   :  { %v4773_v13 = vpop.eup %4772 }
 0x638   :  { %v1472_v14 = vmul.f32 %v4773_v13, %v1471_v12  ;;  %v1850_v12 = vld [vmem:[#allocation5 + $0x228] sm:$0xff]  ;;  %v1848_v13 = vld [vmem:[#allocation5 + $0x218] sm:$0xff] }
 0x63a   :  { %v5918_v17 = vadd.f32 %v1473_v15, %v1472_v14  ;;  %v1849_v14 = vld [vmem:[#allocation5 + $0x220] sm:$0xff]  ;;  %v1847_v15 = vld [vmem:[#allocation5 + $0x210] sm:$0xff] }
 0x63c   :  { %1544 = vmatmul.mubr.f32.vlgmr.msra.gmra.mxu0 %v5918_v17  ;;  %4309 = vmatmul.mubr.f32.vlgmr.msra.gmra.mxu1 %v5918_v17 }
 0x63d   :  { %1651 = vmatpush1.msra.mxu0 %v5676_v45  ;;  %4312 = vmatpush3.msra.mxu1 %v5679_v62  ;;  %v1875_v45 = vld [vmem:[#allocation5 + $0x2f0] sm:$0xff]  ;;  %v1876_v62 = vld [vmem:[#allocation5 + $0x2f8] sm:$0xff] }
 0x63e   :  { %1652 = vmatprep.subr.mxu0 %v5682_v41  ;;  %4313 = vmatprep.subr.mxu1 %v7026_v42 }
 0x63f   :  { %1653 = vmatpush1.msra.mxu0 %v5686_v25  ;;  %4314 = vmatpush3.msra.mxu1 %v5821_v21  ;;  %v1869_v21 = vld [vmem:[#allocation5 + $0x2c0] sm:$0xff] }
 0x640   :  { %1654 = vmatprep.subr.mxu0 %v5690_v16  ;;  %4315 = vmatprep.subr.mxu1 %v7026_v42  ;;  %v7067_v16 = vld [vmem:[#allocation29_spill] sm:$0xff] }
 0x641   :  { %1655 = vmatpush1.msra.mxu0 %v5694_v3  ;;  %4316 = vmatpush3.msra.mxu1 %v5827_v39  ;;  %v1870_v39 = vld [vmem:[#allocation5 + $0x2c8] sm:$0xff] }
 0x642   :  { %1656 = vmatprep.subr.mxu0 %v5698_v50  ;;  %4317 = vmatprep.subr.mxu1 %v7026_v42 }
 0x643   :  { %1657 = vmatpush1.msra.mxu0 %v5702_v11  ;;  %4318 = vmatpush3.msra.mxu1 %v5833_v0  ;;  %v1868_v0 = vld [vmem:[#allocation5 + $0x2b8] sm:$0xff] }
 0x644   :  { %1658 = vmatprep.subr.mxu0 %v5706_v27  ;;  %4319 = vmatprep.subr.mxu1 %v7026_v42 }
 0x645   :  { %1659 = vmatpush1.msra.mxu0 %v5710_v43  ;;  %4320 = vmatpush3.msra.mxu1 %v5839_v53  ;;  %v7068_v43 = vld [vmem:[#allocation30_spill] sm:$0xff]  ;;  %v7070_v53 = vld [vmem:[#allocation39_spill] sm:$0xff] }
 0x646   :  { %1660 = vmatprep.subr.mxu0 %v5714_v28  ;;  %4321 = vmatprep.subr.mxu1 %v7026_v42 }
 0x647   :  { %1661 = vmatpush1.msra.mxu0 %v5718_v5  ;;  %4322 = vmatpush3.msra.mxu1 %v5845_v55  ;;  %v1866_v55 = vld [vmem:[#allocation5 + $0x2a8] sm:$0xff] }
 0x648   :  { %1662 = vmatprep.subr.mxu0 %v5722_v29  ;;  %4323 = vmatprep.subr.mxu1 %v7026_v42 }
 0x649   :  { %1663 = vmatpush1.msra.mxu0 %v5726_v22  ;;  %4324 = vmatpush3.msra.mxu1 %v5851_v57  ;;  %v1867_v57 = vld [vmem:[#allocation5 + $0x2b0] sm:$0xff] }
 0x64a   :  { %1664 = vmatprep.subr.mxu0 %v5730_v30  ;;  %4325 = vmatprep.subr.mxu1 %v7026_v42 }
 0x64b   :  { %1665 = vmatpush1.msra.mxu0 %v5734_v24  ;;  %4326 = vmatpush3.msra.mxu1 %v5857_v58  ;;  %v1865_v58 = vld [vmem:[#allocation5 + $0x2a0] sm:$0xff] }
 0x64c   :  { %1666 = vmatprep.subr.mxu0 %v5738_v31  ;;  %4327 = vmatprep.subr.mxu1 %v7026_v42  ;;  %v5992_v31 = vld [vmem:[%s6941_s4] ss:$0 sm:$0xff] }
 0x64d   :  { %1667 = vmatpush1.msra.mxu0 %v5742_v9  ;;  %4328 = vmatpush3.msra.mxu1 %v5863_v59  ;;  %v1863_v59 = vld [vmem:[#allocation5 + $0x290] sm:$0xff] }
 0x64e   :  { %1668 = vmatprep.subr.mxu0 %v5746_v32  ;;  %4329 = vmatprep.subr.mxu1 %v7026_v42 }
 0x64f   :  { %1669 = vmatpush1.msra.mxu0 %v5750_v44  ;;  %4330 = vmatpush3.msra.mxu1 %v5869_v61  ;;  %v1864_v61 = vld [vmem:[#allocation5 + $0x298] sm:$0xff] }
 0x650   :  { %1670 = vmatprep.subr.mxu0 %v5754_v33  ;;  %4331 = vmatprep.subr.mxu1 %v7026_v42  ;;  %v7069_v33 = vld [vmem:[#allocation38_spill] sm:$0xff] }
 0x651   :  { %1671 = vmatpush1.msra.mxu0 %v5758_v48  ;;  %4332 = vmatpush3.msra.mxu1 %v5875_v63  ;;  %v1862_v63 = vld [vmem:[#allocation5 + $0x288] sm:$0xff] }
 0x652   :  { %1672 = vmatprep.subr.mxu0 %v5762_v34  ;;  %4333 = vmatprep.subr.mxu1 %v7026_v42 }
 0x653   :  { %1673 = vmatpush1.msra.mxu0 %v5766_v56  ;;  %4334 = vmatpush3.msra.mxu1 %v5881_v1  ;;  %v1860_v1 = vld [vmem:[#allocation5 + $0x278] sm:$0xff] }
 0x654   :  { %1674 = vmatprep.subr.mxu0 %v5770_v35  ;;  %4335 = vmatprep.subr.mxu1 %v7026_v42 }
 0x655   :  { %1675 = vmatpush1.msra.mxu0 %v5774_v26  ;;  %4336 = vmatpush3.msra.mxu1 %v5887_v49  ;;  %v1861_v49 = vld [vmem:[#allocation5 + $0x280] sm:$0xff] }
 0x656   :  { %1676 = vmatprep.subr.mxu0 %v5778_v36  ;;  %4337 = vmatprep.subr.mxu1 %v7026_v42 }
 0x657   :  { %1677 = vmatpush1.msra.mxu0 %v5782_v46  ;;  %4338 = vmatpush3.msra.mxu1 %v5893_v2  ;;  %v1859_v2 = vld [vmem:[#allocation5 + $0x270] sm:$0xff] }
 0x658   :  { %1678 = vmatprep.subr.mxu0 %v5786_v37  ;;  %4339 = vmatprep.subr.mxu1 %v7026_v42  ;;  %v1874_v37 = vld [vmem:[#allocation5 + $0x2e8] sm:$0xff] }
 0x659   :  { %1679 = vmatpush1.msra.mxu0 %v5790_v47  ;;  %4340 = vmatpush3.msra.mxu1 %v7063_v40  ;;  %v1872_v47 = vld [vmem:[#allocation5 + $0x2d8] sm:$0xff]  ;;  %v1845_v40 = vld [vmem:[#allocation5 + $0x200] sm:$0xff] }
 0x65a   :  { %1680 = vmatprep.subr.mxu0 %v7064_v60  ;;  %4341 = vmatprep.subr.mxu1 %v7026_v42  ;;  %v1846_v60 = vld [vmem:[#allocation5 + $0x208] sm:$0xff] }
 0x65b   :  { %1681 = vmatpush1.msra.mxu0 %v7065_v54  ;;  %4342 = vmatpush3.msra.mxu1 %v7066_v23  ;;  %v1844_v54 = vld [vmem:[#allocation5 + $0x1f8] sm:$0xff]  ;;  %v1842_v23 = vld [vmem:[#allocation5 + $0x1e8] sm:$0xff] }
 0x65c   :  { %1714 = vmatprep.mubr.f32.mxu0 %v7026_v42  ;;  %4343 = vmatprep.mubr.msk.f32.mxu1 %vm5044_vm0, %v7026_v42 }
 0x65d   :  { %1895 = vmatprep.subr.mxu0 %v1875_v45  ;;  %4346 = vmatprep.subr.mxu1 %v1876_v62  ;;  %v1843_v45 = vld [vmem:[#allocation5 + $0x1f0] sm:$0xff] }
 0x6fc   :  { %v1545_v41 = vpop.f32.mrf.mxu0  ;;  %v1616_v25 = vpop.f32.mrf.mxu1 }
 0x6fd   :  { %v1624_v3 = vadd.f32 %v1545_v41, %v7067_v16  ;;  %v1638_v9 = vadd.f32 %v5992_v31, %v1616_v25  ;;  %v1839_v41 = vld [vmem:[#allocation5 + $0x1d0] sm:$0xff]  ;;  %v1840_v25 = vld [vmem:[#allocation5 + $0x1d8] sm:$0xff]  ;;  %v1838_v16 = vld [vmem:[#allocation5 + $0x1c8] sm:$0xff] }
 0x6fe   :  { %v4310_v50 = vpop.f32.mrf.mxu1  ;;  %v1547_v27 = vpop.f32.mrf.mxu0 }
 0x6ff   :  { %v3661_v11 = vmul.f32 -1.442695, %v1624_v3  ;;  %v1631_v28 = vadd.f32 %v1547_v27, %v7068_v43  ;;  %v1836_v3 = vld [vmem:[#allocation5 + $0x1b8] sm:$0xff]  ;;  %v1837_v50 = vld [vmem:[#allocation5 + $0x1c0] sm:$0xff]  ;;  %v1834_v43 = vld [vmem:[#allocation5 + $0x1a8] sm:$0xff] }
 0x700   :  { %v1833_v27 = vld [vmem:[#allocation5 + $0x1a0] sm:$0xff] }
 0x701   :  { %4774 = vpow2.f32 %v3661_v11  ;;  %v3662_v5 = vmul.f32 -1.442695, %v1631_v28  ;;  %v1835_v11 = vld [vmem:[#allocation5 + $0x1b0] sm:$0xff]  ;;  %v1832_v28 = vld [vmem:[#allocation5 + $0x198] sm:$0xff] }
 0x703   :  { %4776 = vpow2.f32 %v3662_v5  ;;  %v1830_v5 = vld [vmem:[#allocation5 + $0x188] sm:$0xff] }
 0x70e   :  { %v4775_v29 = vpop.eup %4774 }
 0x70f   :  { %v1628_v22 = vadd.f32 1.0, %v4775_v29  ;;  %v1831_v29 = vld [vmem:[#allocation5 + $0x190] sm:$0xff] }
 0x710   :  { %v4777_v30 = vpop.eup %4776 }
 0x711   :  { %4778 = vrcp.f32 %v1628_v22  ;;  %v1635_v24 = vadd.f32 1.0, %v4777_v30  ;;  %v1829_v22 = vld [vmem:[#allocation5 + $0x180] sm:$0xff]  ;;  %v7071_v30 = vld [vmem:[#allocation13_spill] sm:$0xff] }
 0x713   :  { %4780 = vrcp.f32 %v1635_v24  ;;  %v7072_v24 = vld [vmem:[#allocation19_spill] sm:$0xff] }
 0x71e   :  { %v4779_v32 = vpop.eup %4778 }
 0x71f   :  { %v1639_v44 = vmul.f32 %v4779_v32, %v1638_v9  ;;  %v7073_v9 = vld [vmem:[#allocation20_spill] sm:$0xff]  ;;  %v6024_v32 = vld [vmem:[#allocation7 + $0x2f0] sm:$0xff] }
 0x720   :  { %v4781_v34 = vpop.eup %4780  ;;  %7074 = vst [vmem:[#allocation16_spill] sm:$0xff] %v6024_v32 }
 0x721   :  { %v1640_v48 = vadd.f32 %v1639_v44, %v7069_v33  ;;  %v1642_v56 = vsub.f32 1.0, %v4781_v34  ;;  %v1644_v36 = vmul.f32 %v4781_v34, %v5918_v17  ;;  %v6027_v44 = vld [vmem:[#allocation7 + $0x2e8] sm:$0xff]  ;;  %v6030_v33 = vld [vmem:[#allocation7 + $0x2d8] sm:$0xff] }
 0x722   :  { %v6042_v34 = vld [vmem:[#allocation7 + $0x2a8] sm:$0xff] }
 0x723   :  { %4782 = vtanh.f32 %v1640_v48  ;;  %v6039_v48 = vld [vmem:[#allocation7 + $0x2b8] sm:$0xff] }
 0x730   :  { %v4783_v35 = vpop.eup %4782 }
 0x731   :  { %v1643_v26 = vmul.f32 %v4783_v35, %v1642_v56  ;;  %v6045_v56 = vld [vmem:[#allocation7 + $0x2a0] sm:$0xff]  ;;  %v6048_v35 = vld [vmem:[#allocation7 + $0x290] sm:$0xff] }
 0x733   :  { %v5997_v46 = vadd.f32 %v1644_v36, %v1643_v26  ;;  %v6051_v26 = vld [vmem:[#allocation7 + $0x288] sm:$0xff]  ;;  %v6054_v36 = vld [vmem:[#allocation7 + $0x278] sm:$0xff] }
 0x735   :  { %1715 = vmatmul.mubr.f32.vlgmr.msra.gmra.mxu0 %v5997_v46  ;;  %4344 = vmatmul.mubr.f32.vlgmr.msra.gmra.mxu1 %v5997_v46 }
 0x736   :  { %1896 = vmatpush1.msra.mxu0 %v1874_v37  ;;  %4347 = vmatpush3.msra.mxu1 %v1876_v62  ;;  %v1841_v62 = vld [vmem:[#allocation5 + $0x1e0] sm:$0xff]  ;;  %v6057_v37 = vld [vmem:[#allocation7 + $0x270] sm:$0xff] }
 0x737   :  { %1897 = vmatprep.subr.mxu0 %v1872_v47  ;;  %4348 = vmatprep.subr.mxu1 %v1873_v38  ;;  %v6060_v47 = vld [vmem:[#allocation7 + $0x260] sm:$0xff] }
 0x738   :  { %4378 = vmatprep.mubr.f32.mxu1 %v7070_v53  ;;  %1898 = vmatpush1.msra.mxu0 %v1871_v52  ;;  %v6066_v52 = vld [vmem:[#allocation7 + $0x248] sm:$0xff] }
 0x739   :  { %4349 = vmatpush3.msra.mxu1 %v1873_v38  ;;  %1899 = vmatprep.subr.mxu0 %v1869_v21  ;;  %v6063_v38 = vld [vmem:[#allocation7 + $0x258] sm:$0xff]  ;;  %v6069_v21 = vld [vmem:[#allocation7 + $0x240] sm:$0xff] }
 0x73a   :  { %4350 = vmatprep.subr.mxu1 %v1870_v39  ;;  %1900 = vmatpush1.msra.mxu0 %v1868_v0  ;;  %v6075_v0 = vld [vmem:[#allocation7 + $0x228] sm:$0xff] }
 0x73b   :  { %4351 = vmatpush3.msra.mxu1 %v1870_v39  ;;  %1901 = vmatprep.subr.mxu0 %v1866_v55  ;;  %v6072_v39 = vld [vmem:[#allocation7 + $0x230] sm:$0xff] }
 0x73c   :  { %4352 = vmatprep.subr.mxu1 %v1867_v57  ;;  %1902 = vmatpush1.msra.mxu0 %v1865_v58  ;;  %v6081_v55 = vld [vmem:[#allocation7 + $0x210] sm:$0xff]  ;;  %v6087_v58 = vld [vmem:[#allocation7 + $0x1f8] sm:$0xff] }
 0x73d   :  { %4353 = vmatpush3.msra.mxu1 %v1867_v57  ;;  %1903 = vmatprep.subr.mxu0 %v1863_v59  ;;  %v6084_v57 = vld [vmem:[#allocation7 + $0x200] sm:$0xff]  ;;  %v6090_v59 = vld [vmem:[#allocation7 + $0x1e8] sm:$0xff] }
 0x73e   :  { %4354 = vmatprep.subr.mxu1 %v1864_v61  ;;  %1904 = vmatpush1.msra.mxu0 %v1862_v63  ;;  %v6096_v63 = vld [vmem:[#allocation7 + $0x1d0] sm:$0xff] }
 0x73f   :  { %4355 = vmatpush3.msra.mxu1 %v1864_v61  ;;  %1905 = vmatprep.subr.mxu0 %v1860_v1  ;;  %v6093_v61 = vld [vmem:[#allocation7 + $0x1e0] sm:$0xff]  ;;  %v6099_v1 = vld [vmem:[#allocation7 + $0x1c8] sm:$0xff] }
 0x740   :  { %4356 = vmatprep.subr.mxu1 %v1861_v49  ;;  %1906 = vmatpush1.msra.mxu0 %v1859_v2  ;;  %v6105_v2 = vld [vmem:[#allocation7 + $0x1b0] sm:$0xff] }
 0x741   :  { %4357 = vmatpush3.msra.mxu1 %v1861_v49  ;;  %1907 = vmatprep.subr.mxu0 %v1857_v4  ;;  %v6102_v49 = vld [vmem:[#allocation7 + $0x1b8] sm:$0xff]  ;;  %v6108_v4 = vld [vmem:[#allocation7 + $0x1a0] sm:$0xff] }
 0x742   :  { %4358 = vmatprep.subr.mxu1 %v1858_v6  ;;  %1908 = vmatpush1.msra.mxu0 %v1856_v8  ;;  %v6114_v8 = vld [vmem:[#allocation7 + $0x188] sm:$0xff] }
 0x743   :  { %4359 = vmatpush3.msra.mxu1 %v1858_v6  ;;  %1909 = vmatprep.subr.mxu0 %v1854_v18  ;;  %v6111_v6 = vld [vmem:[#allocation7 + $0x198] sm:$0xff]  ;;  %7076 = vst [vmem:[#allocation15_spill] sm:$0xff] %v6114_v8  ;;  %v6116_v18 = vld [vmem:[#allocation7 + $0x180] sm:$0xff] }
 0x744   :  { %4360 = vmatprep.subr.mxu1 %v1855_v19  ;;  %1910 = vmatpush1.msra.mxu0 %v1853_v51  ;;  %7075 = vst [vmem:[#allocation14_spill] sm:$0xff] %v6111_v6  ;;  %7077 = vst [vmem:[#allocation17_spill] sm:$0xff] %v6116_v18  ;;  %v6121_v51 = vld [vmem:[#allocation7 + $0x2e0] sm:$0xff] }
 0x745   :  { %4361 = vmatpush3.msra.mxu1 %v1855_v19  ;;  %1911 = vmatprep.subr.mxu0 %v1851_v7  ;;  %v6119_v19 = vld [vmem:[#allocation7 + $0x2f8] sm:$0xff]  ;;  %v6126_v7 = vld [vmem:[#allocation7 + $0x2c8] sm:$0xff] }
 0x746   :  { %4362 = vmatprep.subr.mxu1 %v1852_v10  ;;  %1912 = vmatpush1.msra.mxu0 %v1850_v12  ;;  %v6135_v12 = vld [vmem:[#allocation7 + $0x298] sm:$0xff] }
 0x747   :  { %4363 = vmatpush3.msra.mxu1 %v1852_v10  ;;  %1913 = vmatprep.subr.mxu0 %v1848_v13  ;;  %v6131_v10 = vld [vmem:[#allocation7 + $0x2b0] sm:$0xff]  ;;  %v6139_v13 = vld [vmem:[#allocation7 + $0x280] sm:$0xff] }
 0x748   :  { %4364 = vmatprep.subr.mxu1 %v1849_v14  ;;  %1914 = vmatpush1.msra.mxu0 %v1847_v15  ;;  %v6147_v15 = vld [vmem:[#allocation7 + $0x250] sm:$0xff] }
 0x749   :  { %4365 = vmatpush3.msra.mxu1 %v1849_v14  ;;  %1915 = vmatprep.subr.mxu0 %v1845_v40  ;;  %v6143_v14 = vld [vmem:[#allocation7 + $0x268] sm:$0xff]  ;;  %v6151_v40 = vld [vmem:[#allocation7 + $0x238] sm:$0xff] }
 0x74a   :  { %4366 = vmatprep.subr.mxu1 %v1846_v60  ;;  %1916 = vmatpush1.msra.mxu0 %v1844_v54  ;;  %v6159_v54 = vld [vmem:[#allocation7 + $0x208] sm:$0xff] }
 0x74b   :  { %4367 = vmatpush3.msra.mxu1 %v1846_v60  ;;  %1917 = vmatprep.subr.mxu0 %v1842_v23  ;;  %v6155_v60 = vld [vmem:[#allocation7 + $0x220] sm:$0xff]  ;;  %v6163_v23 = vld [vmem:[#allocation7 + $0x1f0] sm:$0xff] }
 0x74c   :  { %4368 = vmatprep.subr.mxu1 %v1843_v45  ;;  %1918 = vmatpush1.msra.mxu0 %v1841_v62  ;;  %v6171_v62 = vld [vmem:[#allocation7 + $0x1c0] sm:$0xff] }
 0x74d   :  { %4369 = vmatpush3.msra.mxu1 %v1843_v45  ;;  %1919 = vmatprep.subr.mxu0 %v1839_v41  ;;  %v6167_v45 = vld [vmem:[#allocation7 + $0x1d8] sm:$0xff]  ;;  %v6175_v41 = vld [vmem:[#allocation7 + $0x1a8] sm:$0xff] }
 0x74e   :  { %4370 = vmatprep.subr.mxu1 %v1840_v25  ;;  %1920 = vmatpush1.msra.mxu0 %v1838_v16  ;;  %7078 = vst [vmem:[#allocation23_spill] sm:$0xff] %v6175_v41 }
 0x74f   :  { %4371 = vmatpush3.msra.mxu1 %v1840_v25  ;;  %1921 = vmatprep.subr.mxu0 %v1836_v3  ;;  %v6179_v25 = vld [vmem:[#allocation7 + $0x190] sm:$0xff] }
 0x750   :  { %4372 = vmatprep.subr.mxu1 %v1837_v50  ;;  %1922 = vmatpush1.msra.mxu0 %v1835_v11  ;;  %7079 = vst [vmem:[#allocation24_spill] sm:$0xff] %v6179_v25 }
 0x751   :  { %4373 = vmatpush3.msra.mxu1 %v1837_v50  ;;  %1923 = vmatprep.subr.mxu0 %v1833_v27  ;;  %v7080_v50 = vld [vmem:[#allocation31_spill] sm:$0xff] }
 0x752   :  { %4374 = vmatprep.subr.mxu1 %v1834_v43  ;;  %1924 = vmatpush1.msra.mxu0 %v1832_v28 }
 0x753   :  { %4375 = vmatpush3.msra.mxu1 %v1834_v43  ;;  %1925 = vmatprep.subr.mxu0 %v1830_v5  ;;  %v7081_v5 = vld [vmem:[#allocation32_spill] sm:$0xff] }
 0x754   :  { %4376 = vmatprep.subr.mxu1 %v1831_v29  ;;  %1926 = vmatpush1.msra.mxu0 %v1829_v22 }
 0x755   :  { %1959 = vmatprep.mubr.f32.mxu0 %v7026_v42  ;;  %4377 = vmatpush3.msra.mxu1 %v1831_v29 }
 0x756   :  { %1960 = vmatmul.mubr.f32.vlgmr.msra.gmra.mxu0 %v7070_v53  ;;  %4379 = vmatmul.mubr.f32.vlgmr.msra.gmra.mxu1 %v7071_v30  ;;  %v6078_v53 = vld [vmem:[#allocation7 + $0x218] sm:$0xff] }
 0x757   :  { %4381 = vmatprep.mubr.f32.mxu1 %v7072_v24  ;;  %1965 = vmatprep.mubr.f32.mxu0 %v7026_v42 }
 0x758   :  { %4390 = vmatprep.subr.mxu1 %v7026_v42  ;;  %2190 = vmatprep.subr.mxu0 %v6024_v32 }
 0x759   :  { %2191 = vmatpush1.msra.mxu0 %v6027_v44  ;;  %4391 = vmatpush3.msra.mxu1 %v6119_v19 }
 0x75a   :  { %1966 = vmatmul.mubr.f32.gmra.mxu0 %v7071_v30  ;;  %4382 = vmatmul.mubr.f32.gmra.mxu1 %v7073_v9 }
 0x75b   :  { %4384 = vmatprep.mubr.f32.mxu1 %v5812_v20  ;;  %1971 = vmatprep.mubr.f32.mxu0 %v7026_v42 }
 0x75c   :  { %2192 = vmatprep.subr.mxu0 %v6030_v33  ;;  %4392 = vmatprep.subr.mxu1 %v7026_v42 }
 0x75d   :  { %4393 = vmatpush3.msra.mxu1 %v6121_v51 }
 0x75e   :  { %1972 = vmatmul.mubr.f32.gmra.mxu0 %v7072_v24  ;;  %4385 = vmatmul.mubr.f32.gmra.mxu1 %v5918_v17 }
 0x75f   :  { %4387 = vmatprep.mubr.f32.mxu1 %v5997_v46  ;;  %1977 = vmatprep.mubr.f32.mxu0 %v7026_v42 }
 0x760   :  { %4394 = vmatprep.subr.mxu1 %v7026_v42 }
 0x761   :  { %4395 = vmatpush3.msra.mxu1 %v6126_v7 }
 0x762   :  { %1978 = vmatmul.mubr.f32.gmra.mxu0 %v7073_v9  ;;  %4396 = vmatprep.subr.mxu1 %v7026_v42 }
 0x763   :  { %1983 = vmatprep.mubr.f32.mxu0 %v7026_v42  ;;  %4397 = vmatpush3.msra.mxu1 %v6131_v10 }
 0x764   :  { %4398 = vmatprep.subr.mxu1 %v7026_v42 }
 0x765   :  { %4399 = vmatpush3.msra.mxu1 %v6135_v12 }
 0x766   :  { %1984 = vmatmul.mubr.f32.gmra.mxu0 %v5812_v20  ;;  %v6033_v20 = vld [vmem:[#allocation7 + $0x2d0] sm:$0xff]  ;;  %4400 = vmatprep.subr.mxu1 %v7026_v42 }
 0x767   :  { %1989 = vmatprep.mubr.f32.mxu0 %v7026_v42  ;;  %2193 = vmatpush1.msra.mxu0 %v6033_v20 }
 0x768   :  { %4401 = vmatpush3.msra.mxu1 %v6139_v13 }
 0x769   :  { %4402 = vmatprep.subr.mxu1 %v7026_v42 }
 0x76a   :  { %1990 = vmatmul.mubr.f32.gmra.mxu0 %v5918_v17  ;;  %v6036_v17 = vld [vmem:[#allocation7 + $0x2c0] sm:$0xff]  ;;  %4403 = vmatpush3.msra.mxu1 %v6143_v14 }
 0x76b   :  { %1995 = vmatprep.mubr.f32.mxu0 %v7026_v42  ;;  %2194 = vmatprep.subr.mxu0 %v6036_v17 }
 0x76c   :  { %2195 = vmatpush1.msra.mxu0 %v6039_v48  ;;  %4404 = vmatprep.subr.mxu1 %v7026_v42 }
 0x76d   :  { %2196 = vmatprep.subr.mxu0 %v6042_v34  ;;  %4405 = vmatpush3.msra.mxu1 %v6147_v15 }
 0x76e   :  { %1996 = vmatmul.mubr.f32.gmra.mxu0 %v5997_v46  ;;  %4406 = vmatprep.subr.mxu1 %v7026_v42 }
 0x76f   :  { %2001 = vmatprep.mubr.f32.mxu0 %v7026_v42  ;;  %2197 = vmatpush1.msra.mxu0 %v6045_v56 }
 0x770   :  { %2198 = vmatprep.subr.mxu0 %v6048_v35  ;;  %4407 = vmatpush3.msra.mxu1 %v6151_v40 }
 0x771   :  { %2199 = vmatpush1.msra.mxu0 %v6051_v26  ;;  %4408 = vmatprep.subr.mxu1 %v7026_v42 }
 0x772   :  { %2200 = vmatprep.subr.mxu0 %v6054_v36  ;;  %4409 = vmatpush3.msra.mxu1 %v6155_v60 }
 0x773   :  { %2201 = vmatpush1.msra.mxu0 %v6057_v37  ;;  %4410 = vmatprep.subr.mxu1 %v7026_v42 }
 0x774   :  { %2202 = vmatprep.subr.mxu0 %v6060_v47  ;;  %4411 = vmatpush3.msra.mxu1 %v6159_v54 }
 0x775   :  { %2203 = vmatpush1.msra.mxu0 %v6063_v38  ;;  %4412 = vmatprep.subr.mxu1 %v7026_v42 }
 0x776   :  { %2204 = vmatprep.subr.mxu0 %v6066_v52  ;;  %4413 = vmatpush3.msra.mxu1 %v6163_v23 }
 0x777   :  { %2205 = vmatpush1.msra.mxu0 %v6069_v21  ;;  %4414 = vmatprep.subr.mxu1 %v7026_v42 }
 0x778   :  { %2206 = vmatprep.subr.mxu0 %v6072_v39  ;;  %4415 = vmatpush3.msra.mxu1 %v6167_v45 }
 0x779   :  { %2207 = vmatpush1.msra.mxu0 %v6075_v0  ;;  %4416 = vmatprep.subr.mxu1 %v7026_v42 }
 0x77a   :  { %2208 = vmatprep.subr.mxu0 %v6078_v53  ;;  %4417 = vmatpush3.msra.mxu1 %v6171_v62 }
 0x77b   :  { %2209 = vmatpush1.msra.mxu0 %v6081_v55  ;;  %4418 = vmatprep.subr.mxu1 %v7026_v42 }
 0x77c   :  { %2210 = vmatprep.subr.mxu0 %v6084_v57  ;;  %4419 = vmatpush3.msra.mxu1 %v6175_v41  ;;  %v7082_v41 = vld [vmem:[#allocation37_spill] sm:$0xff] }
 0x77d   :  { %2211 = vmatpush1.msra.mxu0 %v6087_v58  ;;  %4420 = vmatprep.subr.mxu1 %v7026_v42 }
 0x77e   :  { %2212 = vmatprep.subr.mxu0 %v6090_v59  ;;  %4421 = vmatpush3.msra.mxu1 %v6179_v25 }
 0x77f   :  { %2213 = vmatpush1.msra.mxu0 %v6093_v61  ;;  %4425 = vmatprep.subr.mxu1 %v7026_v42 }
 0x780   :  { %2214 = vmatprep.subr.mxu0 %v6096_v63 }
 0x781   :  { %2215 = vmatpush1.msra.mxu0 %v6099_v1 }
 0x782   :  { %2216 = vmatprep.subr.mxu0 %v6102_v49 }
 0x783   :  { %2217 = vmatpush1.msra.mxu0 %v6105_v2 }
 0x784   :  { %2218 = vmatprep.subr.mxu0 %v6108_v4 }
 0x785   :  { %2219 = vmatpush1.msra.mxu0 %v6111_v6 }
 0x786   :  { %2220 = vmatprep.subr.mxu0 %v6114_v8 }
 0x787   :  { %2221 = vmatpush1.msra.mxu0 %v6116_v18 }
 0x788   :  { %2365 = vmatprep.subr.mxu0 %v6024_v32 }
 0x7f5   :  { %v1716_v16 = vpop.f32.mrf.mxu0  ;;  %v1787_v3 = vpop.f32.mrf.mxu1 }
 0x7f6   :  { %v1795_v11 = vadd.f32 %v1716_v16, %v7080_v50  ;;  %v1809_v25 = vadd.f32 %v5992_v31, %v1787_v3  ;;  %v7083_v31 = vld [vmem:[#allocation23_spill] sm:$0xff] }
 0x7f7   :  { %v4345_v27 = vpop.f32.mrf.mxu1  ;;  %v1718_v28 = vpop.f32.mrf.mxu0 }
 0x7f8   :  { %v3663_v43 = vmul.f32 -1.442695, %v1795_v11  ;;  %v1802_v29 = vadd.f32 %v1718_v28, %v7081_v5 }
 0x7fa   :  { %4784 = vpow2.f32 %v3663_v43  ;;  %v3664_v22 = vmul.f32 -1.442695, %v1802_v29 }
 0x7fc   :  { %4786 = vpow2.f32 %v3664_v22 }
 0x807   :  { %v4785_v30 = vpop.eup %4784 }
 0x808   :  { %v1799_v24 = vadd.f32 1.0, %v4785_v30 }
 0x809   :  { %v4787_v9 = vpop.eup %4786 }
 0x80a   :  { %4788 = vrcp.f32 %v1799_v24  ;;  %v1806_v32 = vadd.f32 1.0, %v4787_v9 }
 0x80c   :  { %4790 = vrcp.f32 %v1806_v32  ;;  %v7085_v32 = vld [vmem:[#allocation17_spill] sm:$0xff] }
 0x817   :  { %v4789_v18 = vpop.eup %4788 }
 0x818   :  { %v1810_v8 = vmul.f32 %v4789_v18, %v1809_v25  ;;  %v7087_v18 = vld [vmem:[#allocation16_spill] sm:$0xff] }
 0x819   :  { %v4791_v50 = vpop.eup %4790 }
 0x81a   :  { %v1811_v16 = vadd.f32 %v1810_v8, %v7082_v41  ;;  %v1813_v11 = vsub.f32 1.0, %v4791_v50  ;;  %v1815_v28 = vmul.f32 %v4791_v50, %v5997_v46  ;;  %v7084_v46 = vld [vmem:[#allocation15_spill] sm:$0xff]  ;;  %v7086_v8 = vld [vmem:[#allocation24_spill] sm:$0xff]  ;;  %v1961_v41 = vpop.f32.mrf.mxu0 }
 0x81c   :  { %4792 = vtanh.f32 %v1811_v16  ;;  %v1963_v25 = vpop.f32.mrf.mxu0  ;;  %v6274_v16 = vpop.f32.mrf.mxu1 }
 0x81d   :  { %7094 = vst [vmem:[#allocation35_spill] sm:$0xff] %v6274_v16 }
 0x81e   :  { %v6262_v3 = vpop.f32.mrf.mxu0 }
 0x81f   :  { %7088 = vst [vmem:[#allocation33_spill] sm:$0xff] %v6262_v3 }
 0x820   :  { %v6264_v29 = vpop.f32.mrf.mxu0 }
 0x821   :  { %7089 = vst [vmem:[#allocation25_spill] sm:$0xff] %v6264_v29 }
 0x822   :  { %v6266_v22 = vpop.f32.mrf.mxu0 }
 0x823   :  { %7090 = vst [vmem:[#allocation26_spill] sm:$0xff] %v6266_v22 }
 0x824   :  { %v6268_v30 = vpop.f32.mrf.mxu0 }
 0x825   :  { %7091 = vst [vmem:[#allocation36_spill] sm:$0xff] %v6268_v30 }
 0x826   :  { %v6270_v24 = vpop.f32.mrf.mxu0 }
 0x827   :  { %7092 = vst [vmem:[#allocation27_spill] sm:$0xff] %v6270_v24 }
 0x828   :  { %v6272_v9 = vpop.f32.mrf.mxu0 }
 0x829   :  { %v4793_v27 = vpop.eup %4792  ;;  %7093 = vst [vmem:[#allocation28_spill] sm:$0xff] %v6272_v9  ;;  %v3665_v9 = vld [vmem:[%s6940_s3 + $0x3] sm:$0x7] }
 0x82a   :  { %v1814_v43 = vmul.f32 %v4793_v27, %v1813_v11  ;;  %v6276_v50 = vpop.f32.mrf.mxu0  ;;  %v2074_v11 = vpop.f32.mrf.mxu1 }
 0x82b   :  { %7095 = vst [vmem:[#allocation22_spill] sm:$0xff] %v6276_v50 }
 0x82c   :  { %v1816_v5 = vadd.f32 %v1815_v28, %v1814_v43  ;;  %v6278_v27 = vpop.f32.mrf.mxu0  ;;  %v6280_v43 = vpop.f32.mrf.mxu1 }
 0x82d   :  { %7096 = vst [vmem:[#allocation12_spill] sm:$0xff] %v6278_v27  ;;  %7097 = vst [vmem:[#allocation21_spill] sm:$0xff] %v6280_v43  ;;  %v7105_v27 = vld [vmem:[#allocation18_spill] sm:$0xff] }
 0x82e   :  { %2002 = vmatmul.mubr.f32.gmra.mxu0 %v1816_v5  ;;  %4388 = vmatmul.mubr.f32.gmra.mxu1 %v1816_v5  ;;  %v6282_v28 = vpop.f32.mrf.mxu0  ;;  %v6284_v5 = vpop.f32.mrf.mxu1  ;;  %v7106_v43 = vsub.s32 0, %v7105_v27 }
 0x82f   :  { %2254 = vmatprep.mubr.f32.mxu0 %v7026_v42  ;;  %4422 = vmatprep.mubr.msk.f32.mxu1 %vm5044_vm0, %v7026_v42  ;;  %7098 = vst [vmem:[#allocation34_spill] sm:$0xff] %v6282_v28  ;;  %7099 = vst [vmem:[#allocation29_spill] sm:$0xff] %v6284_v5 }
 0x830   :  { %v6286_v22 = vpop.f32.mrf.mxu0  ;;  %v6288_v30 = vpop.f32.mrf.mxu1  ;;  %v6301_v29 = vrot.slane %v3665_v9, %v7106_v43 }
 0x831   :  { %7100 = vst [vmem:[#allocation30_spill] sm:$0xff] %v6286_v22  ;;  %7101 = vst [vmem:[#allocation38_spill] sm:$0xff] %v6288_v30 }
 0x832   :  { %2255 = vmatmul.mubr.f32.vlgmr.msra.gmra.mxu0 %v7026_v42  ;;  %4423 = vmatmul.mubr.f32.vlgmr.msra.gmra.mxu1 %v7026_v42  ;;  %v6290_v24 = vpop.f32.mrf.mxu0  ;;  %v6295_v50 = vpop.f32.mrf.mxu1  ;;  %7107 = vst [vmem:[#allocation20_spill] sm:$0xff] %v6301_v29 }
 0x833   :  { %2366 = vmatpush1.msra.mxu0 %v6027_v44  ;;  %4426 = vmatpush3.msra.mxu1 %v6119_v19  ;;  %7102 = vst [vmem:[#allocation39_spill] sm:$0xff] %v6290_v24  ;;  %7103 = vst [vmem:[#allocation13_spill] sm:$0xff] %v6295_v50  ;;  %v1962_v24 = vadd.f32 %v1961_v41, %v6301_v29  ;;  %v7112_v50 = vsub.s32 1, %v7105_v27  ;;  %v6320_v29 = vld [vmem:[%s6941_s4 + $0x1] ss:$0 sm:$0xff] }
 0x834   :  { %2367 = vmatprep.subr.mxu0 %v6030_v33  ;;  %4427 = vmatprep.subr.mxu1 %v7026_v42  ;;  %v6297_v16 = vpop.f32.mrf.mxu0 }
 0x835   :  { %2368 = vmatpush1.msra.mxu0 %v6033_v20  ;;  %4428 = vmatpush3.msra.mxu1 %v6121_v51  ;;  %7104 = vst [vmem:[#allocation19_spill] sm:$0xff] %v6297_v16 }
 0x836   :  { %2369 = vmatprep.subr.mxu0 %v6036_v17  ;;  %4429 = vmatprep.subr.mxu1 %v7026_v42 }
 0x837   :  { %2370 = vmatpush1.msra.mxu0 %v6039_v48  ;;  %4430 = vmatpush3.msra.mxu1 %v6126_v7 }
 0x838   :  { %2371 = vmatprep.subr.mxu0 %v6042_v34  ;;  %4431 = vmatprep.subr.mxu1 %v7026_v42 }
 0x839   :  { %2372 = vmatpush1.msra.mxu0 %v6045_v56  ;;  %4432 = vmatpush3.msra.mxu1 %v6131_v10 }
 0x83a   :  { %2373 = vmatprep.subr.mxu0 %v6048_v35  ;;  %4433 = vmatprep.subr.mxu1 %v7026_v42 }
 0x83b   :  { %2374 = vmatpush1.msra.mxu0 %v6051_v26  ;;  %4434 = vmatpush3.msra.mxu1 %v6135_v12 }
 0x83c   :  { %2375 = vmatprep.subr.mxu0 %v6054_v36  ;;  %4435 = vmatprep.subr.mxu1 %v7026_v42 }
 0x83d   :  { %2376 = vmatpush1.msra.mxu0 %v6057_v37  ;;  %4436 = vmatpush3.msra.mxu1 %v6139_v13 }
 0x83e   :  { %2377 = vmatprep.subr.mxu0 %v6060_v47  ;;  %4437 = vmatprep.subr.mxu1 %v7026_v42 }
 0x83f   :  { %2378 = vmatpush1.msra.mxu0 %v6063_v38  ;;  %4438 = vmatpush3.msra.mxu1 %v6143_v14 }
 0x840   :  { %2379 = vmatprep.subr.mxu0 %v6066_v52  ;;  %4439 = vmatprep.subr.mxu1 %v7026_v42 }
 0x841   :  { %2380 = vmatpush1.msra.mxu0 %v6069_v21  ;;  %4440 = vmatpush3.msra.mxu1 %v6147_v15 }
 0x842   :  { %2381 = vmatprep.subr.mxu0 %v6072_v39  ;;  %4441 = vmatprep.subr.mxu1 %v7026_v42 }
 0x843   :  { %2382 = vmatpush1.msra.mxu0 %v6075_v0  ;;  %4442 = vmatpush3.msra.mxu1 %v6151_v40 }
 0x844   :  { %2383 = vmatprep.subr.mxu0 %v6078_v53  ;;  %4443 = vmatprep.subr.mxu1 %v7026_v42 }
 0x845   :  { %2384 = vmatpush1.msra.mxu0 %v6081_v55  ;;  %4444 = vmatpush3.msra.mxu1 %v6155_v60 }
 0x846   :  { %2385 = vmatprep.subr.mxu0 %v6084_v57  ;;  %4445 = vmatprep.subr.mxu1 %v7026_v42 }
 0x847   :  { %2386 = vmatpush1.msra.mxu0 %v6087_v58  ;;  %4446 = vmatpush3.msra.mxu1 %v6159_v54 }
 0x848   :  { %2387 = vmatprep.subr.mxu0 %v6090_v59  ;;  %4447 = vmatprep.subr.mxu1 %v7026_v42 }
 0x849   :  { %2388 = vmatpush1.msra.mxu0 %v6093_v61  ;;  %4448 = vmatpush3.msra.mxu1 %v6163_v23 }
 0x84a   :  { %2389 = vmatprep.subr.mxu0 %v6096_v63  ;;  %4449 = vmatprep.subr.mxu1 %v7026_v42 }
 0x84b   :  { %2390 = vmatpush1.msra.mxu0 %v6099_v1  ;;  %4450 = vmatpush3.msra.mxu1 %v6167_v45 }
 0x84c   :  { %2391 = vmatprep.subr.mxu0 %v6102_v49  ;;  %4451 = vmatprep.subr.mxu1 %v7026_v42 }
 0x84d   :  { %2392 = vmatpush1.msra.mxu0 %v6105_v2  ;;  %4452 = vmatpush3.msra.mxu1 %v6171_v62 }
 0x84e   :  { %2393 = vmatprep.subr.mxu0 %v6108_v4  ;;  %4453 = vmatprep.subr.mxu1 %v7026_v42 }
 0x84f   :  { %2394 = vmatpush1.msra.mxu0 %v6111_v6  ;;  %4454 = vmatpush3.msra.mxu1 %v7083_v31 }
 0x850   :  { %2395 = vmatprep.subr.mxu0 %v7084_v46  ;;  %4455 = vmatprep.subr.mxu1 %v7026_v42 }
 0x851   :  { %2396 = vmatpush1.msra.mxu0 %v7085_v32  ;;  %2429 = vmatprep.mubr.f32.mxu0 %v7026_v42 }
 0x852   :  { %4456 = vmatpush3.msra.mxu1 %v7086_v8  ;;  %4457 = vmatprep.mubr.msk.f32.mxu1 %vm5044_vm0, %v7026_v42  ;;  %v6314_v8 = vrot.slane %v3665_v9, %v7112_v50 }
 0x853   :  { %2534 = vmatprep.subr.mxu0 %v7087_v18  ;;  %4460 = vmatprep.subr.mxu1 %v7026_v42 }
 0x854   :  { %7113 = vst [vmem:[#allocation40_spill] sm:$0xff] %v6314_v8 }
 0x8ee   :  { %v6303_v28 = vpop.f32.mrf.mxu0  ;;  %v6305_v5 = vpop.f32.mrf.mxu1 }
 0x8ef   :  { %7108 = vst [vmem:[#allocation31_spill] sm:$0xff] %v6303_v28  ;;  %7109 = vst [vmem:[#allocation32_spill] sm:$0xff] %v6305_v5  ;;  %v1964_v28 = vadd.f32 %v1963_v25, %v6314_v8 }
 0x8f0   :  { %v6307_v22 = vpop.f32.mrf.mxu0  ;;  %v6309_v30 = vpop.f32.mrf.mxu1 }
 0x8f1   :  { %7110 = vst [vmem:[#allocation37_spill] sm:$0xff] %v6307_v22  ;;  %7111 = vst [vmem:[#allocation18_spill] sm:$0xff] %v6309_v30 }
 0x8f2   :  { %v2256_v3 = vpop.f32.mrf.mxu0  ;;  %v2327_v18 = vpop.f32.mrf.mxu1 }
 0x8f3   :  { %v2334_v16 = vadd.f32 %v2256_v3, %v1962_v24  ;;  %v7114_v3 = vsub.s32 2, %v7105_v27  ;;  %v7118_v27 = vld [vmem:[#allocation24_spill] sm:$0xff] }
 0x8f4   :  { %v4424_v32 = vpop.f32.mrf.mxu1  ;;  %v2258_v46 = vpop.f32.mrf.mxu0 }
 0x8f5   :  { %v3667_v43 = vmul.f32 -1.442695, %v2334_v16  ;;  %v2341_v5 = vadd.f32 %v2258_v46, %v1964_v28  ;;  %v2354_v32 = vadd.f32 %v6320_v29, %v2327_v18  ;;  %v6325_v24 = vrot.slane %v3665_v9, %v7114_v3  ;;  %v7115_v18 = vld [vmem:[#allocation23_spill] sm:$0xff] }
 0x8f6   :  { %v7116_v9 = vld [vmem:[#allocation15_spill] sm:$0xff] }
 0x8f7   :  { %4794 = vpow2.f32 %v3667_v43  ;;  %v3668_v31 = vmul.f32 -1.442695, %v2341_v5  ;;  %v2075_v46 = vadd.f32 %v2074_v11, %v6325_v24  ;;  %v7117_v11 = vld [vmem:[#allocation17_spill] sm:$0xff] }
 0x8f9   :  { %4796 = vpow2.f32 %v3668_v31 }
 0x904   :  { %v4795_v22 = vpop.eup %4794 }
 0x905   :  { %v2338_v30 = vadd.f32 1.0, %v4795_v22 }
 0x906   :  { %v4797_v41 = vpop.eup %4796 }
 0x907   :  { %4798 = vrcp.f32 %v2338_v30  ;;  %v2345_v50 = vadd.f32 1.0, %v4797_v41  ;;  %v7119_v41 = vld [vmem:[#allocation16_spill] sm:$0xff] }
 0x909   :  { %4800 = vrcp.f32 %v2345_v50  ;;  %v7120_v50 = vld [vmem:[#allocation20_spill] sm:$0xff] }
 0x914   :  { %v4799_v25 = vpop.eup %4798 }
 0x915   :  { %v2355_v31 = vmul.f32 %v4799_v25, %v2354_v32  ;;  %v7121_v32 = vld [vmem:[#allocation33_spill] sm:$0xff] }
 0x916   :  { %v4801_v30 = vpop.eup %4800  ;;  %v1968_v3 = vadd.f32 %v7121_v32, %v7120_v50 }
 0x917   :  { %v2356_v22 = vadd.f32 %v2355_v31, %v2075_v46  ;;  %v2358_v16 = vsub.f32 1.0, %v4801_v30  ;;  %v2360_v43 = vmul.f32 0.0, %v4801_v30 }
 0x919   :  { %4802 = vtanh.f32 %v2356_v22 }
 0x926   :  { %v4803_v28 = vpop.eup %4802 }
 0x927   :  { %v2359_v5 = vmul.f32 %v4803_v28, %v2358_v16  ;;  %v7122_v28 = vld [vmem:[#allocation40_spill] sm:$0xff] }
 0x929   :  { %v6328_v8 = vadd.f32 %v2360_v43, %v2359_v5  ;;  %v7123_v5 = vld [vmem:[#allocation25_spill] sm:$0xff] }
 0x92a   :  { %v1970_v43 = vadd.f32 %v7123_v5, %v7122_v28 }
 0x92b   :  { %2430 = vmatmul.mubr.f32.vlgmr.msra.gmra.mxu0 %v6328_v8  ;;  %4458 = vmatmul.mubr.f32.vlgmr.msra.gmra.mxu1 %v6328_v8 }
 0x92c   :  { %2535 = vmatpush1.msra.mxu0 %v6027_v44  ;;  %4461 = vmatpush3.msra.mxu1 %v6119_v19 }
 0x92d   :  { %2536 = vmatprep.subr.mxu0 %v6030_v33  ;;  %4462 = vmatprep.subr.mxu1 %v7026_v42 }
 0x92e   :  { %2537 = vmatpush1.msra.mxu0 %v6033_v20  ;;  %4463 = vmatpush3.msra.mxu1 %v6121_v51 }
 0x92f   :  { %2538 = vmatprep.subr.mxu0 %v6036_v17  ;;  %4464 = vmatprep.subr.mxu1 %v7026_v42 }
 0x930   :  { %2539 = vmatpush1.msra.mxu0 %v6039_v48  ;;  %4465 = vmatpush3.msra.mxu1 %v6126_v7 }
 0x931   :  { %2540 = vmatprep.subr.mxu0 %v6042_v34  ;;  %4466 = vmatprep.subr.mxu1 %v7026_v42 }
 0x932   :  { %2541 = vmatpush1.msra.mxu0 %v6045_v56  ;;  %4467 = vmatpush3.msra.mxu1 %v6131_v10 }
 0x933   :  { %2542 = vmatprep.subr.mxu0 %v6048_v35  ;;  %4468 = vmatprep.subr.mxu1 %v7026_v42 }
 0x934   :  { %2543 = vmatpush1.msra.mxu0 %v6051_v26  ;;  %4469 = vmatpush3.msra.mxu1 %v6135_v12 }
 0x935   :  { %2544 = vmatprep.subr.mxu0 %v6054_v36  ;;  %4470 = vmatprep.subr.mxu1 %v7026_v42 }
 0x936   :  { %2545 = vmatpush1.msra.mxu0 %v6057_v37  ;;  %4471 = vmatpush3.msra.mxu1 %v6139_v13 }
 0x937   :  { %2546 = vmatprep.subr.mxu0 %v6060_v47  ;;  %4472 = vmatprep.subr.mxu1 %v7026_v42 }
 0x938   :  { %2547 = vmatpush1.msra.mxu0 %v6063_v38  ;;  %4473 = vmatpush3.msra.mxu1 %v6143_v14 }
 0x939   :  { %2548 = vmatprep.subr.mxu0 %v6066_v52  ;;  %4474 = vmatprep.subr.mxu1 %v7026_v42 }
 0x93a   :  { %2549 = vmatpush1.msra.mxu0 %v6069_v21  ;;  %4475 = vmatpush3.msra.mxu1 %v6147_v15 }
 0x93b   :  { %2550 = vmatprep.subr.mxu0 %v6072_v39  ;;  %4476 = vmatprep.subr.mxu1 %v7026_v42 }
 0x93c   :  { %2551 = vmatpush1.msra.mxu0 %v6075_v0  ;;  %4477 = vmatpush3.msra.mxu1 %v6151_v40 }
 0x93d   :  { %2552 = vmatprep.subr.mxu0 %v6078_v53  ;;  %4478 = vmatprep.subr.mxu1 %v7026_v42 }
 0x93e   :  { %2553 = vmatpush1.msra.mxu0 %v6081_v55  ;;  %4479 = vmatpush3.msra.mxu1 %v6155_v60 }
 0x93f   :  { %2554 = vmatprep.subr.mxu0 %v6084_v57  ;;  %4480 = vmatprep.subr.mxu1 %v7026_v42 }
 0x940   :  { %2555 = vmatpush1.msra.mxu0 %v6087_v58  ;;  %4481 = vmatpush3.msra.mxu1 %v6159_v54 }
 0x941   :  { %2556 = vmatprep.subr.mxu0 %v6090_v59  ;;  %4482 = vmatprep.subr.mxu1 %v7026_v42 }
 0x942   :  { %2557 = vmatpush1.msra.mxu0 %v6093_v61  ;;  %4483 = vmatpush3.msra.mxu1 %v6163_v23 }
 0x943   :  { %2558 = vmatprep.subr.mxu0 %v6096_v63  ;;  %4484 = vmatprep.subr.mxu1 %v7026_v42 }
 0x944   :  { %2559 = vmatpush1.msra.mxu0 %v6099_v1  ;;  %4485 = vmatpush3.msra.mxu1 %v6167_v45 }
 0x945   :  { %2560 = vmatprep.subr.mxu0 %v6102_v49  ;;  %4486 = vmatprep.subr.mxu1 %v7026_v42 }
 0x946   :  { %2561 = vmatpush1.msra.mxu0 %v6105_v2  ;;  %4487 = vmatpush3.msra.mxu1 %v6171_v62 }
 0x947   :  { %2562 = vmatprep.subr.mxu0 %v6108_v4  ;;  %4488 = vmatprep.subr.mxu1 %v7026_v42 }
 0x948   :  { %2563 = vmatpush1.msra.mxu0 %v6111_v6  ;;  %4489 = vmatpush3.msra.mxu1 %v7115_v18 }
 0x949   :  { %2564 = vmatprep.subr.mxu0 %v7116_v9  ;;  %4490 = vmatprep.subr.mxu1 %v7026_v42 }
 0x94a   :  { %2565 = vmatpush1.msra.mxu0 %v7117_v11  ;;  %2598 = vmatprep.mubr.f32.mxu0 %v7026_v42 }
 0x94b   :  { %4491 = vmatpush3.msra.mxu1 %v7118_v27  ;;  %4492 = vmatprep.mubr.msk.f32.mxu1 %vm5044_vm0, %v7026_v42 }
 0x94c   :  { %2703 = vmatprep.subr.mxu0 %v7119_v41  ;;  %4495 = vmatprep.subr.mxu1 %v7026_v42 }
 0x9eb   :  { %v2431_v25 = vpop.f32.mrf.mxu0  ;;  %v2502_v46 = vpop.f32.mrf.mxu1 }
 0x9ec   :  { %v2509_v31 = vadd.f32 %v2431_v25, %v1968_v3  ;;  %v2523_v32 = vadd.f32 %v6320_v29, %v2502_v46  ;;  %v7124_v3 = vld [vmem:[#allocation35_spill] sm:$0xff]  ;;  %v7130_v46 = vld [vmem:[#allocation16_spill] sm:$0xff] }
 0x9ed   :  { %v4459_v22 = vpop.f32.mrf.mxu1  ;;  %v2433_v16 = vpop.f32.mrf.mxu0  ;;  %v2080_v25 = vadd.f32 %v7124_v3, %v6325_v24 }
 0x9ee   :  { %v3670_v30 = vmul.f32 -1.442695, %v2509_v31  ;;  %v2516_v27 = vadd.f32 %v2433_v16, %v1970_v43  ;;  %v7131_v43 = vld [vmem:[#allocation20_spill] sm:$0xff] }
 0x9f0   :  { %4804 = vpow2.f32 %v3670_v30  ;;  %v3671_v11 = vmul.f32 -1.442695, %v2516_v27 }
 0x9f2   :  { %4806 = vpow2.f32 %v3671_v11 }
 0x9fd   :  { %v4805_v9 = vpop.eup %4804 }
 0x9fe   :  { %v2513_v41 = vadd.f32 1.0, %v4805_v9 }
 0x9ff   :  { %v4807_v18 = vpop.eup %4806 }
 0xa00   :  { %4808 = vrcp.f32 %v2513_v41  ;;  %v2520_v6 = vadd.f32 1.0, %v4807_v18  ;;  %v7127_v18 = vld [vmem:[#allocation15_spill] sm:$0xff]  ;;  %v7128_v41 = vld [vmem:[#allocation17_spill] sm:$0xff] }
 0xa02   :  { %4810 = vrcp.f32 %v2520_v6  ;;  %v7125_v6 = vld [vmem:[#allocation14_spill] sm:$0xff] }
 0xa0d   :  { %v4809_v50 = vpop.eup %4808 }
 0xa0e   :  { %v2524_v31 = vmul.f32 %v4809_v50, %v2523_v32  ;;  %v7129_v50 = vld [vmem:[#allocation24_spill] sm:$0xff]  ;;  %v7132_v32 = vld [vmem:[#allocation26_spill] sm:$0xff] }
 0xa0f   :  { %v4811_v5 = vpop.eup %4810  ;;  %v1974_v3 = vadd.f32 %v7132_v32, %v7131_v43 }
 0xa10   :  { %v2525_v22 = vadd.f32 %v2524_v31, %v2080_v25  ;;  %v2527_v30 = vsub.f32 1.0, %v4811_v5  ;;  %v2529_v11 = vmul.f32 %v4811_v5, %v6328_v8  ;;  %v7126_v8 = vld [vmem:[#allocation23_spill] sm:$0xff] }
 0xa12   :  { %4812 = vtanh.f32 %v2525_v22 }
 0xa1f   :  { %v4813_v16 = vpop.eup %4812 }
 0xa20   :  { %v2528_v27 = vmul.f32 %v4813_v16, %v2527_v30 }
 0xa22   :  { %v6407_v9 = vadd.f32 %v2529_v11, %v2528_v27  ;;  %v7133_v27 = vld [vmem:[#allocation36_spill] sm:$0xff] }
 0xa23   :  { %v1976_v11 = vadd.f32 %v7133_v27, %v7122_v28 }
 0xa24   :  { %2599 = vmatmul.mubr.f32.vlgmr.msra.gmra.mxu0 %v6407_v9  ;;  %4493 = vmatmul.mubr.f32.vlgmr.msra.gmra.mxu1 %v6407_v9 }
 0xa25   :  { %2704 = vmatpush1.msra.mxu0 %v6027_v44  ;;  %4496 = vmatpush3.msra.mxu1 %v6119_v19 }
 0xa26   :  { %2705 = vmatprep.subr.mxu0 %v6030_v33  ;;  %4497 = vmatprep.subr.mxu1 %v7026_v42 }
 0xa27   :  { %2706 = vmatpush1.msra.mxu0 %v6033_v20  ;;  %4498 = vmatpush3.msra.mxu1 %v6121_v51 }
 0xa28   :  { %2707 = vmatprep.subr.mxu0 %v6036_v17  ;;  %4499 = vmatprep.subr.mxu1 %v7026_v42 }
 0xa29   :  { %2708 = vmatpush1.msra.mxu0 %v6039_v48  ;;  %4500 = vmatpush3.msra.mxu1 %v6126_v7 }
 0xa2a   :  { %2709 = vmatprep.subr.mxu0 %v6042_v34  ;;  %4501 = vmatprep.subr.mxu1 %v7026_v42 }
 0xa2b   :  { %2710 = vmatpush1.msra.mxu0 %v6045_v56  ;;  %4502 = vmatpush3.msra.mxu1 %v6131_v10 }
 0xa2c   :  { %2711 = vmatprep.subr.mxu0 %v6048_v35  ;;  %4503 = vmatprep.subr.mxu1 %v7026_v42 }
 0xa2d   :  { %2712 = vmatpush1.msra.mxu0 %v6051_v26  ;;  %4504 = vmatpush3.msra.mxu1 %v6135_v12 }
 0xa2e   :  { %2713 = vmatprep.subr.mxu0 %v6054_v36  ;;  %4505 = vmatprep.subr.mxu1 %v7026_v42 }
 0xa2f   :  { %2714 = vmatpush1.msra.mxu0 %v6057_v37  ;;  %4506 = vmatpush3.msra.mxu1 %v6139_v13 }
 0xa30   :  { %2715 = vmatprep.subr.mxu0 %v6060_v47  ;;  %4507 = vmatprep.subr.mxu1 %v7026_v42 }
 0xa31   :  { %2716 = vmatpush1.msra.mxu0 %v6063_v38  ;;  %4508 = vmatpush3.msra.mxu1 %v6143_v14 }
 0xa32   :  { %2717 = vmatprep.subr.mxu0 %v6066_v52  ;;  %4509 = vmatprep.subr.mxu1 %v7026_v42 }
 0xa33   :  { %2718 = vmatpush1.msra.mxu0 %v6069_v21  ;;  %4510 = vmatpush3.msra.mxu1 %v6147_v15 }
 0xa34   :  { %2719 = vmatprep.subr.mxu0 %v6072_v39  ;;  %4511 = vmatprep.subr.mxu1 %v7026_v42 }
 0xa35   :  { %2720 = vmatpush1.msra.mxu0 %v6075_v0  ;;  %4512 = vmatpush3.msra.mxu1 %v6151_v40 }
 0xa36   :  { %2721 = vmatprep.subr.mxu0 %v6078_v53  ;;  %4513 = vmatprep.subr.mxu1 %v7026_v42 }
 0xa37   :  { %2722 = vmatpush1.msra.mxu0 %v6081_v55  ;;  %4514 = vmatpush3.msra.mxu1 %v6155_v60 }
 0xa38   :  { %2723 = vmatprep.subr.mxu0 %v6084_v57  ;;  %4515 = vmatprep.subr.mxu1 %v7026_v42 }
 0xa39   :  { %2724 = vmatpush1.msra.mxu0 %v6087_v58  ;;  %4516 = vmatpush3.msra.mxu1 %v6159_v54 }
 0xa3a   :  { %2725 = vmatprep.subr.mxu0 %v6090_v59  ;;  %4517 = vmatprep.subr.mxu1 %v7026_v42 }
 0xa3b   :  { %2726 = vmatpush1.msra.mxu0 %v6093_v61  ;;  %4518 = vmatpush3.msra.mxu1 %v6163_v23 }
 0xa3c   :  { %2727 = vmatprep.subr.mxu0 %v6096_v63  ;;  %4519 = vmatprep.subr.mxu1 %v7026_v42 }
 0xa3d   :  { %2728 = vmatpush1.msra.mxu0 %v6099_v1  ;;  %4520 = vmatpush3.msra.mxu1 %v6167_v45 }
 0xa3e   :  { %2729 = vmatprep.subr.mxu0 %v6102_v49  ;;  %4521 = vmatprep.subr.mxu1 %v7026_v42 }
 0xa3f   :  { %2730 = vmatpush1.msra.mxu0 %v6105_v2  ;;  %4522 = vmatpush3.msra.mxu1 %v6171_v62 }
 0xa40   :  { %2731 = vmatprep.subr.mxu0 %v6108_v4  ;;  %4523 = vmatprep.subr.mxu1 %v7026_v42 }
 0xa41   :  { %2732 = vmatpush1.msra.mxu0 %v7125_v6  ;;  %4524 = vmatpush3.msra.mxu1 %v7126_v8 }
 0xa42   :  { %2733 = vmatprep.subr.mxu0 %v7127_v18  ;;  %4525 = vmatprep.subr.mxu1 %v7026_v42 }
 0xa43   :  { %2734 = vmatpush1.msra.mxu0 %v7128_v41  ;;  %2767 = vmatprep.mubr.f32.mxu0 %v7026_v42 }
 0xa44   :  { %4526 = vmatpush3.msra.mxu1 %v7129_v50  ;;  %4527 = vmatprep.mubr.msk.f32.mxu1 %vm5044_vm0, %v7026_v42 }
 0xa45   :  { %2872 = vmatprep.subr.mxu0 %v7130_v46  ;;  %4530 = vmatprep.subr.mxu1 %v7026_v42 }
 0xae4   :  { %v2600_v25 = vpop.f32.mrf.mxu0  ;;  %v2671_v31 = vpop.f32.mrf.mxu1 }
 0xae5   :  { %v2678_v22 = vadd.f32 %v2600_v25, %v1974_v3  ;;  %v2692_v32 = vadd.f32 %v6320_v29, %v2671_v31  ;;  %v7134_v3 = vld [vmem:[#allocation29_spill] sm:$0xff]  ;;  %v6587_v31 = vld [vmem:[#allocation7 + $0x2b8] sm:$0xff] }
 0xae6   :  { %v4494_v5 = vpop.f32.mrf.mxu1  ;;  %v2602_v16 = vpop.f32.mrf.mxu0  ;;  %v2085_v25 = vadd.f32 %v7134_v3, %v6325_v24  ;;  %v6619_v3 = vld [vmem:[#allocation7 + $0x258] sm:$0xff] }
 0xae7   :  { %v3672_v30 = vmul.f32 -1.442695, %v2678_v22  ;;  %v2685_v50 = vadd.f32 %v2602_v16, %v1976_v11  ;;  %v6595_v11 = vld [vmem:[#allocation7 + $0x2a0] sm:$0xff] }
 0xae9   :  { %4814 = vpow2.f32 %v3672_v30  ;;  %v3673_v41 = vmul.f32 -1.442695, %v2685_v50 }
 0xaeb   :  { %4816 = vpow2.f32 %v3673_v41 }
 0xaf6   :  { %v4815_v18 = vpop.eup %4814 }
 0xaf7   :  { %v2682_v46 = vadd.f32 1.0, %v4815_v18 }
 0xaf8   :  { %v4817_v8 = vpop.eup %4816 }
 0xaf9   :  { %4818 = vrcp.f32 %v2682_v46  ;;  %v2689_v6 = vadd.f32 1.0, %v4817_v8  ;;  %v6579_v8 = vld [vmem:[#allocation7 + $0x2d0] sm:$0xff]  ;;  %v6603_v46 = vld [vmem:[#allocation7 + $0x288] sm:$0xff] }
 0xafb   :  { %4820 = vrcp.f32 %v2689_v6  ;;  %v6575_v6 = vld [vmem:[#allocation7 + $0x2d8] sm:$0xff] }
 0xb06   :  { %v4819_v43 = vpop.eup %4818 }
 0xb07   :  { %v2693_v22 = vmul.f32 %v4819_v43, %v2692_v32  ;;  %v6583_v43 = vld [vmem:[#allocation7 + $0x2c0] sm:$0xff]  ;;  %v6611_v32 = vld [vmem:[#allocation7 + $0x270] sm:$0xff] }
 0xb08   :  { %v4821_v27 = vpop.eup %4820 }
 0xb09   :  { %v2694_v5 = vadd.f32 %v2693_v22, %v2085_v25  ;;  %v2696_v30 = vsub.f32 1.0, %v4821_v27  ;;  %v2698_v41 = vmul.f32 %v4821_v27, %v6407_v9  ;;  %v6571_v9 = vld [vmem:[#allocation7 + $0x2e8] sm:$0xff]  ;;  %v6627_v25 = vld [vmem:[#allocation7 + $0x240] sm:$0xff]  ;;  %v6633_v22 = vld [vmem:[#allocation7 + $0x230] sm:$0xff] }
 0xb0a   :  { %v6643_v27 = vld [vmem:[#allocation7 + $0x218] sm:$0xff] }
 0xb0b   :  { %4822 = vtanh.f32 %v2694_v5  ;;  %v6640_v5 = vld [vmem:[#allocation7 + $0x238] sm:$0xff] }
 0xb18   :  { %v4823_v16 = vpop.eup %4822 }
 0xb19   :  { %v2697_v50 = vmul.f32 %v4823_v16, %v2696_v30  ;;  %v6647_v30 = vld [vmem:[#allocation7 + $0x210] sm:$0xff]  ;;  %v6650_v16 = vld [vmem:[#allocation7 + $0x220] sm:$0xff] }
 0xb1b   :  { %v6486_v18 = vadd.f32 %v2698_v41, %v2697_v50  ;;  %v6653_v50 = vld [vmem:[#allocation7 + $0x200] sm:$0xff]  ;;  %v6657_v41 = vld [vmem:[#allocation7 + $0x1f8] sm:$0xff] }
 0xb1d   :  { %2768 = vmatmul.mubr.f32.vlgmr.msra.gmra.mxu0 %v6486_v18  ;;  %4528 = vmatmul.mubr.f32.vlgmr.msra.gmra.mxu1 %v6486_v18 }
 0xb1e   :  { %2873 = vmatpush1.msra.mxu0 %v6027_v44  ;;  %4531 = vmatpush3.msra.mxu1 %v6119_v19  ;;  %v7135_v44 = vld [vmem:[#allocation14_spill] sm:$0xff] }
 0xb1f   :  { %2874 = vmatprep.subr.mxu0 %v6030_v33  ;;  %4532 = vmatprep.subr.mxu1 %v7026_v42  ;;  %v7136_v33 = vld [vmem:[#allocation23_spill] sm:$0xff] }
 0xb20   :  { %2875 = vmatpush1.msra.mxu0 %v6033_v20  ;;  %4533 = vmatpush3.msra.mxu1 %v6121_v51  ;;  %v7137_v20 = vld [vmem:[#allocation15_spill] sm:$0xff] }
 0xb21   :  { %2876 = vmatprep.subr.mxu0 %v6036_v17  ;;  %4534 = vmatprep.subr.mxu1 %v7026_v42  ;;  %v7138_v17 = vld [vmem:[#allocation17_spill] sm:$0xff] }
 0xb22   :  { %2877 = vmatpush1.msra.mxu0 %v6039_v48  ;;  %4535 = vmatpush3.msra.mxu1 %v6126_v7  ;;  %v7139_v48 = vld [vmem:[#allocation24_spill] sm:$0xff] }
 0xb23   :  { %2878 = vmatprep.subr.mxu0 %v6042_v34  ;;  %4536 = vmatprep.subr.mxu1 %v7026_v42  ;;  %v6555_v34 = vld [vmem:[#allocation7 + $0x2f0] sm:$0xff] }
 0xb24   :  { %2879 = vmatpush1.msra.mxu0 %v6045_v56  ;;  %4537 = vmatpush3.msra.mxu1 %v6131_v10  ;;  %v7140_v56 = vld [vmem:[#allocation20_spill] sm:$0xff] }
 0xb25   :  { %2880 = vmatprep.subr.mxu0 %v6048_v35  ;;  %4538 = vmatprep.subr.mxu1 %v7026_v42  ;;  %v7141_v35 = vld [vmem:[#allocation27_spill] sm:$0xff] }
 0xb26   :  { %2881 = vmatpush1.msra.mxu0 %v6051_v26  ;;  %4539 = vmatpush3.msra.mxu1 %v6135_v12  ;;  %v1980_v26 = vadd.f32 %v7141_v35, %v7140_v56  ;;  %v6680_v35 = vld [vmem:[#allocation7 + $0x1d8] sm:$0xff] }
 0xb27   :  { %2882 = vmatprep.subr.mxu0 %v6054_v36  ;;  %4540 = vmatprep.subr.mxu1 %v7026_v42 }
 0xb28   :  { %2883 = vmatpush1.msra.mxu0 %v6057_v37  ;;  %4541 = vmatpush3.msra.mxu1 %v6139_v13 }
 0xb29   :  { %2884 = vmatprep.subr.mxu0 %v6060_v47  ;;  %4542 = vmatprep.subr.mxu1 %v7026_v42 }
 0xb2a   :  { %2885 = vmatpush1.msra.mxu0 %v6063_v38  ;;  %4543 = vmatpush3.msra.mxu1 %v6143_v14 }
 0xb2b   :  { %2886 = vmatprep.subr.mxu0 %v6066_v52  ;;  %4544 = vmatprep.subr.mxu1 %v7026_v42 }
 0xb2c   :  { %2887 = vmatpush1.msra.mxu0 %v6069_v21  ;;  %4545 = vmatpush3.msra.mxu1 %v6147_v15 }
 0xb2d   :  { %2888 = vmatprep.subr.mxu0 %v6072_v39  ;;  %4546 = vmatprep.subr.mxu1 %v7026_v42  ;;  %v7142_v39 = vld [vmem:[#allocation28_spill] sm:$0xff] }
 0xb2e   :  { %2889 = vmatpush1.msra.mxu0 %v6075_v0  ;;  %4547 = vmatpush3.msra.mxu1 %v6151_v40  ;;  %v1982_v0 = vadd.f32 %v7142_v39, %v7122_v28  ;;  %v6707_v39 = vld [vmem:[#allocation7 + $0x180] sm:$0xff] }
 0xb2f   :  { %2890 = vmatprep.subr.mxu0 %v6078_v53  ;;  %4548 = vmatprep.subr.mxu1 %v7026_v42  ;;  %7147 = vst [vmem:[#allocation35_spill] sm:$0xff] %v6707_v39 }
 0xb30   :  { %2891 = vmatpush1.msra.mxu0 %v6081_v55  ;;  %4549 = vmatpush3.msra.mxu1 %v6155_v60 }
 0xb31   :  { %2892 = vmatprep.subr.mxu0 %v6084_v57  ;;  %4550 = vmatprep.subr.mxu1 %v7026_v42 }
 0xb32   :  { %2893 = vmatpush1.msra.mxu0 %v6087_v58  ;;  %4551 = vmatpush3.msra.mxu1 %v6159_v54 }
 0xb33   :  { %2894 = vmatprep.subr.mxu0 %v6090_v59  ;;  %4552 = vmatprep.subr.mxu1 %v7026_v42 }
 0xb34   :  { %2895 = vmatpush1.msra.mxu0 %v6093_v61  ;;  %4553 = vmatpush3.msra.mxu1 %v6163_v23 }
 0xb35   :  { %2896 = vmatprep.subr.mxu0 %v6096_v63  ;;  %4554 = vmatprep.subr.mxu1 %v7026_v42 }
 0xb36   :  { %2897 = vmatpush1.msra.mxu0 %v6099_v1  ;;  %4555 = vmatpush3.msra.mxu1 %v6167_v45 }
 0xb37   :  { %2898 = vmatprep.subr.mxu0 %v6102_v49  ;;  %4556 = vmatprep.subr.mxu1 %v7026_v42  ;;  %v7143_v49 = vld [vmem:[#allocation21_spill] sm:$0xff] }
 0xb38   :  { %2899 = vmatpush1.msra.mxu0 %v6105_v2  ;;  %4557 = vmatpush3.msra.mxu1 %v6171_v62  ;;  %v2090_v2 = vadd.f32 %v7143_v49, %v6325_v24  ;;  %v7150_v49 = vld [vmem:[#allocation12_spill] sm:$0xff] }
 0xb39   :  { %2900 = vmatprep.subr.mxu0 %v6108_v4  ;;  %4558 = vmatprep.subr.mxu1 %v7026_v42 }
 0xb3a   :  { %2901 = vmatpush1.msra.mxu0 %v7135_v44  ;;  %4559 = vmatpush3.msra.mxu1 %v7136_v33  ;;  %v6663_v44 = vld [vmem:[#allocation7 + $0x1e8] sm:$0xff]  ;;  %v6667_v33 = vld [vmem:[#allocation7 + $0x1e0] sm:$0xff] }
 0xb3b   :  { %2902 = vmatprep.subr.mxu0 %v7137_v20  ;;  %4560 = vmatprep.subr.mxu1 %v7026_v42  ;;  %v6670_v20 = vld [vmem:[#allocation7 + $0x1f0] sm:$0xff] }
 0xb3c   :  { %2903 = vmatpush1.msra.mxu0 %v7138_v17  ;;  %2936 = vmatprep.mubr.f32.mxu0 %v7026_v42  ;;  %v6673_v17 = vld [vmem:[#allocation7 + $0x1d0] sm:$0xff] }
 0xb3d   :  { %4561 = vmatpush3.msra.mxu1 %v7139_v48  ;;  %4562 = vmatprep.mubr.msk.f32.mxu1 %vm5044_vm0, %v7026_v42  ;;  %v6677_v48 = vld [vmem:[#allocation7 + $0x1c8] sm:$0xff] }
 0xb3e   :  { %3041 = vmatprep.subr.mxu0 %v6555_v34  ;;  %4565 = vmatprep.subr.mxu1 %v7026_v42 }
 0xbdd   :  { %v2769_v36 = vpop.f32.mrf.mxu0  ;;  %v2840_v37 = vpop.f32.mrf.mxu1 }
 0xbde   :  { %v2847_v47 = vadd.f32 %v2769_v36, %v1980_v26  ;;  %v2861_v63 = vadd.f32 %v6320_v29, %v2840_v37  ;;  %v6683_v26 = vld [vmem:[#allocation7 + $0x1b8] sm:$0xff]  ;;  %v6687_v36 = vld [vmem:[#allocation7 + $0x1b0] sm:$0xff]  ;;  %v6690_v37 = vld [vmem:[#allocation7 + $0x1c0] sm:$0xff] }
 0xbdf   :  { %v4529_v38 = vpop.f32.mrf.mxu1  ;;  %v2771_v21 = vpop.f32.mrf.mxu0 }
 0xbe0   :  { %v3674_v52 = vmul.f32 -1.442695, %v2847_v47  ;;  %v2854_v53 = vadd.f32 %v2771_v21, %v1982_v0  ;;  %v6693_v47 = vld [vmem:[#allocation7 + $0x1a0] sm:$0xff]  ;;  %v6697_v38 = vld [vmem:[#allocation7 + $0x198] sm:$0xff]  ;;  %v6703_v21 = vld [vmem:[#allocation7 + $0x188] sm:$0xff] }
 0xbe1   :  { %7144 = vst [vmem:[#allocation33_spill] sm:$0xff] %v6697_v38  ;;  %7146 = vst [vmem:[#allocation25_spill] sm:$0xff] %v6703_v21  ;;  %v6711_v0 = vld [vmem:[#allocation7 + $0x190] sm:$0xff] }
 0xbe2   :  { %4824 = vpow2.f32 %v3674_v52  ;;  %v3675_v55 = vmul.f32 -1.442695, %v2854_v53  ;;  %v6700_v52 = vld [vmem:[#allocation7 + $0x1a8] sm:$0xff]  ;;  %7148 = vst [vmem:[#allocation16_spill] sm:$0xff] %v6711_v0  ;;  %v7149_v53 = vld [vmem:[#allocation22_spill] sm:$0xff] }
 0xbe3   :  { %7145 = vst [vmem:[#allocation40_spill] sm:$0xff] %v6700_v52 }
 0xbe4   :  { %4826 = vpow2.f32 %v3675_v55  ;;  %v1986_v55 = vadd.f32 %v7149_v53, %v7140_v56 }
 0xbef   :  { %v4825_v57 = vpop.eup %4824 }
 0xbf0   :  { %v2851_v58 = vadd.f32 1.0, %v4825_v57 }
 0xbf1   :  { %v4827_v59 = vpop.eup %4826 }
 0xbf2   :  { %4828 = vrcp.f32 %v2851_v58  ;;  %v2858_v61 = vadd.f32 1.0, %v4827_v59 }
 0xbf4   :  { %4830 = vrcp.f32 %v2858_v61 }
 0xbff   :  { %v4829_v1 = vpop.eup %4828 }
 0xc00   :  { %v2862_v4 = vmul.f32 %v4829_v1, %v2861_v63 }
 0xc01   :  { %v4831_v40 = vpop.eup %4830 }
 0xc02   :  { %v2863_v15 = vadd.f32 %v2862_v4, %v2090_v2  ;;  %v2865_v60 = vsub.f32 1.0, %v4831_v40  ;;  %v2867_v45 = vmul.f32 %v4831_v40, %v6486_v18  ;;  %v6660_v18 = vld [vmem:[#allocation7 + $0x208] sm:$0xff]  ;;  %v1988_v2 = vadd.f32 %v7150_v49, %v7122_v28 }
 0xc04   :  { %4832 = vtanh.f32 %v2863_v15 }
 0xc11   :  { %v4833_v54 = vpop.eup %4832 }
 0xc12   :  { %v2866_v23 = vmul.f32 %v4833_v54, %v2865_v60 }
 0xc14   :  { %v6567_v62 = vadd.f32 %v2867_v45, %v2866_v23 }
 0xc16   :  { %2937 = vmatmul.mubr.f32.vlgmr.msra.gmra.mxu0 %v6567_v62  ;;  %4563 = vmatmul.mubr.f32.vlgmr.msra.gmra.mxu1 %v6567_v62 }
 0xc17   :  { %3042 = vmatpush1.msra.mxu0 %v6571_v9  ;;  %4566 = vmatpush3.msra.mxu1 %v6119_v19  ;;  %v6591_v19 = vld [vmem:[#allocation7 + $0x2a8] sm:$0xff] }
 0xc18   :  { %3043 = vmatprep.subr.mxu0 %v6575_v6  ;;  %4567 = vmatprep.subr.mxu1 %v7026_v42 }
 0xc19   :  { %3044 = vmatpush1.msra.mxu0 %v6579_v8  ;;  %4568 = vmatpush3.msra.mxu1 %v6121_v51  ;;  %v6599_v51 = vld [vmem:[#allocation7 + $0x290] sm:$0xff] }
 0xc1a   :  { %3045 = vmatprep.subr.mxu0 %v6583_v43  ;;  %4569 = vmatprep.subr.mxu1 %v7026_v42 }
 0xc1b   :  { %3046 = vmatpush1.msra.mxu0 %v6587_v31  ;;  %4570 = vmatpush3.msra.mxu1 %v6126_v7  ;;  %v6607_v7 = vld [vmem:[#allocation7 + $0x278] sm:$0xff] }
 0xc1c   :  { %3047 = vmatprep.subr.mxu0 %v6591_v19  ;;  %4571 = vmatprep.subr.mxu1 %v7026_v42 }
 0xc1d   :  { %3048 = vmatpush1.msra.mxu0 %v6595_v11  ;;  %4572 = vmatpush3.msra.mxu1 %v6131_v10  ;;  %v6615_v10 = vld [vmem:[#allocation7 + $0x260] sm:$0xff] }
 0xc1e   :  { %3049 = vmatprep.subr.mxu0 %v6599_v51  ;;  %4573 = vmatprep.subr.mxu1 %v7026_v42 }
 0xc1f   :  { %3050 = vmatpush1.msra.mxu0 %v6603_v46  ;;  %4574 = vmatpush3.msra.mxu1 %v6135_v12  ;;  %v6623_v12 = vld [vmem:[#allocation7 + $0x248] sm:$0xff] }
 0xc20   :  { %3051 = vmatprep.subr.mxu0 %v6607_v7  ;;  %4575 = vmatprep.subr.mxu1 %v7026_v42 }
 0xc21   :  { %3052 = vmatpush1.msra.mxu0 %v6611_v32  ;;  %4576 = vmatpush3.msra.mxu1 %v6139_v13  ;;  %v6630_v13 = vld [vmem:[#allocation7 + $0x250] sm:$0xff] }
 0xc22   :  { %3053 = vmatprep.subr.mxu0 %v6615_v10  ;;  %4577 = vmatprep.subr.mxu1 %v7026_v42 }
 0xc23   :  { %3054 = vmatpush1.msra.mxu0 %v6619_v3  ;;  %4578 = vmatpush3.msra.mxu1 %v6143_v14  ;;  %v6637_v14 = vld [vmem:[#allocation7 + $0x228] sm:$0xff] }
 0xc24   :  { %3055 = vmatprep.subr.mxu0 %v6623_v12  ;;  %4579 = vmatprep.subr.mxu1 %v7026_v42 }
 0xc25   :  { %3056 = vmatpush1.msra.mxu0 %v6627_v25  ;;  %4580 = vmatpush3.msra.mxu1 %v6630_v13 }
 0xc26   :  { %3057 = vmatprep.subr.mxu0 %v6633_v22  ;;  %4581 = vmatprep.subr.mxu1 %v7026_v42 }
 0xc27   :  { %3058 = vmatpush1.msra.mxu0 %v6637_v14  ;;  %4582 = vmatpush3.msra.mxu1 %v6640_v5 }
 0xc28   :  { %3059 = vmatprep.subr.mxu0 %v6643_v27  ;;  %4583 = vmatprep.subr.mxu1 %v7026_v42 }
 0xc29   :  { %3060 = vmatpush1.msra.mxu0 %v6647_v30  ;;  %4584 = vmatpush3.msra.mxu1 %v6650_v16 }
 0xc2a   :  { %3061 = vmatprep.subr.mxu0 %v6653_v50  ;;  %4585 = vmatprep.subr.mxu1 %v7026_v42 }
 0xc2b   :  { %3062 = vmatpush1.msra.mxu0 %v6657_v41  ;;  %4586 = vmatpush3.msra.mxu1 %v6660_v18 }
 0xc2c   :  { %3063 = vmatprep.subr.mxu0 %v6663_v44  ;;  %4587 = vmatprep.subr.mxu1 %v7026_v42 }
 0xc2d   :  { %3064 = vmatpush1.msra.mxu0 %v6667_v33  ;;  %4588 = vmatpush3.msra.mxu1 %v6670_v20 }
 0xc2e   :  { %3065 = vmatprep.subr.mxu0 %v6673_v17  ;;  %4589 = vmatprep.subr.mxu1 %v7026_v42 }
 0xc2f   :  { %3066 = vmatpush1.msra.mxu0 %v6677_v48  ;;  %4590 = vmatpush3.msra.mxu1 %v6680_v35 }
 0xc30   :  { %3067 = vmatprep.subr.mxu0 %v6683_v26  ;;  %4591 = vmatprep.subr.mxu1 %v7026_v42 }
 0xc31   :  { %3068 = vmatpush1.msra.mxu0 %v6687_v36  ;;  %4592 = vmatpush3.msra.mxu1 %v6690_v37 }
 0xc32   :  { %3069 = vmatprep.subr.mxu0 %v6693_v47  ;;  %4593 = vmatprep.subr.mxu1 %v7026_v42 }
 0xc33   :  { %3070 = vmatpush1.msra.mxu0 %v6697_v38  ;;  %4594 = vmatpush3.msra.mxu1 %v6700_v52 }
 0xc34   :  { %3071 = vmatprep.subr.mxu0 %v6703_v21  ;;  %4595 = vmatprep.subr.mxu1 %v7026_v42 }
 0xc35   :  { %3072 = vmatpush1.msra.mxu0 %v6707_v39  ;;  %3105 = vmatprep.mubr.f32.mxu0 %v7026_v42 }
 0xc36   :  { %4596 = vmatpush3.msra.mxu1 %v6711_v0  ;;  %4597 = vmatprep.mubr.msk.f32.mxu1 %vm5044_vm0, %v7026_v42 }
 0xc37   :  { %3210 = vmatprep.subr.mxu0 %v6555_v34  ;;  %4600 = vmatprep.subr.mxu1 %v7026_v42 }
 0xcd6   :  { %v2938_v57 = vpop.f32.mrf.mxu0  ;;  %v3009_v58 = vpop.f32.mrf.mxu1 }
 0xcd7   :  { %v3016_v59 = vadd.f32 %v2938_v57, %v1986_v55  ;;  %v3030_v45 = vadd.f32 %v6320_v29, %v3009_v58  ;;  %v7151_v55 = vld [vmem:[#allocation13_spill] sm:$0xff]  ;;  %v6731_v58 = vld [vmem:[#allocation7 + $0x2f8] sm:$0xff] }
 0xcd8   :  { %v4564_v61 = vpop.f32.mrf.mxu1  ;;  %v2940_v1 = vpop.f32.mrf.mxu0  ;;  %v2095_v57 = vadd.f32 %v7151_v55, %v6325_v24 }
 0xcd9   :  { %v3676_v63 = vmul.f32 -1.442695, %v3016_v59  ;;  %v3023_v4 = vadd.f32 %v2940_v1, %v1988_v2 }
 0xcdb   :  { %4834 = vpow2.f32 %v3676_v63  ;;  %v3677_v15 = vmul.f32 -1.442695, %v3023_v4 }
 0xcdd   :  { %4836 = vpow2.f32 %v3677_v15 }
 0xce8   :  { %v4835_v40 = vpop.eup %4834 }
 0xce9   :  { %v3020_v60 = vadd.f32 1.0, %v4835_v40  ;;  %v6737_v40 = vld [vmem:[#allocation7 + $0x2e0] sm:$0xff] }
 0xcea   :  { %v4837_v54 = vpop.eup %4836 }
 0xceb   :  { %4838 = vrcp.f32 %v3020_v60  ;;  %v3027_v23 = vadd.f32 1.0, %v4837_v54  ;;  %v6749_v60 = vld [vmem:[#allocation7 + $0x2b0] sm:$0xff]  ;;  %v6755_v54 = vld [vmem:[#allocation7 + $0x298] sm:$0xff] }
 0xced   :  { %4840 = vrcp.f32 %v3027_v23  ;;  %v6761_v23 = vld [vmem:[#allocation7 + $0x280] sm:$0xff] }
 0xcf8   :  { %v4839_v53 = vpop.eup %4838 }
 0xcf9   :  { %v3031_v59 = vmul.f32 %v4839_v53, %v3030_v45  ;;  %v6767_v45 = vld [vmem:[#allocation7 + $0x268] sm:$0xff]  ;;  %v7152_v53 = vld [vmem:[#allocation34_spill] sm:$0xff] }
 0xcfa   :  { %v4841_v49 = vpop.eup %4840  ;;  %v1992_v55 = vadd.f32 %v7152_v53, %v7140_v56 }
 0xcfb   :  { %v3032_v61 = vadd.f32 %v3031_v59, %v2095_v57  ;;  %v3034_v63 = vsub.f32 1.0, %v4841_v49  ;;  %v3036_v4 = vmul.f32 %v4841_v49, %v6567_v62  ;;  %v6743_v62 = vld [vmem:[#allocation7 + $0x2c8] sm:$0xff] }
 0xcfd   :  { %4842 = vtanh.f32 %v3032_v61 }
 0xd0a   :  { %v4843_v1 = vpop.eup %4842 }
 0xd0b   :  { %v3035_v2 = vmul.f32 %v4843_v1, %v3034_v63 }
 0xd0d   :  { %v6726_v15 = vadd.f32 %v3036_v4, %v3035_v2  ;;  %v7153_v2 = vld [vmem:[#allocation30_spill] sm:$0xff] }
 0xd0e   :  { %v1994_v4 = vadd.f32 %v7153_v2, %v7122_v28 }
 0xd0f   :  { %3106 = vmatmul.mubr.f32.vlgmr.msra.gmra.mxu0 %v6726_v15  ;;  %4598 = vmatmul.mubr.f32.vlgmr.msra.gmra.mxu1 %v6726_v15 }
 0xd10   :  { %3211 = vmatpush1.msra.mxu0 %v6571_v9  ;;  %4601 = vmatpush3.msra.mxu1 %v6731_v58 }
 0xd11   :  { %3212 = vmatprep.subr.mxu0 %v6575_v6  ;;  %4602 = vmatprep.subr.mxu1 %v7026_v42 }
 0xd12   :  { %3213 = vmatpush1.msra.mxu0 %v6579_v8  ;;  %4603 = vmatpush3.msra.mxu1 %v6737_v40 }
 0xd13   :  { %3214 = vmatprep.subr.mxu0 %v6583_v43  ;;  %4604 = vmatprep.subr.mxu1 %v7026_v42 }
 0xd14   :  { %3215 = vmatpush1.msra.mxu0 %v6587_v31  ;;  %4605 = vmatpush3.msra.mxu1 %v6743_v62 }
 0xd15   :  { %3216 = vmatprep.subr.mxu0 %v6591_v19  ;;  %4606 = vmatprep.subr.mxu1 %v7026_v42 }
 0xd16   :  { %3217 = vmatpush1.msra.mxu0 %v6595_v11  ;;  %4607 = vmatpush3.msra.mxu1 %v6749_v60 }
 0xd17   :  { %3218 = vmatprep.subr.mxu0 %v6599_v51  ;;  %4608 = vmatprep.subr.mxu1 %v7026_v42 }
 0xd18   :  { %3219 = vmatpush1.msra.mxu0 %v6603_v46  ;;  %4609 = vmatpush3.msra.mxu1 %v6755_v54 }
 0xd19   :  { %3220 = vmatprep.subr.mxu0 %v6607_v7  ;;  %4610 = vmatprep.subr.mxu1 %v7026_v42 }
 0xd1a   :  { %3221 = vmatpush1.msra.mxu0 %v6611_v32  ;;  %4611 = vmatpush3.msra.mxu1 %v6761_v23 }
 0xd1b   :  { %3222 = vmatprep.subr.mxu0 %v6615_v10  ;;  %4612 = vmatprep.subr.mxu1 %v7026_v42 }
 0xd1c   :  { %3223 = vmatpush1.msra.mxu0 %v6619_v3  ;;  %4613 = vmatpush3.msra.mxu1 %v6767_v45 }
 0xd1d   :  { %3224 = vmatprep.subr.mxu0 %v6623_v12  ;;  %4614 = vmatprep.subr.mxu1 %v7026_v42 }
 0xd1e   :  { %3225 = vmatpush1.msra.mxu0 %v6627_v25  ;;  %4615 = vmatpush3.msra.mxu1 %v6630_v13 }
 0xd1f   :  { %3226 = vmatprep.subr.mxu0 %v6633_v22  ;;  %4616 = vmatprep.subr.mxu1 %v7026_v42 }
 0xd20   :  { %3227 = vmatpush1.msra.mxu0 %v6637_v14  ;;  %4617 = vmatpush3.msra.mxu1 %v6640_v5 }
 0xd21   :  { %3228 = vmatprep.subr.mxu0 %v6643_v27  ;;  %4618 = vmatprep.subr.mxu1 %v7026_v42 }
 0xd22   :  { %3229 = vmatpush1.msra.mxu0 %v6647_v30  ;;  %4619 = vmatpush3.msra.mxu1 %v6650_v16 }
 0xd23   :  { %3230 = vmatprep.subr.mxu0 %v6653_v50  ;;  %4620 = vmatprep.subr.mxu1 %v7026_v42 }
 0xd24   :  { %3231 = vmatpush1.msra.mxu0 %v6657_v41  ;;  %4621 = vmatpush3.msra.mxu1 %v6660_v18 }
 0xd25   :  { %3232 = vmatprep.subr.mxu0 %v6663_v44  ;;  %4622 = vmatprep.subr.mxu1 %v7026_v42 }
 0xd26   :  { %3233 = vmatpush1.msra.mxu0 %v6667_v33  ;;  %4623 = vmatpush3.msra.mxu1 %v6670_v20 }
 0xd27   :  { %3234 = vmatprep.subr.mxu0 %v6673_v17  ;;  %4624 = vmatprep.subr.mxu1 %v7026_v42 }
 0xd28   :  { %3235 = vmatpush1.msra.mxu0 %v6677_v48  ;;  %4625 = vmatpush3.msra.mxu1 %v6680_v35 }
 0xd29   :  { %3236 = vmatprep.subr.mxu0 %v6683_v26  ;;  %4626 = vmatprep.subr.mxu1 %v7026_v42 }
 0xd2a   :  { %3237 = vmatpush1.msra.mxu0 %v6687_v36  ;;  %4627 = vmatpush3.msra.mxu1 %v6690_v37 }
 0xd2b   :  { %3238 = vmatprep.subr.mxu0 %v6693_v47  ;;  %4628 = vmatprep.subr.mxu1 %v7026_v42 }
 0xd2c   :  { %3239 = vmatpush1.msra.mxu0 %v6697_v38  ;;  %4629 = vmatpush3.msra.mxu1 %v6700_v52 }
 0xd2d   :  { %3240 = vmatprep.subr.mxu0 %v6703_v21  ;;  %4630 = vmatprep.subr.mxu1 %v7026_v42 }
 0xd2e   :  { %3241 = vmatpush1.msra.mxu0 %v6707_v39  ;;  %3274 = vmatprep.mubr.f32.mxu0 %v7026_v42 }
 0xd2f   :  { %4631 = vmatpush3.msra.mxu1 %v6711_v0  ;;  %4632 = vmatprep.mubr.msk.f32.mxu1 %vm5044_vm0, %v7026_v42 }
 0xd30   :  { %3379 = vmatprep.subr.mxu0 %v6555_v34  ;;  %4635 = vmatprep.subr.mxu1 %v7026_v42 }
 0xdcf   :  { %v3107_v57 = vpop.f32.mrf.mxu0  ;;  %v3178_v59 = vpop.f32.mrf.mxu1 }
 0xdd0   :  { %v3185_v61 = vadd.f32 %v3107_v57, %v1992_v55  ;;  %v3199_v53 = vadd.f32 %v6320_v29, %v3178_v59  ;;  %v7154_v55 = vld [vmem:[#allocation38_spill] sm:$0xff]  ;;  %v7155_v29 = vld [vmem:[#allocation33_spill] sm:$0xff]  ;;  %v3551_v59 = vld [vmem:[#allocation9 + $0x18] sm:$0xff] }
 0xdd1   :  { %v4599_v49 = vpop.f32.mrf.mxu1  ;;  %v3109_v1 = vpop.f32.mrf.mxu0  ;;  %v2100_v57 = vadd.f32 %v7154_v55, %v6325_v24  ;;  %v7164_v55 = vld [vmem:[#allocation31_spill] sm:$0xff] }
 0xdd2   :  { %v3678_v63 = vmul.f32 -1.442695, %v3185_v61  ;;  %v3192_v0 = vadd.f32 %v3109_v1, %v1994_v4  ;;  %v3550_v4 = vld [vmem:[#allocation9 + $0x10] sm:$0xff] }
 0xdd4   :  { %4844 = vpow2.f32 %v3678_v63  ;;  %v3679_v39 = vmul.f32 -1.442695, %v3192_v0 }
 0xdd6   :  { %4846 = vpow2.f32 %v3679_v39 }
 0xde1   :  { %v4845_v21 = vpop.eup %4844 }
 0xde2   :  { %v3189_v34 = vadd.f32 1.0, %v4845_v21 }
 0xde3   :  { %v4847_v52 = vpop.eup %4846 }
 0xde4   :  { %4848 = vrcp.f32 %v3189_v34  ;;  %v3196_v38 = vadd.f32 1.0, %v4847_v52  ;;  %v3560_v52 = vld [vmem:[#allocation9 + $0x60] sm:$0xff]  ;;  %v3549_v34 = vld [vmem:[#allocation9 + $0x8] sm:$0xff] }
 0xde6   :  { %4850 = vrcp.f32 %v3196_v38  ;;  %v3561_v38 = vld [vmem:[#allocation9 + $0x68] sm:$0xff] }
 0xdf1   :  { %v4849_v56 = vpop.eup %4848 }
 0xdf2   :  { %v3200_v61 = vmul.f32 %v4849_v56, %v3199_v53  ;;  %v7156_v56 = vld [vmem:[#allocation40_spill] sm:$0xff] }
 0xdf3   :  { %v4851_v2 = vpop.eup %4850  ;;  %v3548_v53 = vld [vmem:[#allocation9] sm:$0xff] }
 0xdf4   :  { %v3201_v49 = vadd.f32 %v3200_v61, %v2100_v57  ;;  %v3203_v63 = vsub.f32 1.0, %v4851_v2  ;;  %v3205_v39 = vmul.f32 %v4851_v2, %v6726_v15  ;;  %v3559_v15 = vld [vmem:[#allocation9 + $0x58] sm:$0xff] }
 0xdf6   :  { %4852 = vtanh.f32 %v3201_v49 }
 0xe03   :  { %v4853_v1 = vpop.eup %4852 }
 0xe04   :  { %v3204_v0 = vmul.f32 %v4853_v1, %v3203_v63 }
 0xe06   :  { %v6819_v21 = vadd.f32 %v3205_v39, %v3204_v0  ;;  %v7165_v39 = vld [vmem:[#allocation37_spill] sm:$0xff] }
 0xe08   :  { %3275 = vmatmul.mubr.f32.vlgmr.msra.gmra.mxu0 %v6819_v21  ;;  %4633 = vmatmul.mubr.f32.vlgmr.msra.gmra.mxu1 %v6819_v21 }
 0xe09   :  { %3380 = vmatpush1.msra.mxu0 %v6571_v9  ;;  %4636 = vmatpush3.msra.mxu1 %v6731_v58  ;;  %v7157_v9 = vld [vmem:[#allocation25_spill] sm:$0xff]  ;;  %v3558_v58 = vld [vmem:[#allocation9 + $0x50] sm:$0xff] }
 0xe0a   :  { %3381 = vmatprep.subr.mxu0 %v6575_v6  ;;  %4637 = vmatprep.subr.mxu1 %v7026_v42  ;;  %v7158_v6 = vld [vmem:[#allocation35_spill] sm:$0xff] }
 0xe0b   :  { %3382 = vmatpush1.msra.mxu0 %v6579_v8  ;;  %4638 = vmatpush3.msra.mxu1 %v6737_v40  ;;  %v7159_v8 = vld [vmem:[#allocation16_spill] sm:$0xff]  ;;  %v3557_v40 = vld [vmem:[#allocation9 + $0x48] sm:$0xff] }
 0xe0c   :  { %3383 = vmatprep.subr.mxu0 %v6583_v43  ;;  %4639 = vmatprep.subr.mxu1 %v7026_v42  ;;  %v7160_v43 = vld [vmem:[#allocation20_spill] sm:$0xff] }
 0xe0d   :  { %3384 = vmatpush1.msra.mxu0 %v6587_v31  ;;  %4640 = vmatpush3.msra.mxu1 %v6743_v62  ;;  %v7161_v31 = vld [vmem:[#allocation39_spill] sm:$0xff]  ;;  %v3556_v62 = vld [vmem:[#allocation9 + $0x40] sm:$0xff]  ;;  %v2004_v57 = vadd.f32 %v7164_v55, %v7160_v43 }
 0xe0e   :  { %3385 = vmatprep.subr.mxu0 %v6591_v19  ;;  %4641 = vmatprep.subr.mxu1 %v7026_v42  ;;  %v1998_v19 = vadd.f32 %v7161_v31, %v7160_v43 }
 0xe0f   :  { %3386 = vmatpush1.msra.mxu0 %v6595_v11  ;;  %4642 = vmatpush3.msra.mxu1 %v6749_v60  ;;  %v3555_v60 = vld [vmem:[#allocation9 + $0x38] sm:$0xff] }
 0xe10   :  { %3387 = vmatprep.subr.mxu0 %v6599_v51  ;;  %4643 = vmatprep.subr.mxu1 %v7026_v42 }
 0xe11   :  { %3388 = vmatpush1.msra.mxu0 %v6603_v46  ;;  %4644 = vmatpush3.msra.mxu1 %v6755_v54  ;;  %v3554_v54 = vld [vmem:[#allocation9 + $0x30] sm:$0xff] }
 0xe12   :  { %3389 = vmatprep.subr.mxu0 %v6607_v7  ;;  %4645 = vmatprep.subr.mxu1 %v7026_v42 }
 0xe13   :  { %3390 = vmatpush1.msra.mxu0 %v6611_v32  ;;  %4646 = vmatpush3.msra.mxu1 %v6761_v23  ;;  %v3553_v23 = vld [vmem:[#allocation9 + $0x28] sm:$0xff] }
 0xe14   :  { %3391 = vmatprep.subr.mxu0 %v6615_v10  ;;  %4647 = vmatprep.subr.mxu1 %v7026_v42 }
 0xe15   :  { %3392 = vmatpush1.msra.mxu0 %v6619_v3  ;;  %4648 = vmatpush3.msra.mxu1 %v6767_v45  ;;  %v7162_v3 = vld [vmem:[#allocation19_spill] sm:$0xff]  ;;  %v3552_v45 = vld [vmem:[#allocation9 + $0x20] sm:$0xff] }
 0xe16   :  { %3393 = vmatprep.subr.mxu0 %v6623_v12  ;;  %4649 = vmatprep.subr.mxu1 %v7026_v42  ;;  %v2000_v12 = vadd.f32 %v7162_v3, %v7122_v28 }
 0xe17   :  { %3394 = vmatpush1.msra.mxu0 %v6627_v25  ;;  %4650 = vmatpush3.msra.mxu1 %v6630_v13 }
 0xe18   :  { %3395 = vmatprep.subr.mxu0 %v6633_v22  ;;  %4651 = vmatprep.subr.mxu1 %v7026_v42 }
 0xe19   :  { %3396 = vmatpush1.msra.mxu0 %v6637_v14  ;;  %4652 = vmatpush3.msra.mxu1 %v6640_v5 }
 0xe1a   :  { %3397 = vmatprep.subr.mxu0 %v6643_v27  ;;  %4653 = vmatprep.subr.mxu1 %v7026_v42 }
 0xe1b   :  { %3398 = vmatpush1.msra.mxu0 %v6647_v30  ;;  %4654 = vmatpush3.msra.mxu1 %v6650_v16  ;;  %v6896_v30 = vld [vmem:[%s6941_s4 + $0x1] ss:$0 sm:$0xff] }
 0xe1c   :  { %3399 = vmatprep.subr.mxu0 %v6653_v50  ;;  %4655 = vmatprep.subr.mxu1 %v7026_v42 }
 0xe1d   :  { %3400 = vmatpush1.msra.mxu0 %v6657_v41  ;;  %4656 = vmatpush3.msra.mxu1 %v6660_v18  ;;  %v7163_v41 = vld [vmem:[#allocation18_spill] sm:$0xff] }
 0xe1e   :  { %3401 = vmatprep.subr.mxu0 %v6663_v44  ;;  %4657 = vmatprep.subr.mxu1 %v7026_v42  ;;  %v2105_v18 = vadd.f32 %v7163_v41, %v6325_v24 }
 0xe1f   :  { %3402 = vmatpush1.msra.mxu0 %v6667_v33  ;;  %4658 = vmatpush3.msra.mxu1 %v6670_v20 }
 0xe20   :  { %3403 = vmatprep.subr.mxu0 %v6673_v17  ;;  %4659 = vmatprep.subr.mxu1 %v7026_v42 }
 0xe21   :  { %3404 = vmatpush1.msra.mxu0 %v6677_v48  ;;  %4660 = vmatpush3.msra.mxu1 %v6680_v35 }
 0xe22   :  { %3405 = vmatprep.subr.mxu0 %v6683_v26  ;;  %4661 = vmatprep.subr.mxu1 %v7026_v42 }
 0xe23   :  { %3406 = vmatpush1.msra.mxu0 %v6687_v36  ;;  %4662 = vmatpush3.msra.mxu1 %v6690_v37  ;;  %v3563_v37 = vld [vmem:[#allocation9 + $0x78] sm:$0xff] }
 0xe24   :  { %3407 = vmatprep.subr.mxu0 %v6693_v47  ;;  %4663 = vmatprep.subr.mxu1 %v7026_v42  ;;  %v3562_v47 = vld [vmem:[#allocation9 + $0x70] sm:$0xff] }
 0xe25   :  { %3408 = vmatpush1.msra.mxu0 %v7155_v29  ;;  %4664 = vmatpush3.msra.mxu1 %v7156_v56 }
 0xe26   :  { %3409 = vmatprep.subr.mxu0 %v7157_v9  ;;  %4665 = vmatprep.subr.mxu1 %v7026_v42 }
 0xe27   :  { %3410 = vmatpush1.msra.mxu0 %v7158_v6  ;;  %3443 = vmatprep.mubr.f32.mxu0 %v7026_v42 }
 0xe28   :  { %4666 = vmatpush3.msra.mxu1 %v7159_v8  ;;  %4667 = vmatprep.mubr.msk.f32.mxu1 %vm5044_vm0, %v7026_v42 }
 0xe29   :  { %4670 = vmatprep.subr.mxu0 %v7026_v42 }
 0xec8   :  { %v3276_v11 = vpop.f32.mrf.mxu0  ;;  %v3347_v51 = vpop.f32.mrf.mxu1 }
 0xec9   :  { %v3354_v46 = vadd.f32 %v3276_v11, %v1998_v19  ;;  %v3368_v16 = vadd.f32 %v6896_v30, %v3347_v51  ;;  %v7166_v19 = vld [vmem:[#allocation32_spill] sm:$0xff] }
 0xeca   :  { %v4634_v7 = vpop.f32.mrf.mxu1  ;;  %v3278_v10 = vpop.f32.mrf.mxu0  ;;  %v2110_v11 = vadd.f32 %v7166_v19, %v6325_v24 }
 0xecb   :  { %v3680_v32 = vmul.f32 -1.442695, %v3354_v46  ;;  %v3361_v25 = vadd.f32 %v3278_v10, %v2000_v12 }
 0xecd   :  { %4854 = vpow2.f32 %v3680_v32  ;;  %v3681_v13 = vmul.f32 -1.442695, %v3361_v25  ;;  %v3684_v25 = vld [vmem:[%s6943_s6] ss:$0 sm:$0xff] }
 0xecf   :  { %4856 = vpow2.f32 %v3681_v13 }
 0xeda   :  { %v4855_v22 = vpop.eup %4854 }
 0xedb   :  { %v3358_v14 = vadd.f32 1.0, %v4855_v22 }
 0xedc   :  { %v4857_v5 = vpop.eup %4856 }
 0xedd   :  { %4858 = vrcp.f32 %v3358_v14  ;;  %v3365_v27 = vadd.f32 1.0, %v4857_v5 }
 0xedf   :  { %4860 = vrcp.f32 %v3365_v27 }
 0xeea   :  { %v4859_v50 = vpop.eup %4858 }
 0xeeb   :  { %v3369_v44 = vmul.f32 %v4859_v50, %v3368_v16 }
 0xeec   :  { %v4861_v20 = vpop.eup %4860 }
 0xeed   :  { %v3370_v33 = vadd.f32 %v3369_v44, %v2105_v18  ;;  %v3372_v17 = vsub.f32 1.0, %v4861_v20  ;;  %v3374_v26 = vmul.f32 %v4861_v20, %v6819_v21  ;;  %v2006_v21 = vadd.f32 %v7165_v39, %v7122_v28 }
 0xeef   :  { %4862 = vtanh.f32 %v3370_v33 }
 0xefc   :  { %v4863_v48 = vpop.eup %4862 }
 0xefd   :  { %v3373_v35 = vmul.f32 %v4863_v48, %v3372_v17 }
 0xeff   :  { %v6902_v36 = vadd.f32 %v3374_v26, %v3373_v35 }
 0xf01   :  { %3444 = vmatmul.mubr.f32.vlgmr.msra.gmra.mxu0 %v6902_v36  ;;  %4668 = vmatmul.mubr.f32.vlgmr.msra.gmra.mxu1 %v6902_v36 }
 0xf02   :  { %4702 = vmatprep.mubr.msk.f32.mxu0 %vm5044_vm0, %v7026_v42  ;;  %4671 = vmatpush3.msra.mxu0 %v3563_v37 }
 0xf03   :  { %4672 = vmatprep.subr.mxu0 %v7026_v42 }
 0xf04   :  { %4673 = vmatpush3.msra.mxu0 %v3562_v47 }
 0xf05   :  { %4674 = vmatprep.subr.mxu0 %v7026_v42 }
 0xf06   :  { %4675 = vmatpush3.msra.mxu0 %v3561_v38 }
 0xf07   :  { %4676 = vmatprep.subr.mxu0 %v7026_v42 }
 0xf08   :  { %4677 = vmatpush3.msra.mxu0 %v3560_v52 }
 0xf09   :  { %4678 = vmatprep.subr.mxu0 %v7026_v42 }
 0xf0a   :  { %4679 = vmatpush3.msra.mxu0 %v3559_v15 }
 0xf0b   :  { %4680 = vmatprep.subr.mxu0 %v7026_v42 }
 0xf0c   :  { %4681 = vmatpush3.msra.mxu0 %v3558_v58 }
 0xf0d   :  { %4682 = vmatprep.subr.mxu0 %v7026_v42 }
 0xf0e   :  { %4683 = vmatpush3.msra.mxu0 %v3557_v40 }
 0xf0f   :  { %4684 = vmatprep.subr.mxu0 %v7026_v42 }
 0xf10   :  { %4685 = vmatpush3.msra.mxu0 %v3556_v62 }
 0xf11   :  { %4686 = vmatprep.subr.mxu0 %v7026_v42 }
 0xf12   :  { %4687 = vmatpush3.msra.mxu0 %v3555_v60 }
 0xf13   :  { %4688 = vmatprep.subr.mxu0 %v7026_v42 }
 0xf14   :  { %4689 = vmatpush3.msra.mxu0 %v3554_v54 }
 0xf15   :  { %4690 = vmatprep.subr.mxu0 %v7026_v42 }
 0xf16   :  { %4691 = vmatpush3.msra.mxu0 %v3553_v23 }
 0xf17   :  { %4692 = vmatprep.subr.mxu0 %v7026_v42 }
 0xf18   :  { %4693 = vmatpush3.msra.mxu0 %v3552_v45 }
 0xf19   :  { %4694 = vmatprep.subr.mxu0 %v7026_v42 }
 0xf1a   :  { %4695 = vmatpush3.msra.mxu0 %v3551_v59 }
 0xf1b   :  { %4696 = vmatprep.subr.mxu0 %v7026_v42 }
 0xf1c   :  { %4697 = vmatpush3.msra.mxu0 %v3550_v4 }
 0xf1d   :  { %4698 = vmatprep.subr.mxu0 %v7026_v42 }
 0xf1e   :  { %4699 = vmatpush3.msra.mxu0 %v3549_v34 }
 0xf1f   :  { %4700 = vmatprep.subr.mxu0 %v7026_v42 }
 0xf20   :  { %4701 = vmatpush3.msra.mxu0 %v3548_v53 }
 0xfc1   :  { %v3445_v61 = vpop.f32.mrf.mxu0  ;;  %v3516_v49 = vpop.f32.mrf.mxu1 }
 0xfc2   :  { %v3523_v2 = vadd.f32 %v3445_v61, %v2004_v57  ;;  %v3537_v43 = vadd.f32 %v6896_v30, %v3516_v49 }
 0xfc3   :  { %v4669_v63 = vpop.f32.mrf.mxu1  ;;  %v3447_v0 = vpop.f32.mrf.mxu0 }
 0xfc4   :  { %v3682_v1 = vmul.f32 -1.442695, %v3523_v2  ;;  %v3530_v29 = vadd.f32 %v3447_v0, %v2006_v21 }
 0xfc6   :  { %4864 = vpow2.f32 %v3682_v1  ;;  %v3683_v56 = vmul.f32 -1.442695, %v3530_v29 }
 0xfc8   :  { %4866 = vpow2.f32 %v3683_v56 }
 0xfd3   :  { %v4865_v9 = vpop.eup %4864 }
 0xfd4   :  { %v3527_v6 = vadd.f32 1.0, %v4865_v9 }
 0xfd5   :  { %v4867_v42 = vpop.eup %4866 }
 0xfd6   :  { %4868 = vrcp.f32 %v3527_v6  ;;  %v3534_v8 = vadd.f32 1.0, %v4867_v42 }
 0xfd8   :  { %4870 = vrcp.f32 %v3534_v8 }
 0xfe3   :  { %v4869_v31 = vpop.eup %4868 }
 0xfe4   :  { %v3538_v51 = vmul.f32 %v4869_v31, %v3537_v43 }
 0xfe5   :  { %v4871_v28 = vpop.eup %4870 }
 0xfe6   :  { %v3539_v46 = vadd.f32 %v3538_v51, %v2110_v11  ;;  %v3541_v7 = vsub.f32 1.0, %v4871_v28  ;;  %v3543_v3 = vmul.f32 %v4871_v28, %v6902_v36 }
 0xfe8   :  { %4872 = vtanh.f32 %v3539_v46 }
 0xff5   :  { %v4873_v32 = vpop.eup %4872 }
 0xff6   :  { %v3542_v10 = vmul.f32 %v4873_v32, %v3541_v7 }
 0xff8   :  { %v3544_v12 = vadd.f32 %v3543_v3, %v3542_v10 }
 0xffa   :  { %4703 = vmatmul.mubr.f32.vlgmr.msra.gmra.mxu0 %v3544_v12 }
0x10ba   :  { %v3637_v13 = vpop.f32.mrf.mxu0 }
0x10bb   :  { %v3638_v22 = vadd.f32 %v3684_v25, %v3637_v13 }
0x10bc   :  { %v4704_v14 = vpop.f32.mrf.mxu0 }
0x10bd   :  { %3641 = vst [vmem:[%s6944_s7] sm:$0xff] %v3638_v22 }
0x10be   :  { %3646 = vsyncpa [#allocation6], 1 }
0x10bf   :  { %3647 = vsyncpa [#allocation8], 1 }

</bundles_post_ra>
